<compile_context>
chip_gen: v6e
topology: v6e:2x2x1
jax: 0.10.0
libtpu: 0.0.40
codegen_flags: <defaults>
</compile_context>

<pallas_src>
import jax
import jax.numpy as jnp
from jax import lax
from jax.experimental import pallas as pl
from jax.experimental.pallas import tpu as pltpu


# ----------------------------------------------------------------------------
# Configuration (small shapes consistent with the module's __init__).
# ----------------------------------------------------------------------------
CFG = dict(
    batch=2,
    height=8,        # untouched "H" axis of the NCHW input (e.g. MEG sensors)
    n_times=36,      # "W" axis: the [1, k] convolutions act along this axis
    n_block=2,
    kernel_size=[3, 3],
    max_pool=2,
    activation="relu",
)

_SELU_ALPHA = 1.6732632423543772
_SELU_SCALE = 1.0507009873554805


def _activation(x, kind):
    """Activation wrapper (relu / selu / elu), as in the PyTorch module."""
    if kind == "relu":
        return jnp.maximum(x, 0.0)
    if kind == "elu":
        return jnp.where(x > 0, x, jnp.exp(x) - 1.0)
    if kind == "selu":
        return _SELU_SCALE * jnp.where(x > 0, x, _SELU_ALPHA * (jnp.exp(x) - 1.0))
    raise ValueError("activation should be one of relu, selu, elu; got {}".format(kind))


def temporal_channels(n_block):
    out_c = [16 * (i + 1) for i in range(n_block)]
    in_c = [1 if i == 0 else 16 * i for i in range(n_block)]
    return in_c, out_c


def temporal_out_width(n_times, kernel_size, max_pool):
    """Same reduction formula as the PyTorch __init__ (conv shrink + pool floor)."""
    w = n_times
    for k in kernel_size:
        w = int(w - (k - 1) * 2)
        w = int(w / (max_pool if max_pool is not None else 1))
    return w


def _lane_pad(c):
    """Pad a channel count up to a full 128-lane tile."""
    return ((c + 127) // 128) * 128


# ----------------------------------------------------------------------------
# Fused Pallas kernel (built as a closure over the static shapes).
# ----------------------------------------------------------------------------
def _build_fused_kernel(n_block, kernel_size, out_channels, n_times, max_pool,
                        m, activation, cf_pad):
    """kernel(x_ref, w1_0, w2_0, sh_0, ..., w1_{nb-1}, w2_{nb-1}, sh_{nb-1}, o_ref)."""

    def conv_acc(a, w_ref, w_in, k):
        # Tap-accumulated conv: k MXU matmuls on leading-dim (free) row slices.
        # a: (w_in*m, cin) slab, rows (time, batch*H); w_ref: (k, cin, cout).
        # Chained adds -> MRB in-place accumulation on v7x.
        w_out = w_in - k + 1
        n = w_out * m
        y = jnp.dot(a[0:n], w_ref[0], preferred_element_type=jnp.float32)
        for j in range(1, k):
            y = y + jnp.dot(a[j * m:j * m + n], w_ref[j],
                            preferred_element_type=jnp.float32)
        return y, w_out

    def conv_cin1(a, w_ref, w_in, k):
        # cin == 1 special case: k VPU broadcast-FMAs, no MXU, no concat.
        # a: (w_in*m, 1) column; w_ref: (k, 1, cout).
        w_out = w_in - k + 1
        n = w_out * m
        y = a[0:n] * w_ref[0]                 # (n, 1) * (1, cout) -> (n, cout)
        for j in range(1, k):
            y = y + a[j * m:j * m + n] * w_ref[j]
        return y, w_out

    def pool(a, w_in, ch):
        # MaxPool2d([1, max_pool]): explicit elementwise maximum of the
        # max_pool leading-dim slices (no reduce over a tiny middle axis).
        w_p = w_in // max_pool
        a = a[: w_p * max_pool * m]
        a4 = a.reshape(w_p, max_pool, m, ch)  # leading-dim split (m % 8 == 0)
        p = a4[:, 0]
        for q in range(1, max_pool):
            p = jnp.maximum(p, a4[:, q])
        return p.reshape(w_p * m, ch), w_p

    def kernel(*refs):
        x_ref = refs[0]
        o_ref = refs[-1]
        prm = refs[1:-1]

        a = x_ref[...]                        # (T*M, 1), rows (time, batch*H)
        w_cur = n_times
        for i in range(n_block):              # statically unrolled
            k = kernel_size[i]
            cout = out_channels[i]
            c_store = cf_pad if i == n_block - 1 else cout
            w1_ref = prm[3 * i]               # (k, cin, cout)
            w2_ref = prm[3 * i + 1]           # (k, cout, c_store)  BN scale folded
            sh_ref = prm[3 * i + 2]           # (1, c_store)        BN shift

            # Conv2d([1,k], no bias) + Activation
            if i == 0:
                a, w_cur = conv_cin1(a, w1_ref, w_cur, k)
            else:
                a, w_cur = conv_acc(a, w1_ref, w_cur, k)
            a = _activation(a, activation)
            # Conv2d([1,k], no bias) + BatchNorm2d (eval; folded into w2 + shift)
            a, w_cur = conv_acc(a, w2_ref, w_cur, k)
            a = a + sh_ref[...]
            # MaxPool2d([1, max_pool]) (floor)
            if max_pool is not None:
                a, w_cur = pool(a, w_cur, c_store)
            # Activation
            a = _activation(a, activation)

        o_ref[...] = a                        # (Wf*M, cf_pad), lane-dense store

    return kernel


# ----------------------------------------------------------------------------
# Forward wrapper (host side = layout plumbing only).
# ----------------------------------------------------------------------------
def temporal_forward(params, x, cfg):
    """x: (B, 1, H, T) float32  ->  (B, 16*n_block, H, W_out), PyTorch NCHW."""
    B, c_in, H, T = x.shape
    assert c_in == 1, "Temporal expects a single input channel"
    n_block = cfg["n_block"]
    ks = cfg["kernel_size"]
    mp = cfg["max_pool"]
    if len(ks) != n_block:
        raise ValueError("The number of kernels has to equal n_block")
    _, out_c = temporal_channels(n_block)
    m = B * H

    wf = temporal_out_width(T, ks, mp)
    if wf < 1:
        raise ValueError("Reduction factor too large; got final width {}".format(wf))
    cf = out_c[-1]
    cf_pad = params[-1]["w2"].shape[-1]       # lane-padded (128) by make_params

    # NCHW -> time-major column slab, rows = (t, b*H + h).  The reshape is a
    # bitcast; the transpose producer is allowed to input-fuse into the
    # pallas_call (review #5), so no standalone HBM round-trip kernel.
    x_cols = jnp.transpose(x.reshape(B * H, T)).reshape(T * m, 1)

    flat_inputs = [x_cols]
    for blk in params:
        flat_inputs += [blk["w1"], blk["w2"], blk["shift"]]

    kernel = _build_fused_kernel(n_block, ks, out_c, T, mp, m,
                                 cfg["activation"], cf_pad)

    out2d = pl.pallas_call(
        kernel,
        out_shape=jax.ShapeDtypeStruct((wf * m, cf_pad), jnp.float32),
        in_specs=[pl.BlockSpec(memory_space=pltpu.MemorySpace.VMEM)
                  for _ in flat_inputs],
        out_specs=pl.BlockSpec(memory_space=pltpu.MemorySpace.VMEM),
        compiler_params=pltpu.CompilerParams(
            allow_input_fusion=[True] + [False] * (len(flat_inputs) - 1)),
    )(*flat_inputs)

    # (Wf*M, cf_pad) rows (w, b, h) -> PyTorch NCHW (B, cf, H, Wf).
    # slice + reshape + transpose fuse into a single tiny XLA copy.
    out = out2d[:, :cf].reshape(wf, B, H, cf)
    return jnp.transpose(out, (1, 3, 2, 0))


# ----------------------------------------------------------------------------
# Deterministic synthetic parameters (eval mode), pre-packed for the kernel:
#   w1 : (k, cin, cout)        conv1 weight[co, ci, 0, j] -> [j, ci, co]
#   w2 : (k, cout, c_store)    conv2 weight pre-scaled by the BN scale; the
#                              last block's output channels are zero-padded to
#                              a full 128-lane tile (c_store = 128)
#   shift : (1, c_store)       BN beta - mean * scale (zero in padded lanes)
# ----------------------------------------------------------------------------
def make_params(key, cfg):
    n_block = cfg["n_block"]
    ks = cfg["kernel_size"]
    in_c, out_c = temporal_channels(n_block)
    keys = jax.random.split(key, 6 * n_block)
    params = []
    for i in range(n_block):
        k = ks[i]
        k1, k2, kg, kb, km, kv = keys[6 * i:6 * (i + 1)]
        w1 = 0.1 * jax.random.normal(k1, (k, in_c[i], out_c[i]), jnp.float32)
        w2 = 0.1 * jax.random.normal(k2, (k, out_c[i], out_c[i]), jnp.float32)
        gamma = 1.0 + 0.1 * jax.random.normal(kg, (out_c[i],), jnp.float32)
        beta = 0.1 * jax.random.normal(kb, (out_c[i],), jnp.float32)
        mean = 0.1 * jax.random.normal(km, (out_c[i],), jnp.float32)
        var = jax.random.uniform(kv, (out_c[i],), jnp.float32,
                                 minval=0.5, maxval=1.5)
        scale = gamma / jnp.sqrt(var + 1e-5)
        shift = (beta - mean * scale).reshape(1, out_c[i])
        w2 = w2 * scale[None, None, :]                      # fold BN scale
        if i == n_block - 1:                                # lane-dense output
            c_store = _lane_pad(out_c[i])
            w2 = jnp.pad(w2, ((0, 0), (0, 0), (0, c_store - out_c[i])))
            shift = jnp.pad(shift, ((0, 0), (0, c_store - out_c[i])))
        params.append(dict(w1=w1, w2=w2, shift=shift))
    return params


# ----------------------------------------------------------------------------
# Pure-JAX reference (same packed/folded params), for a correctness check.
# ----------------------------------------------------------------------------
def _ref_forward(params, x, cfg):
    mp = cfg["max_pool"]
    act = cfg["activation"]
    cf = 16 * cfg["n_block"]
    dn = ("NCHW", "OIHW", "NCHW")
    a = x
    for i, blk in enumerate(params):
        w1 = jnp.transpose(blk["w1"], (2, 1, 0))[:, :, None, :]   # (co, ci, 1, k)
        w2 = jnp.transpose(blk["w2"], (2, 1, 0))[:, :, None, :]
        a = lax.conv_general_dilated(a, w1, (1, 1), "VALID", dimension_numbers=dn,
                                     precision=lax.Precision.HIGHEST)
        a = _activation(a, act)
        a = lax.conv_general_dilated(a, w2, (1, 1), "VALID", dimension_numbers=dn,
                                     precision=lax.Precision.HIGHEST)
        a = a + blk["shift"].reshape(1, -1, 1, 1)
        if mp is not None:
            Bn, Cn, Hn, Wn = a.shape
            Wp = Wn // mp
            a = a[..., : Wp * mp].reshape(Bn, Cn, Hn, Wp, mp).max(axis=-1)
        a = _activation(a, act)
    return a[:, :cf]


# ----------------------------------------------------------------------------
if __name__ == "__main__":
    key = jax.random.PRNGKey(0)
    k_params, k_x = jax.random.split(key)

    params = make_params(k_params, CFG)
    x = jax.random.normal(
        k_x, (CFG["batch"], 1, CFG["height"], CFG["n_times"]), jnp.float32)

    fwd = jax.jit(lambda p, xx: temporal_forward(p, xx, CFG))
    out = jax.block_until_ready(fwd(params, x))

    wf = temporal_out_width(CFG["n_times"], CFG["kernel_size"], CFG["max_pool"])
    expected = (CFG["batch"], 16 * CFG["n_block"], CFG["height"], wf)
    assert out.shape == expected, (out.shape, expected)
    assert bool(jnp.all(jnp.isfinite(out)))

    ref = jax.block_until_ready(jax.jit(lambda p, xx: _ref_forward(p, xx, CFG))(params, x))
    assert ref.shape == out.shape, (ref.shape, out.shape)
    max_err = float(jnp.max(jnp.abs(out - ref)))
    assert max_err < 1e-3, "kernel vs reference mismatch: {}".format(max_err)

    print("KERNEL_OK")
</pallas_src>

<mosaic_0001>
module attributes {stable_mosaic.version = 11 : i64} {
  func.func @kernel(%arg0: memref<576x1xf32, #tpu.memory_space<vmem>>, %arg1: memref<3x1x16xf32, #tpu.memory_space<vmem>>, %arg2: memref<3x16x16xf32, #tpu.memory_space<vmem>>, %arg3: memref<1x16xf32, #tpu.memory_space<vmem>>, %arg4: memref<3x16x32xf32, #tpu.memory_space<vmem>>, %arg5: memref<3x32x128xf32, #tpu.memory_space<vmem>>, %arg6: memref<1x128xf32, #tpu.memory_space<vmem>>, %arg7: memref<96x128xf32, #tpu.memory_space<vmem>>) attributes {dimension_semantics = [], scalar_prefetch = 0 : i64, scratch_operands = 0 : i64, tpu.core_type = #tpu.core_type<tc>} {
    %c0 = arith.constant 0 : index
    %c0_0 = arith.constant 0 : index
    %0 = vector.load %arg0[%c0, %c0_0] : memref<576x1xf32, #tpu.memory_space<vmem>>, vector<576x1xf32>
    %1 = vector.extract_strided_slice %0 {offsets = [0, 0], sizes = [544, 1], strides = [1, 1]} : vector<576x1xf32> to vector<544x1xf32>
    %c0_1 = arith.constant 0 : index
    %c0_2 = arith.constant 0 : index
    %c0_3 = arith.constant 0 : index
    %2 = vector.load %arg1[%c0_1, %c0_2, %c0_3] : memref<3x1x16xf32, #tpu.memory_space<vmem>>, vector<1x1x16xf32>
    %3 = vector.shape_cast %2 : vector<1x1x16xf32> to vector<1x16xf32>
    %4 = vector.broadcast %1 : vector<544x1xf32> to vector<544x16xf32>
    %5 = vector.broadcast %3 : vector<1x16xf32> to vector<544x16xf32>
    %6 = arith.mulf %4, %5 : vector<544x16xf32>
    %7 = vector.extract_strided_slice %0 {offsets = [16, 0], sizes = [544, 1], strides = [1, 1]} : vector<576x1xf32> to vector<544x1xf32>
    %c1 = arith.constant 1 : index
    %c0_4 = arith.constant 0 : index
    %c0_5 = arith.constant 0 : index
    %8 = vector.load %arg1[%c1, %c0_4, %c0_5] : memref<3x1x16xf32, #tpu.memory_space<vmem>>, vector<1x1x16xf32>
    %9 = vector.shape_cast %8 : vector<1x1x16xf32> to vector<1x16xf32>
    %10 = vector.broadcast %7 : vector<544x1xf32> to vector<544x16xf32>
    %11 = vector.broadcast %9 : vector<1x16xf32> to vector<544x16xf32>
    %12 = arith.mulf %10, %11 : vector<544x16xf32>
    %13 = arith.addf %6, %12 : vector<544x16xf32>
    %14 = vector.extract_strided_slice %0 {offsets = [32, 0], sizes = [544, 1], strides = [1, 1]} : vector<576x1xf32> to vector<544x1xf32>
    %c2 = arith.constant 2 : index
    %c0_6 = arith.constant 0 : index
    %c0_7 = arith.constant 0 : index
    %15 = vector.load %arg1[%c2, %c0_6, %c0_7] : memref<3x1x16xf32, #tpu.memory_space<vmem>>, vector<1x1x16xf32>
    %16 = vector.shape_cast %15 : vector<1x1x16xf32> to vector<1x16xf32>
    %17 = vector.broadcast %14 : vector<544x1xf32> to vector<544x16xf32>
    %18 = vector.broadcast %16 : vector<1x16xf32> to vector<544x16xf32>
    %19 = arith.mulf %17, %18 : vector<544x16xf32>
    %20 = arith.addf %13, %19 : vector<544x16xf32>
    %cst = arith.constant 0.000000e+00 : f32
    %21 = vector.broadcast %cst : f32 to vector<544x16xf32>
    %22 = arith.maximumf %20, %21 : vector<544x16xf32>
    %23 = vector.extract_strided_slice %22 {offsets = [0, 0], sizes = [512, 16], strides = [1, 1]} : vector<544x16xf32> to vector<512x16xf32>
    %c0_8 = arith.constant 0 : index
    %c0_9 = arith.constant 0 : index
    %c0_10 = arith.constant 0 : index
    %24 = vector.load %arg2[%c0_8, %c0_9, %c0_10] : memref<3x16x16xf32, #tpu.memory_space<vmem>>, vector<1x16x16xf32>
    %25 = vector.shape_cast %24 : vector<1x16x16xf32> to vector<16x16xf32>
    %cst_11 = arith.constant dense<0.000000e+00> : vector<512x16xf32>
    %26 = tpu.matmul %23, %25, %cst_11 {dimension_numbers = #tpu.dot_dimension_numbers<[1], [0], [0], [1], [0, 0, 1, 1], [], []>} : vector<512x16xf32>, vector<16x16xf32>, vector<512x16xf32> -> vector<512x16xf32>
    %27 = vector.extract_strided_slice %22 {offsets = [16, 0], sizes = [512, 16], strides = [1, 1]} : vector<544x16xf32> to vector<512x16xf32>
    %c1_12 = arith.constant 1 : index
    %c0_13 = arith.constant 0 : index
    %c0_14 = arith.constant 0 : index
    %28 = vector.load %arg2[%c1_12, %c0_13, %c0_14] : memref<3x16x16xf32, #tpu.memory_space<vmem>>, vector<1x16x16xf32>
    %29 = vector.shape_cast %28 : vector<1x16x16xf32> to vector<16x16xf32>
    %cst_15 = arith.constant dense<0.000000e+00> : vector<512x16xf32>
    %30 = tpu.matmul %27, %29, %cst_15 {dimension_numbers = #tpu.dot_dimension_numbers<[1], [0], [0], [1], [0, 0, 1, 1], [], []>} : vector<512x16xf32>, vector<16x16xf32>, vector<512x16xf32> -> vector<512x16xf32>
    %31 = arith.addf %26, %30 : vector<512x16xf32>
    %32 = vector.extract_strided_slice %22 {offsets = [32, 0], sizes = [512, 16], strides = [1, 1]} : vector<544x16xf32> to vector<512x16xf32>
    %c2_16 = arith.constant 2 : index
    %c0_17 = arith.constant 0 : index
    %c0_18 = arith.constant 0 : index
    %33 = vector.load %arg2[%c2_16, %c0_17, %c0_18] : memref<3x16x16xf32, #tpu.memory_space<vmem>>, vector<1x16x16xf32>
    %34 = vector.shape_cast %33 : vector<1x16x16xf32> to vector<16x16xf32>
    %cst_19 = arith.constant dense<0.000000e+00> : vector<512x16xf32>
    %35 = tpu.matmul %32, %34, %cst_19 {dimension_numbers = #tpu.dot_dimension_numbers<[1], [0], [0], [1], [0, 0, 1, 1], [], []>} : vector<512x16xf32>, vector<16x16xf32>, vector<512x16xf32> -> vector<512x16xf32>
    %36 = arith.addf %31, %35 : vector<512x16xf32>
    %c0_20 = arith.constant 0 : index
    %c0_21 = arith.constant 0 : index
    %37 = vector.load %arg3[%c0_20, %c0_21] : memref<1x16xf32, #tpu.memory_space<vmem>>, vector<1x16xf32>
    %38 = vector.broadcast %37 : vector<1x16xf32> to vector<512x16xf32>
    %39 = arith.addf %36, %38 : vector<512x16xf32>
    %40 = vector.shape_cast %39 : vector<512x16xf32> to vector<16x2x16x16xf32>
    %41 = vector.extract_strided_slice %40 {offsets = [0, 0, 0, 0], sizes = [16, 1, 16, 16], strides = [1, 1, 1, 1]} : vector<16x2x16x16xf32> to vector<16x1x16x16xf32>
    %42 = vector.shape_cast %41 : vector<16x1x16x16xf32> to vector<16x16x16xf32>
    %43 = vector.extract_strided_slice %40 {offsets = [0, 1, 0, 0], sizes = [16, 1, 16, 16], strides = [1, 1, 1, 1]} : vector<16x2x16x16xf32> to vector<16x1x16x16xf32>
    %44 = vector.shape_cast %43 : vector<16x1x16x16xf32> to vector<16x16x16xf32>
    %45 = arith.maximumf %42, %44 : vector<16x16x16xf32>
    %46 = vector.shape_cast %45 : vector<16x16x16xf32> to vector<256x16xf32>
    %cst_22 = arith.constant 0.000000e+00 : f32
    %47 = vector.broadcast %cst_22 : f32 to vector<256x16xf32>
    %48 = arith.maximumf %46, %47 : vector<256x16xf32>
    %49 = vector.extract_strided_slice %48 {offsets = [0, 0], sizes = [224, 16], strides = [1, 1]} : vector<256x16xf32> to vector<224x16xf32>
    %c0_23 = arith.constant 0 : index
    %c0_24 = arith.constant 0 : index
    %c0_25 = arith.constant 0 : index
    %50 = vector.load %arg4[%c0_23, %c0_24, %c0_25] : memref<3x16x32xf32, #tpu.memory_space<vmem>>, vector<1x16x32xf32>
    %51 = vector.shape_cast %50 : vector<1x16x32xf32> to vector<16x32xf32>
    %cst_26 = arith.constant dense<0.000000e+00> : vector<224x32xf32>
    %52 = tpu.matmul %49, %51, %cst_26 {dimension_numbers = #tpu.dot_dimension_numbers<[1], [0], [0], [1], [0, 0, 1, 1], [], []>} : vector<224x16xf32>, vector<16x32xf32>, vector<224x32xf32> -> vector<224x32xf32>
    %53 = vector.extract_strided_slice %48 {offsets = [16, 0], sizes = [224, 16], strides = [1, 1]} : vector<256x16xf32> to vector<224x16xf32>
    %c1_27 = arith.constant 1 : index
    %c0_28 = arith.constant 0 : index
    %c0_29 = arith.constant 0 : index
    %54 = vector.load %arg4[%c1_27, %c0_28, %c0_29] : memref<3x16x32xf32, #tpu.memory_space<vmem>>, vector<1x16x32xf32>
    %55 = vector.shape_cast %54 : vector<1x16x32xf32> to vector<16x32xf32>
    %cst_30 = arith.constant dense<0.000000e+00> : vector<224x32xf32>
    %56 = tpu.matmul %53, %55, %cst_30 {dimension_numbers = #tpu.dot_dimension_numbers<[1], [0], [0], [1], [0, 0, 1, 1], [], []>} : vector<224x16xf32>, vector<16x32xf32>, vector<224x32xf32> -> vector<224x32xf32>
    %57 = arith.addf %52, %56 : vector<224x32xf32>
    %58 = vector.extract_strided_slice %48 {offsets = [32, 0], sizes = [224, 16], strides = [1, 1]} : vector<256x16xf32> to vector<224x16xf32>
    %c2_31 = arith.constant 2 : index
    %c0_32 = arith.constant 0 : index
    %c0_33 = arith.constant 0 : index
    %59 = vector.load %arg4[%c2_31, %c0_32, %c0_33] : memref<3x16x32xf32, #tpu.memory_space<vmem>>, vector<1x16x32xf32>
    %60 = vector.shape_cast %59 : vector<1x16x32xf32> to vector<16x32xf32>
    %cst_34 = arith.constant dense<0.000000e+00> : vector<224x32xf32>
    %61 = tpu.matmul %58, %60, %cst_34 {dimension_numbers = #tpu.dot_dimension_numbers<[1], [0], [0], [1], [0, 0, 1, 1], [], []>} : vector<224x16xf32>, vector<16x32xf32>, vector<224x32xf32> -> vector<224x32xf32>
    %62 = arith.addf %57, %61 : vector<224x32xf32>
    %cst_35 = arith.constant 0.000000e+00 : f32
    %63 = vector.broadcast %cst_35 : f32 to vector<224x32xf32>
    %64 = arith.maximumf %62, %63 : vector<224x32xf32>
    %65 = vector.extract_strided_slice %64 {offsets = [0, 0], sizes = [192, 32], strides = [1, 1]} : vector<224x32xf32> to vector<192x32xf32>
    %c0_36 = arith.constant 0 : index
    %c0_37 = arith.constant 0 : index
    %c0_38 = arith.constant 0 : index
    %66 = vector.load %arg5[%c0_36, %c0_37, %c0_38] : memref<3x32x128xf32, #tpu.memory_space<vmem>>, vector<1x32x128xf32>
    %67 = vector.shape_cast %66 : vector<1x32x128xf32> to vector<32x128xf32>
    %cst_39 = arith.constant dense<0.000000e+00> : vector<192x128xf32>
    %68 = tpu.matmul %65, %67, %cst_39 {dimension_numbers = #tpu.dot_dimension_numbers<[1], [0], [0], [1], [0, 0, 1, 1], [], []>} : vector<192x32xf32>, vector<32x128xf32>, vector<192x128xf32> -> vector<192x128xf32>
    %69 = vector.extract_strided_slice %64 {offsets = [16, 0], sizes = [192, 32], strides = [1, 1]} : vector<224x32xf32> to vector<192x32xf32>
    %c1_40 = arith.constant 1 : index
    %c0_41 = arith.constant 0 : index
    %c0_42 = arith.constant 0 : index
    %70 = vector.load %arg5[%c1_40, %c0_41, %c0_42] : memref<3x32x128xf32, #tpu.memory_space<vmem>>, vector<1x32x128xf32>
    %71 = vector.shape_cast %70 : vector<1x32x128xf32> to vector<32x128xf32>
    %cst_43 = arith.constant dense<0.000000e+00> : vector<192x128xf32>
    %72 = tpu.matmul %69, %71, %cst_43 {dimension_numbers = #tpu.dot_dimension_numbers<[1], [0], [0], [1], [0, 0, 1, 1], [], []>} : vector<192x32xf32>, vector<32x128xf32>, vector<192x128xf32> -> vector<192x128xf32>
    %73 = arith.addf %68, %72 : vector<192x128xf32>
    %74 = vector.extract_strided_slice %64 {offsets = [32, 0], sizes = [192, 32], strides = [1, 1]} : vector<224x32xf32> to vector<192x32xf32>
    %c2_44 = arith.constant 2 : index
    %c0_45 = arith.constant 0 : index
    %c0_46 = arith.constant 0 : index
    %75 = vector.load %arg5[%c2_44, %c0_45, %c0_46] : memref<3x32x128xf32, #tpu.memory_space<vmem>>, vector<1x32x128xf32>
    %76 = vector.shape_cast %75 : vector<1x32x128xf32> to vector<32x128xf32>
    %cst_47 = arith.constant dense<0.000000e+00> : vector<192x128xf32>
    %77 = tpu.matmul %74, %76, %cst_47 {dimension_numbers = #tpu.dot_dimension_numbers<[1], [0], [0], [1], [0, 0, 1, 1], [], []>} : vector<192x32xf32>, vector<32x128xf32>, vector<192x128xf32> -> vector<192x128xf32>
    %78 = arith.addf %73, %77 : vector<192x128xf32>
    %c0_48 = arith.constant 0 : index
    %c0_49 = arith.constant 0 : index
    %79 = vector.load %arg6[%c0_48, %c0_49] : memref<1x128xf32, #tpu.memory_space<vmem>>, vector<1x128xf32>
    %80 = vector.broadcast %79 : vector<1x128xf32> to vector<192x128xf32>
    %81 = arith.addf %78, %80 : vector<192x128xf32>
    %82 = vector.shape_cast %81 : vector<192x128xf32> to vector<6x2x16x128xf32>
    %83 = vector.extract_strided_slice %82 {offsets = [0, 0, 0, 0], sizes = [6, 1, 16, 128], strides = [1, 1, 1, 1]} : vector<6x2x16x128xf32> to vector<6x1x16x128xf32>
    %84 = vector.shape_cast %83 : vector<6x1x16x128xf32> to vector<6x16x128xf32>
    %85 = vector.extract_strided_slice %82 {offsets = [0, 1, 0, 0], sizes = [6, 1, 16, 128], strides = [1, 1, 1, 1]} : vector<6x2x16x128xf32> to vector<6x1x16x128xf32>
    %86 = vector.shape_cast %85 : vector<6x1x16x128xf32> to vector<6x16x128xf32>
    %87 = arith.maximumf %84, %86 : vector<6x16x128xf32>
    %88 = vector.shape_cast %87 : vector<6x16x128xf32> to vector<96x128xf32>
    %cst_50 = arith.constant 0.000000e+00 : f32
    %89 = vector.broadcast %cst_50 : f32 to vector<96x128xf32>
    %90 = arith.maximumf %88, %89 : vector<96x128xf32>
    %c0_51 = arith.constant 0 : index
    %c0_52 = arith.constant 0 : index
    %91 = vector.load %arg7[%c0_51, %c0_52] : memref<96x128xf32, #tpu.memory_space<vmem>>, vector<96x128xf32>
    tpu.vector_store %arg7[%c0_51, %c0_52], %90 {strides = array<i32>} : memref<96x128xf32, #tpu.memory_space<vmem>>, vector<96x128xf32>,
    return
  }
}

</mosaic_0001>

<bundles_post_ra>
// kernel: _lambda_.1
= control target key start
LH: loop header
LB: loop body
LE: loop exit
PB: predicated region body
PF: predicated region fallthrough
CT: control target
= control target key end

     0   :  { %v5304_v0 = vmov 0   ;;  %vm894_vm0 = vcmask 130048   ;;  %vm3240_vm1 = vcmask 261120   ;;  %s7306_s0 = inlined_call_operand.vmem [shape: f32[576,1], index: 0, kind: input, shape index: {}]   ;;  %s7307_s2 = inlined_call_operand.vmem [shape: f32[3,16,16], index: 2, kind: input, shape index: {}]   ;;  %s7308_s1 = inlined_call_operand.vmem [shape: f32[3,1,16], index: 1, kind: input, shape index: {}]   ;;  %s7309_s4 = inlined_call_operand.vmem [shape: f32[3,16,32], index: 4, kind: input, shape index: {}]   ;;  %s7310_s3 = inlined_call_operand.vmem [shape: f32[1,16], index: 3, kind: input, shape index: {}]   ;;  %s7311_s5 = inlined_call_operand.vmem [shape: f32[3,32,128], index: 5, kind: input, shape index: {}]   ;;  %s7312_s6 = inlined_call_operand.vmem [shape: f32[1,128], index: 6, kind: input, shape index: {}]   ;;  %s7313_s7 = inlined_call_operand.vmem [shape: f32[96,128], index: 7, kind: output, shape index: {}]  }
   0x1   :  { %5299 = vset.pattern.permute.xlu1 %v5304_v0  ;;  %5298 = vset.pattern.permute.xlu0 %v5304_v0  ;;  %v29_v1 = vld [vmem:[%s7306_s0 + $0x18] sm:$0xff]  ;;  %v28_v2 = vld [vmem:[%s7306_s0 + $0x10] sm:$0xff]  ;;  %v31_v3 = vld [vmem:[%s7306_s0 + $0x28] sm:$0xff] }
   0x2   :  { %116 = vperm.xlu1 %5299, %v29_v1   ;;  %111 = vperm.xlu0 %5298, %v28_v2   ;;  %v30_v4 = vld [vmem:[%s7306_s0 + $0x20] sm:$0xff]  ;;  %v33_v5 = vld [vmem:[%s7306_s0 + $0x38] sm:$0xff]  ;;  %v32_v6 = vld [vmem:[%s7306_s0 + $0x30] sm:$0xff] }
   0x3   :  { %v35_v7 = vld [vmem:[%s7306_s0 + $0x48] sm:$0xff]  ;;  %v34_v8 = vld [vmem:[%s7306_s0 + $0x40] sm:$0xff]  ;;  %v37_v9 = vld [vmem:[%s7306_s0 + $0x58] sm:$0xff] }
   0x4   :  { %v36_v10 = vld [vmem:[%s7306_s0 + $0x50] sm:$0xff]  ;;  %v39_v11 = vld [vmem:[%s7306_s0 + $0x68] sm:$0xff]  ;;  %v38_v12 = vld [vmem:[%s7306_s0 + $0x60] sm:$0xff] }
   0x5   :  { %v41_v13 = vld [vmem:[%s7306_s0 + $0x78] sm:$0xff]  ;;  %v40_v14 = vld [vmem:[%s7306_s0 + $0x70] sm:$0xff]  ;;  %v43_v17 = vld [vmem:[%s7306_s0 + $0x88] sm:$0xff] }
   0x6   :  { %126 = vperm.xlu1 %5299, %v31_v3   ;;  %121 = vperm.xlu0 %5298, %v30_v4   ;;  %v3986_v15 = vld [vmem:[%s7307_s2 + $0x18] sm:$0xff]  ;;  %v3985_v16 = vld [vmem:[%s7307_s2 + $0x10] sm:$0xff]  ;;  %v42_v18 = vld [vmem:[%s7306_s0 + $0x80] sm:$0xff] }
   0x7   :  { %4723 = vmatprep.subr.mxu0 %v3986_v15  ;;  %5293 = vmatprep.subr.mxu1 %v3986_v15  ;;  %v5402_v19 = vld [vmem:[%s7307_s2 + $0x28] sm:$0xff]  ;;  %v45_v20 = vld [vmem:[%s7306_s0 + $0x98] sm:$0xff]  ;;  %v44_v21 = vld [vmem:[%s7306_s0 + $0x90] sm:$0xff] }
   0x8   :  { %4724 = vmatpush3.msra.mxu0 %v3986_v15  ;;  %5295 = vmatpush3.msra.mxu1 %v3986_v15  ;;  %v47_v22 = vld [vmem:[%s7306_s0 + $0xa8] sm:$0xff]  ;;  %v46_v23 = vld [vmem:[%s7306_s0 + $0xa0] sm:$0xff]  ;;  %v49_v24 = vld [vmem:[%s7306_s0 + $0xb8] sm:$0xff] }
   0x9   :  { %4725 = vmatprep.subr.mxu0 %v3985_v16  ;;  %5294 = vmatprep.subr.mxu1 %v3985_v16  ;;  %v48_v25 = vld [vmem:[%s7306_s0 + $0xb0] sm:$0xff]  ;;  %v51_v26 = vld [vmem:[%s7306_s0 + $0xc8] sm:$0xff]  ;;  %v50_v27 = vld [vmem:[%s7306_s0 + $0xc0] sm:$0xff] }
   0xa   :  { %136 = vperm.xlu1 %5299, %v33_v5   ;;  %131 = vperm.xlu0 %5298, %v32_v6   ;;  %v53_v28 = vld [vmem:[%s7306_s0 + $0xd8] sm:$0xff]  ;;  %v52_v29 = vld [vmem:[%s7306_s0 + $0xd0] sm:$0xff]  ;;  %v55_v30 = vld [vmem:[%s7306_s0 + $0xe8] sm:$0xff] }
   0xb   :  { %4726 = vmatpush3.msra.mxu0 %v3985_v16  ;;  %5296 = vmatpush3.msra.mxu1 %v3985_v16  ;;  %v54_v31 = vld [vmem:[%s7306_s0 + $0xe0] sm:$0xff]  ;;  %v57_v32 = vld [vmem:[%s7306_s0 + $0xf8] sm:$0xff]  ;;  %v56_v33 = vld [vmem:[%s7306_s0 + $0xf0] sm:$0xff] }
   0xc   :  { %4923 = vmatprep.subr.mxu0 %v5402_v19  ;;  %v59_v34 = vld [vmem:[%s7306_s0 + $0x108] sm:$0xff]  ;;  %v58_v35 = vld [vmem:[%s7306_s0 + $0x100] sm:$0xff]  ;;  %v61_v36 = vld [vmem:[%s7306_s0 + $0x118] sm:$0xff] }
   0xd   :  { %v60_v37 = vld [vmem:[%s7306_s0 + $0x110] sm:$0xff]  ;;  %v63_v38 = vld [vmem:[%s7306_s0 + $0x128] sm:$0xff]  ;;  %v62_v39 = vld [vmem:[%s7306_s0 + $0x120] sm:$0xff] }
   0xe   :  { %146 = vperm.xlu1 %5299, %v35_v7   ;;  %141 = vperm.xlu0 %5298, %v34_v8   ;;  %v65_v40 = vld [vmem:[%s7306_s0 + $0x138] sm:$0xff]  ;;  %v64_v41 = vld [vmem:[%s7306_s0 + $0x130] sm:$0xff]  ;;  %v67_v42 = vld [vmem:[%s7306_s0 + $0x148] sm:$0xff] }
   0xf   :  { %v66_v43 = vld [vmem:[%s7306_s0 + $0x140] sm:$0xff]  ;;  %v69_v44 = vld [vmem:[%s7306_s0 + $0x158] sm:$0xff]  ;;  %v68_v45 = vld [vmem:[%s7306_s0 + $0x150] sm:$0xff] }
  0x10   :  { %v71_v46 = vld [vmem:[%s7306_s0 + $0x168] sm:$0xff]  ;;  %v70_v47 = vld [vmem:[%s7306_s0 + $0x160] sm:$0xff]  ;;  %v73_v48 = vld [vmem:[%s7306_s0 + $0x178] sm:$0xff] }
  0x11   :  { %v72_v49 = vld [vmem:[%s7306_s0 + $0x170] sm:$0xff]  ;;  %v75_v50 = vld [vmem:[%s7306_s0 + $0x188] sm:$0xff]  ;;  %v74_v51 = vld [vmem:[%s7306_s0 + $0x180] sm:$0xff] }
  0x12   :  { %156 = vperm.xlu1 %5299, %v37_v9   ;;  %151 = vperm.xlu0 %5298, %v36_v10   ;;  %v77_v52 = vld [vmem:[%s7306_s0 + $0x198] sm:$0xff]  ;;  %v76_v53 = vld [vmem:[%s7306_s0 + $0x190] sm:$0xff]  ;;  %v79_v54 = vld [vmem:[%s7306_s0 + $0x1a8] sm:$0xff] }
  0x13   :  { %v78_v55 = vld [vmem:[%s7306_s0 + $0x1a0] sm:$0xff]  ;;  %v81_v56 = vld [vmem:[%s7306_s0 + $0x1b8] sm:$0xff]  ;;  %v80_v57 = vld [vmem:[%s7306_s0 + $0x1b0] sm:$0xff] }
  0x14   :  { %v83_v58 = vld [vmem:[%s7306_s0 + $0x1c8] sm:$0xff]  ;;  %v82_v59 = vld [vmem:[%s7306_s0 + $0x1c0] sm:$0xff]  ;;  %v85_v60 = vld [vmem:[%s7306_s0 + $0x1d8] sm:$0xff] }
  0x15   :  { %v84_v61 = vld [vmem:[%s7306_s0 + $0x1d0] sm:$0xff]  ;;  %v87_v62 = vld [vmem:[%s7306_s0 + $0x1e8] sm:$0xff]  ;;  %v86_v63 = vld [vmem:[%s7306_s0 + $0x1e0] sm:$0xff] }
  0x16   :  { %166 = vperm.xlu1 %5299, %v39_v11   ;;  %161 = vperm.xlu0 %5298, %v38_v12   ;;  %v89_v0 = vld [vmem:[%s7306_s0 + $0x1f8] sm:$0xff]  ;;  %v88_v1 = vld [vmem:[%s7306_s0 + $0x1f0] sm:$0xff]  ;;  %v90_v3 = vld [vmem:[%s7306_s0 + $0x200] sm:$0xff] }
  0x17   :  { %v92_v2 = vld [vmem:[%s7306_s0 + $0x210] sm:$0xff]  ;;  %v93_v6 = vld [vmem:[%s7306_s0 + $0x218] sm:$0xff]  ;;  %v91_v7 = vld [vmem:[%s7306_s0 + $0x208] sm:$0xff] }
  0x18   :  { %v5562_v8 = vld [vmem:[%s7308_s1] ss:$0 sm:$0xff]  ;;  %v5567_v9 = vld [vmem:[%s7308_s1 + $0x1] ss:$0 sm:$0xff] }
  0x19   :  { %v94_v16 = vld [vmem:[%s7306_s0 + $0x220] sm:$0xff] }
  0x1a   :  { %176 = vperm.xlu1 %5299, %v41_v13   ;;  %171 = vperm.xlu0 %5298, %v40_v14   ;;  %v95_v14 = vld [vmem:[%s7306_s0 + $0x228] sm:$0xff] }
  0x1e   :  { %186 = vperm.xlu1 %5299, %v43_v17   ;;  %181 = vperm.xlu0 %5298, %v42_v18   ;;  %v5590_v18 = vld [vmem:[%s7308_s1 + $0x2] ss:$0 sm:$0xff] }
  0x22   :  { %196 = vperm.xlu1 %5299, %v45_v20   ;;  %191 = vperm.xlu0 %5298, %v44_v21  }
  0x26   :  { %206 = vperm.xlu1 %5299, %v47_v22   ;;  %201 = vperm.xlu0 %5298, %v46_v23  }
  0x2a   :  { %216 = vperm.xlu1 %5299, %v49_v24   ;;  %211 = vperm.xlu0 %5298, %v48_v25  }
  0x2e   :  { %226 = vperm.xlu1 %5299, %v51_v26   ;;  %221 = vperm.xlu0 %5298, %v50_v27   ;;  %v27_v27 = vld [vmem:[%s7306_s0 + $0x8] sm:$0xff] }
  0x32   :  { %236 = vperm.xlu1 %5299, %v53_v28   ;;  %231 = vperm.xlu0 %5298, %v52_v29  }
  0x36   :  { %246 = vperm.xlu1 %5299, %v55_v30   ;;  %241 = vperm.xlu0 %5298, %v54_v31   ;;  %v26_v31 = vld [vmem:[%s7306_s0] sm:$0xff] }
  0x3a   :  { %256 = vperm.xlu1 %5299, %v57_v32   ;;  %251 = vperm.xlu0 %5298, %v56_v33  }
  0x3e   :  { %266 = vperm.xlu1 %5299, %v59_v34   ;;  %261 = vperm.xlu0 %5298, %v58_v35  }
  0x42   :  { %276 = vperm.xlu1 %5299, %v61_v36   ;;  %271 = vperm.xlu0 %5298, %v60_v37  }
  0x46   :  { %286 = vperm.xlu1 %5299, %v63_v38   ;;  %281 = vperm.xlu0 %5298, %v62_v39  }
  0x4a   :  { %296 = vperm.xlu1 %5299, %v65_v40   ;;  %291 = vperm.xlu0 %5298, %v64_v41  }
  0x4e   :  { %306 = vperm.xlu1 %5299, %v67_v42   ;;  %301 = vperm.xlu0 %5298, %v66_v43  }
  0x52   :  { %316 = vperm.xlu1 %5299, %v69_v44   ;;  %311 = vperm.xlu0 %5298, %v68_v45   ;;  %v97_v44 = vld [vmem:[%s7306_s0 + $0x238] sm:$0xff] }
  0x56   :  { %326 = vperm.xlu1 %5299, %v71_v46   ;;  %321 = vperm.xlu0 %5298, %v70_v47   ;;  %v96_v47 = vld [vmem:[%s7306_s0 + $0x230] sm:$0xff] }
  0x5a   :  { %336 = vperm.xlu1 %5299, %v73_v48   ;;  %331 = vperm.xlu0 %5298, %v72_v49   ;;  %v890_v48 = vld [vmem:[%s7307_s2 + $0x8] sm:$0xff] }
  0x5b   :  { %4823 = vmatprep.subr.mxu1 %v890_v48 }
  0x5e   :  { %346 = vperm.xlu1 %5299, %v75_v50   ;;  %341 = vperm.xlu0 %5298, %v74_v51  }
  0x62   :  { %356 = vperm.xlu1 %5299, %v77_v52   ;;  %351 = vperm.xlu0 %5298, %v76_v53   ;;  %v4115_v53 = vld [vmem:[%s7307_s2 + $0x20] sm:$0xff] }
  0x66   :  { %366 = vperm.xlu1 %5299, %v79_v54   ;;  %361 = vperm.xlu0 %5298, %v78_v55  }
  0x6a   :  { %376 = vperm.xlu1 %5299, %v81_v56   ;;  %371 = vperm.xlu0 %5298, %v80_v57  }
  0x6e   :  { %386 = vperm.xlu1 %5299, %v83_v58   ;;  %381 = vperm.xlu0 %5298, %v82_v59  }
  0x72   :  { %396 = vperm.xlu1 %5299, %v85_v60   ;;  %391 = vperm.xlu0 %5298, %v84_v61  }
  0x76   :  { %406 = vperm.xlu1 %5299, %v87_v62   ;;  %401 = vperm.xlu0 %5298, %v86_v63  }
  0x7a   :  { %416 = vperm.xlu1 %5299, %v89_v0   ;;  %411 = vperm.xlu0 %5298, %v88_v1  }
  0x7d   :  { %v5549_v4 = vpop.permute.xlu1 %116  ;;  %v5551_v5 = vpop.permute.xlu0 %111 }
  0x7e   :  { %431 = vperm.xlu1 %5299, %v92_v2   ;;  %421 = vperm.xlu0 %5298, %v90_v3   ;;  %v448_v15 = vmul.f32 %v5562_v8, %v5549_v4  ;;  %v447_v17 = vmul.f32 %v5562_v8, %v5551_v5 }
  0x81   :  { %v5569_v10 = vpop.permute.xlu1 %126  ;;  %v5571_v11 = vpop.permute.xlu0 %121 }
  0x82   :  { %v534_v12 = vmul.f32 %v5567_v9, %v5569_v10  ;;  %436 = vperm.xlu1 %5299, %v93_v6   ;;  %v533_v13 = vmul.f32 %v5567_v9, %v5571_v11  ;;  %426 = vperm.xlu0 %5298, %v91_v7   ;;  %v450_v29 = vmul.f32 %v5562_v8, %v5569_v10 }
  0x83   :  { %v449_v32 = vmul.f32 %v5562_v8, %v5571_v11 }
  0x84   :  { %v602_v22 = vadd.f32 %v534_v12, %v448_v15  ;;  %v601_v28 = vadd.f32 %v533_v13, %v447_v17 }
  0x85   :  { %v137_v20 = vpop.permute.xlu1 %136  ;;  %v132_v21 = vpop.permute.xlu0 %131 }
  0x86   :  { %v536_v23 = vmul.f32 %v5567_v9, %v137_v20  ;;  %v688_v24 = vmul.f32 %v5590_v18, %v137_v20  ;;  %522 = vperm.xlu1 %5299, %v95_v14   ;;  %v535_v25 = vmul.f32 %v5567_v9, %v132_v21  ;;  %v687_v26 = vmul.f32 %v5590_v18, %v132_v21 }
  0x87   :  { %517 = vperm.xlu0 %5298, %v94_v16   ;;  %v452_v45 = vmul.f32 %v5562_v8, %v137_v20  ;;  %v451_v49 = vmul.f32 %v5562_v8, %v132_v21 }
  0x88   :  { %v5601_v30 = vadd.f32 %v688_v24, %v602_v22  ;;  %v5608_v35 = vadd.f32 %v687_v26, %v601_v28  ;;  %v604_v36 = vadd.f32 %v536_v23, %v450_v29  ;;  %v603_v40 = vadd.f32 %v535_v25, %v449_v32 }
  0x89   :  { %v147_v33 = vpop.permute.xlu1 %146  ;;  %v142_v34 = vpop.permute.xlu0 %141 }
  0x8a   :  { %v7314_v37 = vmax.f32 %v5601_v30, 0.0  ;;  %v538_v38 = vmul.f32 %v5567_v9, %v147_v33  ;;  %v690_v39 = vmul.f32 %v5590_v18, %v147_v33  ;;  %106 = vperm.xlu1 %5299, %v27_v27   ;;  %v537_v41 = vmul.f32 %v5567_v9, %v142_v34 }
  0x8b   :  { %v689_v42 = vmul.f32 %v5590_v18, %v142_v34  ;;  %101 = vperm.xlu0 %5298, %v26_v31   ;;  %v7315_v43 = vmax.f32 %v5608_v35, 0.0  ;;  %v454_v62 = vmul.f32 %v5562_v8, %v147_v33  ;;  %v453_v0 = vmul.f32 %v5562_v8, %v142_v34 }
  0x8c   :  { %v758_v46 = vadd.f32 %v690_v39, %v604_v36  ;;  %v606_v54 = vadd.f32 %v538_v38, %v452_v45  ;;  %v605_v58 = vadd.f32 %v537_v41, %v451_v49 }
  0x8d   :  { %v757_v50 = vadd.f32 %v689_v42, %v603_v40  ;;  %4727 = vmatprep.mubr.msk.f32.mxu0 %vm894_vm0, %v7315_v43  ;;  %v157_v51 = vpop.permute.xlu1 %156  ;;  %v152_v52 = vpop.permute.xlu0 %151 }
  0x8e   :  { %v5633_v55 = vmax.f32 %v758_v46, 0.0  ;;  %v540_v56 = vmul.f32 %v5567_v9, %v157_v51  ;;  %v692_v57 = vmul.f32 %v5590_v18, %v157_v51  ;;  %4728 = vmatmul.mubr.msk.f32.vlgmr.msra.gmra.mxu0 %vm894_vm0, %v7314_v37  ;;  %676 = vperm.xlu1 %5299, %v97_v44   ;;  %v539_v60 = vmul.f32 %v5567_v9, %v152_v52 }
  0x8f   :  { %v5640_v59 = vmax.f32 %v757_v50, 0.0  ;;  %v691_v61 = vmul.f32 %v5590_v18, %v152_v52  ;;  %671 = vperm.xlu0 %5298, %v96_v47   ;;  %4924 = vmatpush3.msra.mxu0 %v5402_v19  ;;  %v456_v17 = vmul.f32 %v5562_v8, %v157_v51  ;;  %v455_v21 = vmul.f32 %v5562_v8, %v152_v52 }
  0x90   :  { %v760_v63 = vadd.f32 %v692_v57, %v606_v54  ;;  %4925 = vmatprep.subr.mxu0 %v4115_v53  ;;  %v608_v6 = vadd.f32 %v540_v56, %v454_v62  ;;  %v607_v13 = vadd.f32 %v539_v60, %v453_v0 }
  0x91   :  { %v759_v1 = vadd.f32 %v691_v61, %v605_v58  ;;  %4730 = vmatprep.mubr.msk.f32.mxu0 %vm894_vm0, %v5640_v59  ;;  %v167_v2 = vpop.permute.xlu1 %166  ;;  %v162_v3 = vpop.permute.xlu0 %161  ;;  %4926 = vmatpush3.msra.mxu0 %v4115_v53 }
  0x92   :  { %v5649_v7 = vmax.f32 %v760_v63, 0.0  ;;  %v542_v12 = vmul.f32 %v5567_v9, %v167_v2  ;;  %v694_v19 = vmul.f32 %v5590_v18, %v167_v2  ;;  %4731 = vmatmul.mubr.msk.f32.gmra.mxu0 %vm894_vm0, %v5633_v55  ;;  %v541_v15 = vmul.f32 %v5567_v9, %v162_v3 }
  0x93   :  { %v5655_v14 = vmax.f32 %v759_v1, 0.0  ;;  %v693_v16 = vmul.f32 %v5590_v18, %v162_v3  ;;  %v458_v34 = vmul.f32 %v5562_v8, %v167_v2  ;;  %v457_v38 = vmul.f32 %v5562_v8, %v162_v3 }
  0x94   :  { %v762_v20 = vadd.f32 %v694_v19, %v608_v6  ;;  %v610_v25 = vadd.f32 %v542_v12, %v456_v17  ;;  %v609_v29 = vadd.f32 %v541_v15, %v455_v21 }
  0x95   :  { %v761_v22 = vadd.f32 %v693_v16, %v607_v13  ;;  %4733 = vmatprep.mubr.msk.f32.mxu0 %vm894_vm0, %v5655_v14  ;;  %v177_v23 = vpop.permute.xlu1 %176  ;;  %v172_v24 = vpop.permute.xlu0 %171 }
  0x96   :  { %v5663_v26 = vmax.f32 %v762_v20, 0.0  ;;  %v544_v27 = vmul.f32 %v5567_v9, %v177_v23  ;;  %v696_v28 = vmul.f32 %v5590_v18, %v177_v23  ;;  %4734 = vmatmul.mubr.msk.f32.gmra.mxu0 %vm894_vm0, %v5649_v7  ;;  %v543_v32 = vmul.f32 %v5567_v9, %v172_v24 }
  0x97   :  { %v5669_v31 = vmax.f32 %v761_v22, 0.0  ;;  %v695_v33 = vmul.f32 %v5590_v18, %v172_v24  ;;  %v460_v51 = vmul.f32 %v5562_v8, %v177_v23  ;;  %v459_v53 = vmul.f32 %v5562_v8, %v172_v24 }
  0x98   :  { %v764_v36 = vadd.f32 %v696_v28, %v610_v25  ;;  %v612_v42 = vadd.f32 %v544_v27, %v458_v34  ;;  %v611_v47 = vadd.f32 %v543_v32, %v457_v38 }
  0x99   :  { %v763_v39 = vadd.f32 %v695_v33, %v609_v29  ;;  %4736 = vmatprep.mubr.msk.f32.mxu0 %vm894_vm0, %v5669_v31  ;;  %v187_v40 = vpop.permute.xlu1 %186  ;;  %v182_v41 = vpop.permute.xlu0 %181 }
  0x9a   :  { %v5677_v44 = vmax.f32 %v764_v36, 0.0  ;;  %v546_v45 = vmul.f32 %v5567_v9, %v187_v40  ;;  %v698_v46 = vmul.f32 %v5590_v18, %v187_v40  ;;  %4737 = vmatmul.mubr.msk.f32.gmra.mxu0 %vm894_vm0, %v5663_v26  ;;  %v545_v49 = vmul.f32 %v5567_v9, %v182_v41 }
  0x9b   :  { %v5683_v48 = vmax.f32 %v763_v39, 0.0  ;;  %v697_v50 = vmul.f32 %v5590_v18, %v182_v41  ;;  %v462_v3 = vmul.f32 %v5562_v8, %v187_v40  ;;  %v461_v12 = vmul.f32 %v5562_v8, %v182_v41 }
  0x9c   :  { %v766_v52 = vadd.f32 %v698_v46, %v612_v42  ;;  %v614_v58 = vadd.f32 %v546_v45, %v460_v51  ;;  %v613_v63 = vadd.f32 %v545_v49, %v459_v53 }
  0x9d   :  { %v765_v54 = vadd.f32 %v697_v50, %v611_v47  ;;  %4739 = vmatprep.mubr.msk.f32.mxu0 %vm894_vm0, %v5683_v48  ;;  %v197_v56 = vpop.permute.xlu1 %196  ;;  %v192_v57 = vpop.permute.xlu0 %191 }
  0x9e   :  { %v5691_v60 = vmax.f32 %v766_v52, 0.0  ;;  %v548_v61 = vmul.f32 %v5567_v9, %v197_v56  ;;  %v700_v62 = vmul.f32 %v5590_v18, %v197_v56  ;;  %4740 = vmatmul.mubr.msk.f32.gmra.mxu0 %vm894_vm0, %v5677_v44  ;;  %v547_v1 = vmul.f32 %v5567_v9, %v192_v57 }
  0x9f   :  { %v5697_v0 = vmax.f32 %v765_v54, 0.0  ;;  %v699_v2 = vmul.f32 %v5590_v18, %v192_v57  ;;  %v464_v27 = vmul.f32 %v5562_v8, %v197_v56  ;;  %v463_v29 = vmul.f32 %v5562_v8, %v192_v57 }
  0xa0   :  { %v768_v6 = vadd.f32 %v700_v62, %v614_v58  ;;  %v616_v16 = vadd.f32 %v548_v61, %v462_v3  ;;  %v615_v22 = vadd.f32 %v547_v1, %v461_v12 }
  0xa1   :  { %v767_v19 = vadd.f32 %v699_v2, %v613_v63  ;;  %4742 = vmatprep.mubr.msk.f32.mxu0 %vm894_vm0, %v5697_v0  ;;  %v207_v13 = vpop.permute.xlu1 %206  ;;  %v202_v15 = vpop.permute.xlu0 %201 }
  0xa2   :  { %v5705_v17 = vmax.f32 %v768_v6, 0.0  ;;  %v550_v20 = vmul.f32 %v5567_v9, %v207_v13  ;;  %v702_v21 = vmul.f32 %v5590_v18, %v207_v13  ;;  %4743 = vmatmul.mubr.msk.f32.gmra.mxu0 %vm894_vm0, %v5691_v60  ;;  %v549_v24 = vmul.f32 %v5567_v9, %v202_v15 }
  0xa3   :  { %v5711_v23 = vmax.f32 %v767_v19, 0.0  ;;  %v701_v25 = vmul.f32 %v5590_v18, %v202_v15  ;;  %v466_v47 = vmul.f32 %v5562_v8, %v207_v13  ;;  %v465_v50 = vmul.f32 %v5562_v8, %v202_v15 }
  0xa4   :  { %v770_v28 = vadd.f32 %v702_v21, %v616_v16  ;;  %v618_v36 = vadd.f32 %v550_v20, %v464_v27  ;;  %v617_v41 = vadd.f32 %v549_v24, %v463_v29 }
  0xa5   :  { %v769_v32 = vadd.f32 %v701_v25, %v615_v22  ;;  %4745 = vmatprep.mubr.msk.f32.mxu0 %vm894_vm0, %v5711_v23  ;;  %v217_v33 = vpop.permute.xlu1 %216  ;;  %v212_v34 = vpop.permute.xlu0 %211 }
  0xa6   :  { %v5719_v38 = vmax.f32 %v770_v28, 0.0  ;;  %v552_v39 = vmul.f32 %v5567_v9, %v217_v33  ;;  %v704_v40 = vmul.f32 %v5590_v18, %v217_v33  ;;  %4746 = vmatmul.mubr.msk.f32.gmra.mxu0 %vm894_vm0, %v5705_v17  ;;  %v551_v45 = vmul.f32 %v5567_v9, %v212_v34 }
  0xa7   :  { %v5725_v42 = vmax.f32 %v769_v32, 0.0  ;;  %v703_v46 = vmul.f32 %v5590_v18, %v212_v34  ;;  %v468_v2 = vmul.f32 %v5562_v8, %v217_v33  ;;  %v467_v6 = vmul.f32 %v5562_v8, %v212_v34 }
  0xa8   :  { %v772_v49 = vadd.f32 %v704_v40, %v618_v36  ;;  %v620_v54 = vadd.f32 %v552_v39, %v466_v47  ;;  %v619_v61 = vadd.f32 %v551_v45, %v465_v50 }
  0xa9   :  { %v771_v51 = vadd.f32 %v703_v46, %v617_v41  ;;  %4748 = vmatprep.mubr.msk.f32.mxu0 %vm894_vm0, %v5725_v42  ;;  %v227_v52 = vpop.permute.xlu1 %226  ;;  %v222_v53 = vpop.permute.xlu0 %221 }
  0xaa   :  { %v5733_v56 = vmax.f32 %v772_v49, 0.0  ;;  %v554_v57 = vmul.f32 %v5567_v9, %v227_v52  ;;  %v706_v58 = vmul.f32 %v5590_v18, %v227_v52  ;;  %4749 = vmatmul.mubr.msk.f32.gmra.mxu0 %vm894_vm0, %v5719_v38  ;;  %v553_v63 = vmul.f32 %v5567_v9, %v222_v53 }
  0xab   :  { %v5739_v62 = vmax.f32 %v771_v51, 0.0  ;;  %v705_v1 = vmul.f32 %v5590_v18, %v222_v53  ;;  %v470_v28 = vmul.f32 %v5562_v8, %v227_v52  ;;  %v469_v32 = vmul.f32 %v5562_v8, %v222_v53 }
  0xac   :  { %v774_v3 = vadd.f32 %v706_v58, %v620_v54  ;;  %v622_v15 = vadd.f32 %v554_v57, %v468_v2  ;;  %v621_v22 = vadd.f32 %v553_v63, %v467_v6 }
  0xad   :  { %v773_v12 = vadd.f32 %v705_v1, %v619_v61  ;;  %4751 = vmatprep.mubr.msk.f32.mxu0 %vm894_vm0, %v5739_v62  ;;  %v237_v19 = vpop.permute.xlu1 %236  ;;  %v232_v13 = vpop.permute.xlu0 %231 }
  0xae   :  { %v5747_v16 = vmax.f32 %v774_v3, 0.0  ;;  %v556_v20 = vmul.f32 %v5567_v9, %v237_v19  ;;  %v708_v21 = vmul.f32 %v5590_v18, %v237_v19  ;;  %4752 = vmatmul.mubr.msk.f32.gmra.mxu0 %vm894_vm0, %v5733_v56  ;;  %v555_v25 = vmul.f32 %v5567_v9, %v232_v13 }
  0xaf   :  { %v5753_v24 = vmax.f32 %v773_v12, 0.0  ;;  %v707_v27 = vmul.f32 %v5590_v18, %v232_v13  ;;  %v472_v51 = vmul.f32 %v5562_v8, %v237_v19  ;;  %v471_v53 = vmul.f32 %v5562_v8, %v232_v13 }
  0xb0   :  { %v776_v29 = vadd.f32 %v708_v21, %v622_v15  ;;  %v624_v39 = vadd.f32 %v556_v20, %v470_v28  ;;  %v623_v46 = vadd.f32 %v555_v25, %v469_v32 }
  0xb1   :  { %v775_v33 = vadd.f32 %v707_v27, %v621_v22  ;;  %4754 = vmatprep.mubr.msk.f32.mxu0 %vm894_vm0, %v5753_v24  ;;  %v247_v34 = vpop.permute.xlu1 %246  ;;  %v242_v36 = vpop.permute.xlu0 %241 }
  0xb2   :  { %v5761_v40 = vmax.f32 %v776_v29, 0.0  ;;  %v558_v41 = vmul.f32 %v5567_v9, %v247_v34  ;;  %v710_v45 = vmul.f32 %v5590_v18, %v247_v34  ;;  %4755 = vmatmul.mubr.msk.f32.gmra.mxu0 %vm894_vm0, %v5747_v16  ;;  %v557_v49 = vmul.f32 %v5567_v9, %v242_v36 }
  0xb3   :  { %v5767_v47 = vmax.f32 %v775_v33, 0.0  ;;  %v709_v50 = vmul.f32 %v5590_v18, %v242_v36  ;;  %v474_v13 = vmul.f32 %v5562_v8, %v247_v34  ;;  %v473_v20 = vmul.f32 %v5562_v8, %v242_v36 }
  0xb4   :  { %v778_v52 = vadd.f32 %v710_v45, %v624_v39  ;;  %v626_v61 = vadd.f32 %v558_v41, %v472_v51  ;;  %v625_v3 = vadd.f32 %v557_v49, %v471_v53 }
  0xb5   :  { %v777_v54 = vadd.f32 %v709_v50, %v623_v46  ;;  %4757 = vmatprep.mubr.msk.f32.mxu0 %vm894_vm0, %v5767_v47  ;;  %v257_v57 = vpop.permute.xlu1 %256  ;;  %v252_v58 = vpop.permute.xlu0 %251 }
  0xb6   :  { %v5775_v63 = vmax.f32 %v778_v52, 0.0  ;;  %v560_v1 = vmul.f32 %v5567_v9, %v257_v57  ;;  %v712_v2 = vmul.f32 %v5590_v18, %v257_v57  ;;  %4758 = vmatmul.mubr.msk.f32.gmra.mxu0 %vm894_vm0, %v5761_v40  ;;  %v559_v12 = vmul.f32 %v5567_v9, %v252_v58 }
  0xb7   :  { %v5781_v6 = vmax.f32 %v777_v54, 0.0  ;;  %v711_v19 = vmul.f32 %v5590_v18, %v252_v58  ;;  %v476_v41 = vmul.f32 %v5562_v8, %v257_v57  ;;  %v475_v46 = vmul.f32 %v5562_v8, %v252_v58 }
  0xb8   :  { %v780_v15 = vadd.f32 %v712_v2, %v626_v61  ;;  %v628_v27 = vadd.f32 %v560_v1, %v474_v13  ;;  %v627_v33 = vadd.f32 %v559_v12, %v473_v20 }
  0xb9   :  { %v779_v21 = vadd.f32 %v711_v19, %v625_v3  ;;  %4760 = vmatprep.mubr.msk.f32.mxu0 %vm894_vm0, %v5781_v6  ;;  %v267_v22 = vpop.permute.xlu1 %266  ;;  %v262_v25 = vpop.permute.xlu0 %261 }
  0xba   :  { %v5789_v28 = vmax.f32 %v780_v15, 0.0  ;;  %v562_v29 = vmul.f32 %v5567_v9, %v267_v22  ;;  %v714_v32 = vmul.f32 %v5590_v18, %v267_v22  ;;  %4761 = vmatmul.mubr.msk.f32.gmra.mxu0 %vm894_vm0, %v5775_v63  ;;  %v561_v36 = vmul.f32 %v5567_v9, %v262_v25 }
  0xbb   :  { %v5795_v34 = vmax.f32 %v779_v21, 0.0  ;;  %v713_v39 = vmul.f32 %v5590_v18, %v262_v25  ;;  %v478_v3 = vmul.f32 %v5562_v8, %v267_v22  ;;  %v477_v19 = vmul.f32 %v5562_v8, %v262_v25 }
  0xbc   :  { %v782_v45 = vadd.f32 %v714_v32, %v628_v27  ;;  %v630_v52 = vadd.f32 %v562_v29, %v476_v41  ;;  %v629_v57 = vadd.f32 %v561_v36, %v475_v46 }
  0xbd   :  { %v781_v49 = vadd.f32 %v713_v39, %v627_v33  ;;  %4763 = vmatprep.mubr.msk.f32.mxu0 %vm894_vm0, %v5795_v34  ;;  %v277_v50 = vpop.permute.xlu1 %276  ;;  %v272_v51 = vpop.permute.xlu0 %271 }
  0xbe   :  { %v5803_v53 = vmax.f32 %v782_v45, 0.0  ;;  %v564_v54 = vmul.f32 %v5567_v9, %v277_v50  ;;  %v716_v61 = vmul.f32 %v5590_v18, %v277_v50  ;;  %4764 = vmatmul.mubr.msk.f32.gmra.mxu0 %vm894_vm0, %v5789_v28  ;;  %v563_v58 = vmul.f32 %v5567_v9, %v272_v51 }
  0xbf   :  { %v5809_v1 = vmax.f32 %v781_v49, 0.0  ;;  %v715_v2 = vmul.f32 %v5590_v18, %v272_v51  ;;  %v480_v39 = vmul.f32 %v5562_v8, %v277_v50  ;;  %v479_v45 = vmul.f32 %v5562_v8, %v272_v51 }
  0xc0   :  { %v784_v12 = vadd.f32 %v716_v61, %v630_v52  ;;  %v632_v21 = vadd.f32 %v564_v54, %v478_v3  ;;  %v631_v22 = vadd.f32 %v563_v58, %v477_v19 }
  0xc1   :  { %v783_v13 = vadd.f32 %v715_v2, %v629_v57  ;;  %4766 = vmatprep.mubr.msk.f32.mxu0 %vm894_vm0, %v5809_v1  ;;  %v287_v15 = vpop.permute.xlu1 %286  ;;  %v282_v20 = vpop.permute.xlu0 %281 }
  0xc2   :  { %v5817_v27 = vmax.f32 %v784_v12, 0.0  ;;  %v566_v29 = vmul.f32 %v5567_v9, %v287_v15  ;;  %v718_v32 = vmul.f32 %v5590_v18, %v287_v15  ;;  %4767 = vmatmul.mubr.msk.f32.gmra.mxu0 %vm894_vm0, %v5803_v53  ;;  %v565_v25 = vmul.f32 %v5567_v9, %v282_v20 }
  0xc3   :  { %v5823_v33 = vmax.f32 %v783_v13, 0.0  ;;  %v717_v36 = vmul.f32 %v5590_v18, %v282_v20  ;;  %v482_v12 = vmul.f32 %v5562_v8, %v287_v15  ;;  %v481_v13 = vmul.f32 %v5562_v8, %v282_v20 }
  0xc4   :  { %v786_v41 = vadd.f32 %v718_v32, %v632_v21  ;;  %v634_v54 = vadd.f32 %v566_v29, %v480_v39  ;;  %v633_v50 = vadd.f32 %v565_v25, %v479_v45 }
  0xc5   :  { %v785_v46 = vadd.f32 %v717_v36, %v631_v22  ;;  %4769 = vmatprep.mubr.msk.f32.mxu0 %vm894_vm0, %v5823_v33  ;;  %v297_v49 = vpop.permute.xlu1 %296  ;;  %v292_v52 = vpop.permute.xlu0 %291 }
  0xc6   :  { %v5831_v61 = vmax.f32 %v786_v41, 0.0  ;;  %v568_v57 = vmul.f32 %v5567_v9, %v297_v49  ;;  %v720_v58 = vmul.f32 %v5590_v18, %v297_v49  ;;  %4770 = vmatmul.mubr.msk.f32.gmra.mxu0 %vm894_vm0, %v5817_v27  ;;  %v567_v51 = vmul.f32 %v5567_v9, %v292_v52 }
  0xc7   :  { %v5837_v2 = vmax.f32 %v785_v46, 0.0  ;;  %v719_v3 = vmul.f32 %v5590_v18, %v292_v52  ;;  %v484_v46 = vmul.f32 %v5562_v8, %v297_v49 }
  0xc8   :  { %v788_v19 = vadd.f32 %v720_v58, %v634_v54  ;;  %v636_v22 = vadd.f32 %v568_v57, %v482_v12  ;;  %v635_v15 = vadd.f32 %v567_v51, %v481_v13  ;;  %v483_v57 = vmul.f32 %v5562_v8, %v292_v52 }
  0xc9   :  { %v787_v21 = vadd.f32 %v719_v3, %v633_v50  ;;  %4772 = vmatprep.mubr.msk.f32.mxu0 %vm894_vm0, %v5837_v2  ;;  %v307_v29 = vpop.permute.xlu1 %306  ;;  %v302_v32 = vpop.permute.xlu0 %301 }
  0xca   :  { %v5845_v36 = vmax.f32 %v788_v19, 0.0  ;;  %v570_v25 = vmul.f32 %v5567_v9, %v307_v29  ;;  %v722_v39 = vmul.f32 %v5590_v18, %v307_v29  ;;  %4773 = vmatmul.mubr.msk.f32.gmra.mxu0 %vm894_vm0, %v5831_v61  ;;  %v569_v20 = vmul.f32 %v5567_v9, %v302_v32 }
  0xcb   :  { %v5851_v41 = vmax.f32 %v787_v21, 0.0  ;;  %v721_v45 = vmul.f32 %v5590_v18, %v302_v32 }
  0xcc   :  { %7372 = vst [vmem:[#allocation2_spill] sm:$0xff] %v5845_v36  ;;  %v790_v54 = vadd.f32 %v722_v39, %v636_v22  ;;  %v638_v12 = vadd.f32 %v570_v25, %v484_v46  ;;  %v637_v49 = vadd.f32 %v569_v20, %v483_v57  ;;  %v486_v39 = vmul.f32 %v5562_v8, %v307_v29 }
  0xcd   :  { %7373 = vst [vmem:[#allocation3_spill] sm:$0xff] %v5851_v41  ;;  %v789_v58 = vadd.f32 %v721_v45, %v635_v15  ;;  %4775 = vmatprep.mubr.msk.f32.mxu0 %vm894_vm0, %v5851_v41  ;;  %v317_v50 = vpop.permute.xlu1 %316  ;;  %v312_v3 = vpop.permute.xlu0 %311  ;;  %v485_v25 = vmul.f32 %v5562_v8, %v302_v32 }
  0xce   :  { %v5859_v19 = vmax.f32 %v790_v54, 0.0  ;;  %v572_v51 = vmul.f32 %v5567_v9, %v317_v50  ;;  %v724_v13 = vmul.f32 %v5590_v18, %v317_v50  ;;  %4776 = vmatmul.mubr.msk.f32.gmra.mxu0 %vm894_vm0, %v5845_v36  ;;  %v571_v52 = vmul.f32 %v5567_v9, %v312_v3 }
  0xcf   :  { %v5865_v21 = vmax.f32 %v789_v58, 0.0  ;;  %v723_v22 = vmul.f32 %v5590_v18, %v312_v3 }
  0xd0   :  { %7374 = vst [vmem:[#allocation4_spill] sm:$0xff] %v5859_v19  ;;  %v792_v15 = vadd.f32 %v724_v13, %v638_v12  ;;  %v640_v37 = vadd.f32 %v572_v51, %v486_v39  ;;  %v639_v29 = vadd.f32 %v571_v52, %v485_v25  ;;  %v488_v13 = vmul.f32 %v5562_v8, %v317_v50 }
  0xd1   :  { %7375 = vst [vmem:[#allocation5_spill] sm:$0xff] %v5865_v21  ;;  %v791_v45 = vadd.f32 %v723_v22, %v637_v49  ;;  %4778 = vmatprep.mubr.msk.f32.mxu0 %vm894_vm0, %v5865_v21  ;;  %v327_v46 = vpop.permute.xlu1 %326  ;;  %v322_v54 = vpop.permute.xlu0 %321  ;;  %v487_v51 = vmul.f32 %v5562_v8, %v312_v3 }
  0xd2   :  { %v5873_v43 = vmax.f32 %v792_v15, 0.0  ;;  %v574_v20 = vmul.f32 %v5567_v9, %v327_v46  ;;  %v726_v57 = vmul.f32 %v5590_v18, %v327_v46  ;;  %4779 = vmatmul.mubr.msk.f32.gmra.mxu0 %vm894_vm0, %v5859_v19  ;;  %v573_v32 = vmul.f32 %v5567_v9, %v322_v54 }
  0xd3   :  { %v5879_v58 = vmax.f32 %v791_v45, 0.0  ;;  %v725_v12 = vmul.f32 %v5590_v18, %v322_v54 }
  0xd4   :  { %7376 = vst [vmem:[#allocation6_spill] sm:$0xff] %v5873_v43  ;;  %v794_v49 = vadd.f32 %v726_v57, %v640_v37  ;;  %v642_v21 = vadd.f32 %v574_v20, %v488_v13  ;;  %v641_v50 = vadd.f32 %v573_v32, %v487_v51  ;;  %v490_v57 = vmul.f32 %v5562_v8, %v327_v46 }
  0xd5   :  { %7377 = vst [vmem:[#allocation7_spill] sm:$0xff] %v5879_v58  ;;  %v793_v22 = vadd.f32 %v725_v12, %v639_v29  ;;  %4781 = vmatprep.mubr.msk.f32.mxu0 %vm894_vm0, %v5879_v58  ;;  %v337_v39 = vpop.permute.xlu1 %336  ;;  %v332_v15 = vpop.permute.xlu0 %331  ;;  %v489_v20 = vmul.f32 %v5562_v8, %v322_v54 }
  0xd6   :  { %v5887_v19 = vmax.f32 %v794_v49, 0.0  ;;  %v576_v52 = vmul.f32 %v5567_v9, %v337_v39  ;;  %v728_v25 = vmul.f32 %v5590_v18, %v337_v39  ;;  %4782 = vmatmul.mubr.msk.f32.gmra.mxu0 %vm894_vm0, %v5873_v43  ;;  %v575_v3 = vmul.f32 %v5567_v9, %v332_v15 }
  0xd7   :  { %v5893_v37 = vmax.f32 %v793_v22, 0.0  ;;  %v727_v45 = vmul.f32 %v5590_v18, %v332_v15 }
  0xd8   :  { %7378 = vst [vmem:[#allocation8_spill] sm:$0xff] %v5887_v19  ;;  %v796_v29 = vadd.f32 %v728_v25, %v642_v21  ;;  %v644_v58 = vadd.f32 %v576_v52, %v490_v57  ;;  %v643_v46 = vadd.f32 %v575_v3, %v489_v20  ;;  %v492_v25 = vmul.f32 %v5562_v8, %v337_v39 }
  0xd9   :  { %7379 = vst [vmem:[#allocation9_spill] sm:$0xff] %v5893_v37  ;;  %v795_v12 = vadd.f32 %v727_v45, %v641_v50  ;;  %4784 = vmatprep.mubr.msk.f32.mxu0 %vm894_vm0, %v5893_v37  ;;  %v347_v13 = vpop.permute.xlu1 %346  ;;  %v342_v49 = vpop.permute.xlu0 %341  ;;  %v491_v52 = vmul.f32 %v5562_v8, %v332_v15 }
  0xda   :  { %v5901_v43 = vmax.f32 %v796_v29, 0.0  ;;  %v578_v32 = vmul.f32 %v5567_v9, %v347_v13  ;;  %v730_v51 = vmul.f32 %v5590_v18, %v347_v13  ;;  %4785 = vmatmul.mubr.msk.f32.gmra.mxu0 %vm894_vm0, %v5887_v19  ;;  %v577_v54 = vmul.f32 %v5567_v9, %v342_v49 }
  0xdb   :  { %v5907_v21 = vmax.f32 %v795_v12, 0.0  ;;  %v729_v22 = vmul.f32 %v5590_v18, %v342_v49 }
  0xdc   :  { %7380 = vst [vmem:[#allocation10_spill] sm:$0xff] %v5901_v43  ;;  %v798_v50 = vadd.f32 %v730_v51, %v644_v58  ;;  %v646_v37 = vadd.f32 %v578_v32, %v492_v25  ;;  %v645_v39 = vadd.f32 %v577_v54, %v491_v52  ;;  %v494_v51 = vmul.f32 %v5562_v8, %v347_v13 }
  0xdd   :  { %7381 = vst [vmem:[#allocation11_spill] sm:$0xff] %v5907_v21  ;;  %v797_v45 = vadd.f32 %v729_v22, %v643_v46  ;;  %4787 = vmatprep.mubr.msk.f32.mxu0 %vm894_vm0, %v5907_v21  ;;  %v357_v57 = vpop.permute.xlu1 %356  ;;  %v352_v29 = vpop.permute.xlu0 %351  ;;  %v493_v32 = vmul.f32 %v5562_v8, %v342_v49 }
  0xde   :  { %v5915_v19 = vmax.f32 %v798_v50, 0.0  ;;  %v580_v3 = vmul.f32 %v5567_v9, %v357_v57  ;;  %v732_v20 = vmul.f32 %v5590_v18, %v357_v57  ;;  %4788 = vmatmul.mubr.msk.f32.gmra.mxu0 %vm894_vm0, %v5901_v43  ;;  %v579_v15 = vmul.f32 %v5567_v9, %v352_v29 }
  0xdf   :  { %v5921_v58 = vmax.f32 %v797_v45, 0.0  ;;  %v731_v12 = vmul.f32 %v5590_v18, %v352_v29 }
  0xe0   :  { %7382 = vst [vmem:[#allocation12_spill] sm:$0xff] %v5915_v19  ;;  %v800_v46 = vadd.f32 %v732_v20, %v646_v37  ;;  %v648_v21 = vadd.f32 %v580_v3, %v494_v51  ;;  %v647_v13 = vadd.f32 %v579_v15, %v493_v32  ;;  %v496_v20 = vmul.f32 %v5562_v8, %v357_v57 }
  0xe1   :  { %7383 = vst [vmem:[#allocation13_spill] sm:$0xff] %v5921_v58  ;;  %v799_v22 = vadd.f32 %v731_v12, %v645_v39  ;;  %4790 = vmatprep.mubr.msk.f32.mxu0 %vm894_vm0, %v5921_v58  ;;  %v367_v25 = vpop.permute.xlu1 %366  ;;  %v362_v50 = vpop.permute.xlu0 %361  ;;  %v495_v3 = vmul.f32 %v5562_v8, %v352_v29 }
  0xe2   :  { %v5929_v43 = vmax.f32 %v800_v46, 0.0  ;;  %v582_v54 = vmul.f32 %v5567_v9, %v367_v25  ;;  %v734_v52 = vmul.f32 %v5590_v18, %v367_v25  ;;  %4791 = vmatmul.mubr.msk.f32.gmra.mxu0 %vm894_vm0, %v5915_v19  ;;  %v581_v49 = vmul.f32 %v5567_v9, %v362_v50 }
  0xe3   :  { %v5935_v37 = vmax.f32 %v799_v22, 0.0  ;;  %v733_v45 = vmul.f32 %v5590_v18, %v362_v50 }
  0xe4   :  { %7384 = vst [vmem:[#allocation14_spill] sm:$0xff] %v5929_v43  ;;  %v802_v39 = vadd.f32 %v734_v52, %v648_v21  ;;  %v650_v58 = vadd.f32 %v582_v54, %v496_v20  ;;  %v649_v57 = vadd.f32 %v581_v49, %v495_v3  ;;  %v498_v52 = vmul.f32 %v5562_v8, %v367_v25 }
  0xe5   :  { %7385 = vst [vmem:[#allocation15_spill] sm:$0xff] %v5935_v37  ;;  %v801_v12 = vadd.f32 %v733_v45, %v647_v13  ;;  %4793 = vmatprep.mubr.msk.f32.mxu0 %vm894_vm0, %v5935_v37  ;;  %v377_v51 = vpop.permute.xlu1 %376  ;;  %v372_v46 = vpop.permute.xlu0 %371  ;;  %v497_v54 = vmul.f32 %v5562_v8, %v362_v50 }
  0xe6   :  { %v5943_v19 = vmax.f32 %v802_v39, 0.0  ;;  %v584_v15 = vmul.f32 %v5567_v9, %v377_v51  ;;  %v736_v32 = vmul.f32 %v5590_v18, %v377_v51  ;;  %4794 = vmatmul.mubr.msk.f32.gmra.mxu0 %vm894_vm0, %v5929_v43  ;;  %v583_v29 = vmul.f32 %v5567_v9, %v372_v46 }
  0xe7   :  { %v5949_v21 = vmax.f32 %v801_v12, 0.0  ;;  %v735_v22 = vmul.f32 %v5590_v18, %v372_v46 }
  0xe8   :  { %7386 = vst [vmem:[#allocation16_spill] sm:$0xff] %v5943_v19  ;;  %v804_v13 = vadd.f32 %v736_v32, %v650_v58  ;;  %v652_v37 = vadd.f32 %v584_v15, %v498_v52  ;;  %v651_v25 = vadd.f32 %v583_v29, %v497_v54  ;;  %v500_v32 = vmul.f32 %v5562_v8, %v377_v51 }
  0xe9   :  { %7387 = vst [vmem:[#allocation17_spill] sm:$0xff] %v5949_v21  ;;  %v803_v45 = vadd.f32 %v735_v22, %v649_v57  ;;  %4796 = vmatprep.mubr.msk.f32.mxu0 %vm894_vm0, %v5949_v21  ;;  %v387_v20 = vpop.permute.xlu1 %386  ;;  %v382_v39 = vpop.permute.xlu0 %381  ;;  %v499_v15 = vmul.f32 %v5562_v8, %v372_v46 }
  0xea   :  { %v5957_v43 = vmax.f32 %v804_v13, 0.0  ;;  %v586_v49 = vmul.f32 %v5567_v9, %v387_v20  ;;  %v738_v3 = vmul.f32 %v5590_v18, %v387_v20  ;;  %4797 = vmatmul.mubr.msk.f32.gmra.mxu0 %vm894_vm0, %v5943_v19  ;;  %v585_v50 = vmul.f32 %v5567_v9, %v382_v39 }
  0xeb   :  { %v5963_v58 = vmax.f32 %v803_v45, 0.0  ;;  %v737_v12 = vmul.f32 %v5590_v18, %v382_v39 }
  0xec   :  { %7388 = vst [vmem:[#allocation18_spill] sm:$0xff] %v5957_v43  ;;  %v806_v57 = vadd.f32 %v738_v3, %v652_v37  ;;  %v654_v21 = vadd.f32 %v586_v49, %v500_v32  ;;  %v653_v51 = vadd.f32 %v585_v50, %v499_v15  ;;  %v502_v3 = vmul.f32 %v5562_v8, %v387_v20 }
  0xed   :  { %7389 = vst [vmem:[#allocation19_spill] sm:$0xff] %v5963_v58  ;;  %v805_v22 = vadd.f32 %v737_v12, %v651_v25  ;;  %4799 = vmatprep.mubr.msk.f32.mxu0 %vm894_vm0, %v5963_v58  ;;  %v397_v52 = vpop.permute.xlu1 %396  ;;  %v392_v13 = vpop.permute.xlu0 %391  ;;  %v501_v49 = vmul.f32 %v5562_v8, %v382_v39 }
  0xee   :  { %v5971_v19 = vmax.f32 %v806_v57, 0.0  ;;  %v588_v29 = vmul.f32 %v5567_v9, %v397_v52  ;;  %v740_v54 = vmul.f32 %v5590_v18, %v397_v52  ;;  %4800 = vmatmul.mubr.msk.f32.gmra.mxu0 %vm894_vm0, %v5957_v43  ;;  %v587_v46 = vmul.f32 %v5567_v9, %v392_v13 }
  0xef   :  { %v5977_v37 = vmax.f32 %v805_v22, 0.0  ;;  %v739_v45 = vmul.f32 %v5590_v18, %v392_v13 }
  0xf0   :  { %7390 = vst [vmem:[#allocation20_spill] sm:$0xff] %v5971_v19  ;;  %v808_v25 = vadd.f32 %v740_v54, %v654_v21  ;;  %v656_v58 = vadd.f32 %v588_v29, %v502_v3  ;;  %v655_v20 = vadd.f32 %v587_v46, %v501_v49  ;;  %v504_v54 = vmul.f32 %v5562_v8, %v397_v52 }
  0xf1   :  { %7391 = vst [vmem:[#allocation21_spill] sm:$0xff] %v5977_v37  ;;  %v807_v12 = vadd.f32 %v739_v45, %v653_v51  ;;  %4802 = vmatprep.mubr.msk.f32.mxu0 %vm894_vm0, %v5977_v37  ;;  %v407_v32 = vpop.permute.xlu1 %406  ;;  %v402_v57 = vpop.permute.xlu0 %401  ;;  %v503_v29 = vmul.f32 %v5562_v8, %v392_v13 }
  0xf2   :  { %v5985_v43 = vmax.f32 %v808_v25, 0.0  ;;  %v590_v50 = vmul.f32 %v5567_v9, %v407_v32  ;;  %v742_v15 = vmul.f32 %v5590_v18, %v407_v32  ;;  %4803 = vmatmul.mubr.msk.f32.gmra.mxu0 %vm894_vm0, %v5971_v19  ;;  %v589_v39 = vmul.f32 %v5567_v9, %v402_v57 }
  0xf3   :  { %v5991_v21 = vmax.f32 %v807_v12, 0.0  ;;  %v741_v22 = vmul.f32 %v5590_v18, %v402_v57 }
  0xf4   :  { %7392 = vst [vmem:[#allocation22_spill] sm:$0xff] %v5985_v43  ;;  %v810_v51 = vadd.f32 %v742_v15, %v656_v58  ;;  %v658_v37 = vadd.f32 %v590_v50, %v504_v54  ;;  %v657_v49 = vadd.f32 %v589_v39, %v503_v29  ;;  %v505_v15 = vmul.f32 %v5562_v8, %v402_v57 }
  0xf5   :  { %7393 = vst [vmem:[#allocation23_spill] sm:$0xff] %v5991_v21  ;;  %v809_v45 = vadd.f32 %v741_v22, %v655_v20  ;;  %4805 = vmatprep.mubr.msk.f32.mxu0 %vm894_vm0, %v5991_v21  ;;  %v417_v3 = vpop.permute.xlu1 %416  ;;  %v412_v25 = vpop.permute.xlu0 %411 }
  0xf6   :  { %v5999_v19 = vmax.f32 %v810_v51, 0.0  ;;  %v744_v46 = vmul.f32 %v5590_v18, %v417_v3  ;;  %4806 = vmatmul.mubr.msk.f32.gmra.mxu0 %vm894_vm0, %v5985_v43  ;;  %v591_v58 = vmul.f32 %v5567_v9, %v412_v25  ;;  %v743_v52 = vmul.f32 %v5590_v18, %v412_v25 }
  0xf7   :  { %v6004_v12 = vmax.f32 %v809_v45, 0.0  ;;  %v507_v54 = vmul.f32 %v5562_v8, %v412_v25  ;;  %v592_v45 = vmul.f32 %v5567_v9, %v417_v3 }
  0xf8   :  { %7394 = vst [vmem:[#allocation24_spill] sm:$0xff] %v5999_v19  ;;  %v812_v13 = vadd.f32 %v744_v46, %v658_v37  ;;  %v811_v20 = vadd.f32 %v743_v52, %v657_v49  ;;  %v659_v51 = vadd.f32 %v591_v58, %v505_v15  ;;  %v506_v46 = vmul.f32 %v5562_v8, %v407_v32 }
  0xf9   :  { %7395 = vst [vmem:[#allocation25_spill] sm:$0xff] %v6004_v12  ;;  %4808 = vmatprep.mubr.msk.f32.mxu0 %vm894_vm0, %v6004_v12  ;;  %v432_v50 = vpop.permute.xlu1 %431  ;;  %v422_v39 = vpop.permute.xlu0 %421  ;;  %v5300_v12 = vld [vmem:[%s7308_s1] ss:$0 sm:$0xff] }
  0xfa   :  { %v6011_v22 = vmax.f32 %v812_v13, 0.0  ;;  %4809 = vmatmul.mubr.msk.f32.gmra.mxu0 %vm894_vm0, %v5999_v19  ;;  %v6016_v29 = vmax.f32 %v811_v20, 0.0  ;;  %v593_v37 = vmul.f32 %v5567_v9, %v422_v39  ;;  %v745_v57 = vmul.f32 %v5590_v18, %v422_v39 }
  0xfb   :  { %v508_v13 = vmul.f32 %v5562_v8, %v417_v3  ;;  %v595_v58 = vmul.f32 %v5567_v9, %v432_v50  ;;  %v747_v15 = vmul.f32 %v5590_v18, %v432_v50  ;;  %v509_v32 = vmul.f32 %v5562_v8, %v422_v39 }
  0xfc   :  { %7396 = vst [vmem:[#allocation26_spill] sm:$0xff] %v6011_v22  ;;  %7397 = vst [vmem:[#allocation27_spill] sm:$0xff] %v6016_v29  ;;  %v661_v49 = vadd.f32 %v593_v37, %v507_v54  ;;  %v813_v52 = vadd.f32 %v745_v57, %v659_v51  ;;  %4811 = vmatprep.mubr.msk.f32.mxu0 %vm894_vm0, %v6016_v29  ;;  %v660_v57 = vadd.f32 %v592_v45, %v506_v46 }
  0xfd   :  { %v437_v25 = vpop.permute.xlu1 %436  ;;  %v427_v19 = vpop.permute.xlu0 %426 }
  0xfe   :  { %v596_v20 = vmul.f32 %v5567_v9, %v437_v25  ;;  %4812 = vmatmul.mubr.msk.f32.gmra.mxu0 %vm894_vm0, %v6011_v22  ;;  %v6031_v54 = vmax.f32 %v813_v52, 0.0  ;;  %v510_v51 = vmul.f32 %v5562_v8, %v427_v19  ;;  %v594_v37 = vmul.f32 %v5567_v9, %v427_v19  ;;  %v5301_v9 = vld [vmem:[%s7308_s1 + $0x1] ss:$0 sm:$0xff] }
  0xff   :  { %v746_v3 = vmul.f32 %v5590_v18, %v427_v19  ;;  %v815_v29 = vadd.f32 %v747_v15, %v661_v49  ;;  %v512_v43 = vmul.f32 %v5300_v12, %v437_v25  ;;  %v748_v22 = vmul.f32 %v5590_v18, %v437_v25  ;;  %v6049_v25 = vld [vmem:[%s7308_s1 + $0x2] ss:$0 sm:$0xff] }
 0x100   :  { %7398 = vst [vmem:[#allocation28_spill] sm:$0xff] %v6031_v54  ;;  %v662_v21 = vadd.f32 %v594_v37, %v508_v13  ;;  %4814 = vmatprep.mubr.msk.f32.mxu0 %vm894_vm0, %v6031_v54  ;;  %v664_v52 = vadd.f32 %v596_v20, %v510_v51  ;;  %v511_v49 = vmul.f32 %v5300_v12, %v432_v50 }
 0x101   :  { %v523_v39 = vpop.permute.xlu1 %522  ;;  %v814_v8 = vadd.f32 %v746_v3, %v660_v57  ;;  %v663_v37 = vadd.f32 %v595_v58, %v509_v32  ;;  %v532_v36 = vmul.f32 %v5301_v9, %v5549_v4  ;;  %v686_v32 = vmul.f32 %v6049_v25, %v5569_v10 }
 0x102   :  { %v598_v19 = vmul.f32 %v5301_v9, %v523_v39  ;;  %v750_v45 = vmul.f32 %v5590_v18, %v523_v39  ;;  %v518_v46 = vpop.permute.xlu0 %517  ;;  %v816_v20 = vadd.f32 %v748_v22, %v662_v21  ;;  %v6060_v18 = vmax.f32 %v815_v29, 0.0 }
 0x103   :  { %v597_v15 = vmul.f32 %v5301_v9, %v518_v46  ;;  %v749_v13 = vmul.f32 %v6049_v25, %v518_v46  ;;  %v6052_v51 = vmax.f32 %v814_v8, 0.0  ;;  %v685_v8 = vmul.f32 %v6049_v25, %v5571_v11  ;;  %v5303_v11 = vld [vmem:[%s7307_s2 + $0x8] sm:$0xff] }
 0x104   :  { %v6054_v57 = vadd.f32 %v598_v19, %v512_v43  ;;  %v6056_v3 = vadd.f32 %v750_v45, %v664_v52  ;;  %v531_v43 = vmul.f32 %v5301_v9, %v5551_v5  ;;  %v6074_v4 = vmax.f32 %v816_v20, 0.0  ;;  %v889_v5 = vld [vmem:[%s7307_s2] sm:$0xff] }
 0x105   :  { %v6058_v54 = vadd.f32 %v597_v15, %v511_v49  ;;  %v107_v50 = vpop.permute.xlu1 %106  ;;  %v6062_v39 = vadd.f32 %v749_v13, %v663_v37  ;;  %4815 = vmatmul.mubr.msk.f32.gmra.mxu0 %vm894_vm0, %v6052_v51  ;;  %v7399_v45 = vmax.f32 %v5608_v35, 0.0  ;;  %v7400_v46 = vmax.f32 %v5601_v30, 0.0  ;;  %v4183_v30 = vld [vmem:[%s7309_s4 + $0x18] sm:$0xff]  ;;  %v7401_v35 = vld [vmem:[#allocation3_spill] sm:$0xff]  ;;  %v7418_v15 = vld [vmem:[#allocation18_spill] sm:$0xff] }
 0x106   :  { %v886_v41 = vmax.f32 %v6056_v3, 0.0  ;;  %v446_v21 = vmul.f32 %v5300_v12, %v107_v50  ;;  %v102_v22 = vpop.permute.xlu0 %101  ;;  %4817 = vmatprep.mubr.msk.f32.mxu0 %vm894_vm0, %v6060_v18  ;;  %v7419_v37 = vld [vmem:[#allocation21_spill] sm:$0xff]  ;;  %v7420_v50 = vld [vmem:[#allocation20_spill] sm:$0xff] }
 0x107   :  { %v445_v58 = vmul.f32 %v5300_v12, %v102_v22  ;;  %v885_v29 = vmax.f32 %v6062_v39, 0.0  ;;  %v7421_v22 = vld [vmem:[#allocation23_spill] sm:$0xff] }
 0x108   :  { %v600_v52 = vadd.f32 %v532_v36, %v446_v21 }
 0x109   :  { %v599_v19 = vadd.f32 %v531_v43, %v445_v58  ;;  %4820 = vmatprep.mubr.msk.f32.mxu1 %vm894_vm0, %v885_v29  ;;  %4818 = vmatmul.mubr.msk.f32.gmra.mxu0 %vm894_vm0, %v6074_v4  ;;  %v7422_v58 = vld [vmem:[#allocation22_spill] sm:$0xff] }
 0x10a   :  { %v754_v12 = vadd.f32 %v686_v32, %v600_v52  ;;  %4821 = vmatmul.mubr.msk.f32.vlgmr.msra.gmra.mxu1 %vm894_vm0, %v886_v41  ;;  %4927 = vmatprep.mubr.msk.f32.mxu0 %vm894_vm0, %v5640_v59  ;;  %v7423_v52 = vld [vmem:[#allocation25_spill] sm:$0xff] }
 0x10b   :  { %v753_v10 = vadd.f32 %v685_v8, %v599_v19  ;;  %4824 = vmatpush3.msra.mxu1 %v5303_v11  ;;  %v7424_v19 = vld [vmem:[#allocation24_spill] sm:$0xff]  ;;  %v672_v11 = vpop.permute.xlu0 %671 }
 0x10c   :  { %v822_v36 = vmax.f32 %v754_v12, 0.0  ;;  %4825 = vmatprep.subr.mxu1 %v889_v5  ;;  %v7425_v12 = vld [vmem:[#allocation27_spill] sm:$0xff] }
 0x10d   :  { %v821_v9 = vmax.f32 %v753_v10, 0.0  ;;  %4826 = vmatpush3.msra.mxu1 %v889_v5  ;;  %4928 = vmatmul.mubr.msk.f32.vlgmr.msra.gmra.mxu0 %vm894_vm0, %v5633_v55 }
 0x10e   :  { %4930 = vmatprep.mubr.msk.f32.mxu0 %vm894_vm0, %v5655_v14  ;;  %5023 = vmatprep.subr.mxu1 %v4183_v30 }
 0x10f   :  { %4827 = vmatprep.mubr.msk.f32.mxu1 %vm894_vm0, %v821_v9 }
 0x110   :  { %4828 = vmatmul.mubr.msk.f32.vlgmr.msra.gmra.mxu1 %vm894_vm0, %v822_v36  ;;  %v7426_v36 = vld [vmem:[#allocation26_spill] sm:$0xff] }
 0x111   :  { %4830 = vmatprep.mubr.msk.f32.mxu1 %vm894_vm0, %v7399_v45  ;;  %4931 = vmatmul.mubr.msk.f32.gmra.mxu0 %vm894_vm0, %v5649_v7  ;;  %v7427_v45 = vld [vmem:[#allocation28_spill] sm:$0xff] }
 0x112   :  { %4933 = vmatprep.mubr.msk.f32.mxu0 %vm894_vm0, %v5669_v31  ;;  %5024 = vmatpush3.msra.mxu1 %v4183_v30  ;;  %v677_v30 = vpop.permute.xlu1 %676 }
 0x114   :  { %4831 = vmatmul.mubr.msk.f32.gmra.mxu1 %vm894_vm0, %v7400_v46 }
 0x115   :  { %4833 = vmatprep.mubr.msk.f32.mxu1 %vm894_vm0, %v5640_v59  ;;  %4934 = vmatmul.mubr.msk.f32.gmra.mxu0 %vm894_vm0, %v5663_v26  ;;  %v7403_v59 = vld [vmem:[#allocation5_spill] sm:$0xff] }
 0x116   :  { %4936 = vmatprep.mubr.msk.f32.mxu0 %vm894_vm0, %v5683_v48 }
 0x118   :  { %4834 = vmatmul.mubr.msk.f32.gmra.mxu1 %vm894_vm0, %v5633_v55  ;;  %v7402_v55 = vld [vmem:[#allocation2_spill] sm:$0xff] }
 0x119   :  { %4836 = vmatprep.mubr.msk.f32.mxu1 %vm894_vm0, %v5655_v14  ;;  %4937 = vmatmul.mubr.msk.f32.gmra.mxu0 %vm894_vm0, %v5677_v44 }
 0x11a   :  { %4939 = vmatprep.mubr.msk.f32.mxu0 %vm894_vm0, %v5697_v0 }
 0x11c   :  { %4837 = vmatmul.mubr.msk.f32.gmra.mxu1 %vm894_vm0, %v5649_v7  ;;  %v7404_v7 = vld [vmem:[#allocation4_spill] sm:$0xff] }
 0x11d   :  { %4839 = vmatprep.mubr.msk.f32.mxu1 %vm894_vm0, %v5669_v31  ;;  %4940 = vmatmul.mubr.msk.f32.gmra.mxu0 %vm894_vm0, %v5691_v60 }
 0x11e   :  { %4942 = vmatprep.mubr.msk.f32.mxu0 %vm894_vm0, %v5711_v23 }
 0x120   :  { %4840 = vmatmul.mubr.msk.f32.gmra.mxu1 %vm894_vm0, %v5663_v26  ;;  %v7405_v26 = vld [vmem:[#allocation7_spill] sm:$0xff] }
 0x121   :  { %4842 = vmatprep.mubr.msk.f32.mxu1 %vm894_vm0, %v5683_v48  ;;  %4943 = vmatmul.mubr.msk.f32.gmra.mxu0 %vm894_vm0, %v5705_v17 }
 0x122   :  { %4945 = vmatprep.mubr.msk.f32.mxu0 %vm894_vm0, %v5725_v42 }
 0x124   :  { %4843 = vmatmul.mubr.msk.f32.gmra.mxu1 %vm894_vm0, %v5677_v44  ;;  %v7406_v44 = vld [vmem:[#allocation6_spill] sm:$0xff] }
 0x125   :  { %4845 = vmatprep.mubr.msk.f32.mxu1 %vm894_vm0, %v5697_v0  ;;  %4946 = vmatmul.mubr.msk.f32.gmra.mxu0 %vm894_vm0, %v5719_v38 }
 0x126   :  { %4948 = vmatprep.mubr.msk.f32.mxu0 %vm894_vm0, %v5739_v62 }
 0x128   :  { %4846 = vmatmul.mubr.msk.f32.gmra.mxu1 %vm894_vm0, %v5691_v60  ;;  %v7407_v60 = vld [vmem:[#allocation9_spill] sm:$0xff] }
 0x129   :  { %4848 = vmatprep.mubr.msk.f32.mxu1 %vm894_vm0, %v5711_v23  ;;  %4949 = vmatmul.mubr.msk.f32.gmra.mxu0 %vm894_vm0, %v5733_v56 }
 0x12a   :  { %4951 = vmatprep.mubr.msk.f32.mxu0 %vm894_vm0, %v5753_v24 }
 0x12c   :  { %4849 = vmatmul.mubr.msk.f32.gmra.mxu1 %vm894_vm0, %v5705_v17  ;;  %v7408_v17 = vld [vmem:[#allocation8_spill] sm:$0xff] }
 0x12d   :  { %4851 = vmatprep.mubr.msk.f32.mxu1 %vm894_vm0, %v5725_v42  ;;  %4952 = vmatmul.mubr.msk.f32.gmra.mxu0 %vm894_vm0, %v5747_v16 }
 0x12e   :  { %4954 = vmatprep.mubr.msk.f32.mxu0 %vm894_vm0, %v5767_v47 }
 0x130   :  { %4852 = vmatmul.mubr.msk.f32.gmra.mxu1 %vm894_vm0, %v5719_v38  ;;  %v7409_v38 = vld [vmem:[#allocation11_spill] sm:$0xff] }
 0x131   :  { %4854 = vmatprep.mubr.msk.f32.mxu1 %vm894_vm0, %v5739_v62  ;;  %4955 = vmatmul.mubr.msk.f32.gmra.mxu0 %vm894_vm0, %v5761_v40 }
 0x132   :  { %4957 = vmatprep.mubr.msk.f32.mxu0 %vm894_vm0, %v5781_v6 }
 0x134   :  { %4855 = vmatmul.mubr.msk.f32.gmra.mxu1 %vm894_vm0, %v5733_v56  ;;  %v7410_v56 = vld [vmem:[#allocation10_spill] sm:$0xff] }
 0x135   :  { %4857 = vmatprep.mubr.msk.f32.mxu1 %vm894_vm0, %v5753_v24  ;;  %4958 = vmatmul.mubr.msk.f32.gmra.mxu0 %vm894_vm0, %v5775_v63 }
 0x136   :  { %4960 = vmatprep.mubr.msk.f32.mxu0 %vm894_vm0, %v5795_v34 }
 0x138   :  { %4858 = vmatmul.mubr.msk.f32.gmra.mxu1 %vm894_vm0, %v5747_v16  ;;  %v7411_v16 = vld [vmem:[#allocation13_spill] sm:$0xff] }
 0x139   :  { %4860 = vmatprep.mubr.msk.f32.mxu1 %vm894_vm0, %v5767_v47  ;;  %4961 = vmatmul.mubr.msk.f32.gmra.mxu0 %vm894_vm0, %v5789_v28 }
 0x13a   :  { %4963 = vmatprep.mubr.msk.f32.mxu0 %vm894_vm0, %v5809_v1 }
 0x13c   :  { %4861 = vmatmul.mubr.msk.f32.gmra.mxu1 %vm894_vm0, %v5761_v40  ;;  %v7412_v40 = vld [vmem:[#allocation12_spill] sm:$0xff] }
 0x13d   :  { %4863 = vmatprep.mubr.msk.f32.mxu1 %vm894_vm0, %v5781_v6  ;;  %4964 = vmatmul.mubr.msk.f32.gmra.mxu0 %vm894_vm0, %v5803_v53 }
 0x13e   :  { %4966 = vmatprep.mubr.msk.f32.mxu0 %vm894_vm0, %v5823_v33 }
 0x140   :  { %4864 = vmatmul.mubr.msk.f32.gmra.mxu1 %vm894_vm0, %v5775_v63  ;;  %v7413_v63 = vld [vmem:[#allocation15_spill] sm:$0xff] }
 0x141   :  { %4866 = vmatprep.mubr.msk.f32.mxu1 %vm894_vm0, %v5795_v34  ;;  %4967 = vmatmul.mubr.msk.f32.gmra.mxu0 %vm894_vm0, %v5817_v27 }
 0x142   :  { %4969 = vmatprep.mubr.msk.f32.mxu0 %vm894_vm0, %v5837_v2 }
 0x144   :  { %4867 = vmatmul.mubr.msk.f32.gmra.mxu1 %vm894_vm0, %v5789_v28  ;;  %v7414_v28 = vld [vmem:[#allocation14_spill] sm:$0xff] }
 0x145   :  { %4869 = vmatprep.mubr.msk.f32.mxu1 %vm894_vm0, %v5809_v1  ;;  %4970 = vmatmul.mubr.msk.f32.gmra.mxu0 %vm894_vm0, %v5831_v61 }
 0x146   :  { %4972 = vmatprep.mubr.msk.f32.mxu0 %vm894_vm0, %v7401_v35 }
 0x148   :  { %4870 = vmatmul.mubr.msk.f32.gmra.mxu1 %vm894_vm0, %v5803_v53  ;;  %v7415_v53 = vld [vmem:[#allocation17_spill] sm:$0xff] }
 0x149   :  { %4872 = vmatprep.mubr.msk.f32.mxu1 %vm894_vm0, %v5823_v33  ;;  %4973 = vmatmul.mubr.msk.f32.gmra.mxu0 %vm894_vm0, %v7402_v55 }
 0x14a   :  { %4975 = vmatprep.mubr.msk.f32.mxu0 %vm894_vm0, %v7403_v59 }
 0x14c   :  { %4873 = vmatmul.mubr.msk.f32.gmra.mxu1 %vm894_vm0, %v5817_v27  ;;  %v7416_v27 = vld [vmem:[#allocation16_spill] sm:$0xff] }
 0x14d   :  { %4875 = vmatprep.mubr.msk.f32.mxu1 %vm894_vm0, %v5837_v2  ;;  %4976 = vmatmul.mubr.msk.f32.gmra.mxu0 %vm894_vm0, %v7404_v7  ;;  %v7417_v2 = vld [vmem:[#allocation19_spill] sm:$0xff] }
 0x14e   :  { %v6229_v14 = vpop.f32.mrf.mxu0  ;;  %4978 = vmatprep.mubr.msk.f32.mxu0 %vm894_vm0, %v7405_v26 }
 0x150   :  { %v6233_v31 = vpop.f32.mrf.mxu0  ;;  %4876 = vmatmul.mubr.msk.f32.gmra.mxu1 %vm894_vm0, %v5831_v61  ;;  %v4182_v61 = vld [vmem:[%s7309_s4 + $0x10] sm:$0xff] }
 0x151   :  { %4878 = vmatprep.mubr.msk.f32.mxu1 %vm894_vm0, %v7401_v35  ;;  %4979 = vmatmul.mubr.msk.f32.gmra.mxu0 %vm894_vm0, %v7406_v44  ;;  %v751_v35 = vmul.f32 %v6049_v25, %v672_v11 }
 0x152   :  { %v6241_v48 = vpop.f32.mrf.mxu0  ;;  %4981 = vmatprep.mubr.msk.f32.mxu0 %vm894_vm0, %v7407_v60  ;;  %5025 = vmatprep.subr.mxu1 %v4182_v61 }
 0x153   :  { %5026 = vmatpush3.msra.mxu1 %v4182_v61 }
 0x154   :  { %v6245_v0 = vpop.f32.mrf.mxu0  ;;  %4879 = vmatmul.mubr.msk.f32.gmra.mxu1 %vm894_vm0, %v7402_v55 }
 0x155   :  { %4881 = vmatprep.mubr.msk.f32.mxu1 %vm894_vm0, %v7403_v59  ;;  %4982 = vmatmul.mubr.msk.f32.gmra.mxu0 %vm894_vm0, %v7408_v17  ;;  %v752_v59 = vmul.f32 %v6049_v25, %v677_v30 }
 0x156   :  { %v6253_v23 = vpop.f32.mrf.mxu0  ;;  %4984 = vmatprep.mubr.msk.f32.mxu0 %vm894_vm0, %v7409_v38 }
 0x157   :  { %v820_v25 = vadd.f32 %v752_v59, %v6054_v57 }
 0x158   :  { %v6257_v42 = vpop.f32.mrf.mxu0  ;;  %4882 = vmatmul.mubr.msk.f32.gmra.mxu1 %vm894_vm0, %v7404_v7 }
 0x159   :  { %4884 = vmatprep.mubr.msk.f32.mxu1 %vm894_vm0, %v7405_v26  ;;  %4985 = vmatmul.mubr.msk.f32.gmra.mxu0 %vm894_vm0, %v7410_v56  ;;  %v819_v26 = vadd.f32 %v751_v35, %v6058_v54  ;;  %v888_v39 = vmax.f32 %v820_v25, 0.0 }
 0x15a   :  { %v6265_v62 = vpop.f32.mrf.mxu0  ;;  %4987 = vmatprep.mubr.msk.f32.mxu0 %vm894_vm0, %v7411_v16 }
 0x15b   :  { %v887_v54 = vmax.f32 %v819_v26, 0.0 }
 0x15c   :  { %v6269_v24 = vpop.f32.mrf.mxu0  ;;  %4885 = vmatmul.mubr.msk.f32.gmra.mxu1 %vm894_vm0, %v7406_v44 }
 0x15d   :  { %4887 = vmatprep.mubr.msk.f32.mxu1 %vm894_vm0, %v7407_v60  ;;  %4988 = vmatmul.mubr.msk.f32.gmra.mxu0 %vm894_vm0, %v7412_v40 }
 0x15e   :  { %v6277_v47 = vpop.f32.mrf.mxu0  ;;  %4990 = vmatprep.mubr.msk.f32.mxu0 %vm894_vm0, %v7413_v63 }
 0x160   :  { %v6281_v6 = vpop.f32.mrf.mxu0  ;;  %4888 = vmatmul.mubr.msk.f32.gmra.mxu1 %vm894_vm0, %v7408_v17 }
 0x161   :  { %4890 = vmatprep.mubr.msk.f32.mxu1 %vm894_vm0, %v7409_v38  ;;  %4991 = vmatmul.mubr.msk.f32.gmra.mxu0 %vm894_vm0, %v7414_v28 }
 0x162   :  { %v6289_v34 = vpop.f32.mrf.mxu0  ;;  %4993 = vmatprep.mubr.msk.f32.mxu0 %vm894_vm0, %v7415_v53 }
 0x164   :  { %v6293_v1 = vpop.f32.mrf.mxu0  ;;  %4891 = vmatmul.mubr.msk.f32.gmra.mxu1 %vm894_vm0, %v7410_v56 }
 0x165   :  { %4893 = vmatprep.mubr.msk.f32.mxu1 %vm894_vm0, %v7411_v16  ;;  %4994 = vmatmul.mubr.msk.f32.gmra.mxu0 %vm894_vm0, %v7416_v27 }
 0x166   :  { %v6301_v33 = vpop.f32.mrf.mxu0  ;;  %4996 = vmatprep.mubr.msk.f32.mxu0 %vm894_vm0, %v7417_v2 }
 0x168   :  { %v6308_v49 = vpop.f32.mrf.mxu0  ;;  %4894 = vmatmul.mubr.msk.f32.gmra.mxu1 %vm894_vm0, %v7412_v40 }
 0x169   :  { %4896 = vmatprep.mubr.msk.f32.mxu1 %vm894_vm0, %v7413_v63  ;;  %4997 = vmatmul.mubr.msk.f32.gmra.mxu0 %vm894_vm0, %v7418_v15 }
 0x16a   :  { %v6316_v13 = vpop.f32.mrf.mxu0  ;;  %4999 = vmatprep.mubr.msk.f32.mxu0 %vm894_vm0, %v7419_v37 }
 0x16c   :  { %v6320_v20 = vpop.f32.mrf.mxu0  ;;  %4897 = vmatmul.mubr.msk.f32.gmra.mxu1 %vm894_vm0, %v7414_v28 }
 0x16d   :  { %4899 = vmatprep.mubr.msk.f32.mxu1 %vm894_vm0, %v7415_v53  ;;  %5000 = vmatmul.mubr.msk.f32.gmra.mxu0 %vm894_vm0, %v7420_v50 }
 0x16e   :  { %v6328_v21 = vpop.f32.mrf.mxu0  ;;  %5002 = vmatprep.mubr.msk.f32.mxu0 %vm894_vm0, %v7421_v22 }
 0x170   :  { %v6332_v43 = vpop.f32.mrf.mxu0  ;;  %4900 = vmatmul.mubr.msk.f32.gmra.mxu1 %vm894_vm0, %v7416_v27 }
 0x171   :  { %4902 = vmatprep.mubr.msk.f32.mxu1 %vm894_vm0, %v7417_v2  ;;  %5003 = vmatmul.mubr.msk.f32.gmra.mxu0 %vm894_vm0, %v7422_v58  ;;  %v6451_v2 = vld [vmem:[%s7309_s4 + $0x8] sm:$0xff] }
 0x172   :  { %v6340_v32 = vpop.f32.mrf.mxu0  ;;  %5005 = vmatprep.mubr.msk.f32.mxu0 %vm894_vm0, %v7423_v52  ;;  %5069 = vmatprep.subr.mxu1 %v6451_v2 }
 0x174   :  { %v6344_v8 = vpop.f32.mrf.mxu0  ;;  %4903 = vmatmul.mubr.msk.f32.gmra.mxu1 %vm894_vm0, %v7418_v15 }
 0x175   :  { %4905 = vmatprep.mubr.msk.f32.mxu1 %vm894_vm0, %v7419_v37  ;;  %5006 = vmatmul.mubr.msk.f32.gmra.mxu0 %vm894_vm0, %v7424_v19 }
 0x176   :  { %v6352_v5 = vpop.f32.mrf.mxu0  ;;  %5008 = vmatprep.mubr.msk.f32.mxu0 %vm894_vm0, %v7425_v12 }
 0x178   :  { %v6356_v10 = vpop.f32.mrf.mxu0  ;;  %4906 = vmatmul.mubr.msk.f32.gmra.mxu1 %vm894_vm0, %v7420_v50 }
 0x179   :  { %4908 = vmatprep.mubr.msk.f32.mxu1 %vm894_vm0, %v7421_v22  ;;  %5009 = vmatmul.mubr.msk.f32.gmra.mxu0 %vm894_vm0, %v7426_v36 }
 0x17a   :  { %v6364_v9 = vpop.f32.mrf.mxu0  ;;  %5011 = vmatprep.mubr.msk.f32.mxu0 %vm894_vm0, %v7427_v45 }
 0x17c   :  { %v6368_v46 = vpop.f32.mrf.mxu0  ;;  %4909 = vmatmul.mubr.msk.f32.gmra.mxu1 %vm894_vm0, %v7422_v58 }
 0x17d   :  { %4911 = vmatprep.mubr.msk.f32.mxu1 %vm894_vm0, %v7423_v52  ;;  %5012 = vmatmul.mubr.msk.f32.gmra.mxu0 %vm894_vm0, %v6052_v51 }
 0x17e   :  { %v6377_v55 = vpop.f32.mrf.mxu0  ;;  %5014 = vmatprep.mubr.msk.f32.mxu0 %vm894_vm0, %v6060_v18 }
 0x180   :  { %v6382_v7 = vpop.f32.mrf.mxu0  ;;  %4912 = vmatmul.mubr.msk.f32.gmra.mxu1 %vm894_vm0, %v7424_v19 }
 0x181   :  { %4914 = vmatprep.mubr.msk.f32.mxu1 %vm894_vm0, %v7425_v12  ;;  %5015 = vmatmul.mubr.msk.f32.gmra.mxu0 %vm894_vm0, %v6074_v4 }
 0x182   :  { %v6391_v44 = vpop.f32.mrf.mxu0  ;;  %5017 = vmatprep.mubr.msk.f32.mxu0 %vm894_vm0, %v885_v29 }
 0x184   :  { %v6397_v60 = vpop.f32.mrf.mxu0  ;;  %4915 = vmatmul.mubr.msk.f32.gmra.mxu1 %vm894_vm0, %v7426_v36 }
 0x185   :  { %4917 = vmatprep.mubr.msk.f32.mxu1 %vm894_vm0, %v7427_v45  ;;  %5018 = vmatmul.mubr.msk.f32.gmra.mxu0 %vm894_vm0, %v886_v41 }
 0x186   :  { %v6406_v17 = vpop.f32.mrf.mxu0  ;;  %5020 = vmatprep.mubr.msk.f32.mxu0 %vm894_vm0, %v887_v54 }
 0x188   :  { %v6409_v29 = vpop.f32.mrf.mxu0  ;;  %4918 = vmatmul.mubr.msk.f32.gmra.mxu1 %vm894_vm0, %v6052_v51 }
 0x189   :  { %4920 = vmatprep.mubr.msk.f32.mxu1 %vm894_vm0, %v6060_v18  ;;  %5021 = vmatmul.mubr.msk.f32.gmra.mxu0 %vm894_vm0, %v888_v39 }
 0x18a   :  { %v6416_v57 = vpop.f32.mrf.mxu0 }
 0x18c   :  { %v6418_v3 = vpop.f32.mrf.mxu0  ;;  %4921 = vmatmul.mubr.msk.f32.gmra.mxu1 %vm894_vm0, %v6074_v4 }
 0x18e   :  { %v6422_v41 = vpop.f32.mrf.mxu0 }
 0x190   :  { %v6424_v38 = vpop.f32.mrf.mxu0 }
 0x192   :  { %v6426_v56 = vpop.f32.mrf.mxu0 }
 0x194   :  { %v6428_v16 = vpop.f32.mrf.mxu0 }
 0x196   :  { %v6430_v51 = vpop.f32.mrf.mxu0 }
 0x198   :  { %v6432_v18 = vpop.f32.mrf.mxu0 }
 0x19a   :  { %v6434_v40 = vpop.f32.mrf.mxu0 }
 0x19c   :  { %v6436_v63 = vpop.f32.mrf.mxu0 }
 0x19e   :  { %v6438_v28 = vpop.f32.mrf.mxu0 }
 0x1a0   :  { %v6440_v53 = vpop.f32.mrf.mxu0 }
 0x1a2   :  { %v6442_v4 = vpop.f32.mrf.mxu0 }
 0x1a4   :  { %v6444_v27 = vpop.f32.mrf.mxu0 }
 0x1a6   :  { %v6446_v61 = vpop.f32.mrf.mxu0 }
 0x1a7   :  { %7428 = vst [vmem:[#allocation3_spill] sm:$0xff] %v6446_v61 }
 0x1a8   :  { %v6454_v15 = vpop.f32.mrf.mxu0 }
 0x1a9   :  { %7429 = vst [vmem:[#allocation2_spill] sm:$0xff] %v6454_v15 }
 0x1aa   :  { %v6456_v37 = vpop.f32.mrf.mxu0 }
 0x1ab   :  { %7430 = vst [vmem:[#allocation5_spill] sm:$0xff] %v6456_v37 }
 0x1ac   :  { %v6458_v50 = vpop.f32.mrf.mxu0 }
 0x1ad   :  { %7431 = vst [vmem:[#allocation4_spill] sm:$0xff] %v6458_v50 }
 0x1ae   :  { %v6460_v22 = vpop.f32.mrf.mxu0 }
 0x1af   :  { %7432 = vst [vmem:[#allocation7_spill] sm:$0xff] %v6460_v22 }
 0x1b0   :  { %v6462_v58 = vpop.f32.mrf.mxu0 }
 0x1b1   :  { %7433 = vst [vmem:[#allocation6_spill] sm:$0xff] %v6462_v58 }
 0x1b2   :  { %v6464_v52 = vpop.f32.mrf.mxu0 }
 0x1b3   :  { %7434 = vst [vmem:[#allocation9_spill] sm:$0xff] %v6464_v52 }
 0x1b4   :  { %v6466_v19 = vpop.f32.mrf.mxu0 }
 0x1b5   :  { %7435 = vst [vmem:[#allocation8_spill] sm:$0xff] %v6466_v19 }
 0x1b6   :  { %v6468_v12 = vpop.f32.mrf.mxu0 }
 0x1b7   :  { %7436 = vst [vmem:[#allocation11_spill] sm:$0xff] %v6468_v12 }
 0x1b8   :  { %v6470_v11 = vpop.f32.mrf.mxu0 }
 0x1b9   :  { %7437 = vst [vmem:[#allocation10_spill] sm:$0xff] %v6470_v11 }
 0x1ba   :  { %v6472_v36 = vpop.f32.mrf.mxu0 }
 0x1bb   :  { %7438 = vst [vmem:[#allocation13_spill] sm:$0xff] %v6472_v36 }
 0x1bc   :  { %v6474_v45 = vpop.f32.mrf.mxu0 }
 0x1bd   :  { %7439 = vst [vmem:[#allocation12_spill] sm:$0xff] %v6474_v45 }
 0x1be   :  { %v6476_v30 = vpop.f32.mrf.mxu0 }
 0x1bf   :  { %7440 = vst [vmem:[#allocation15_spill] sm:$0xff] %v6476_v30 }
 0x1c0   :  { %v6478_v35 = vpop.f32.mrf.mxu0 }
 0x1c1   :  { %7441 = vst [vmem:[#allocation14_spill] sm:$0xff] %v6478_v35 }
 0x1c5   :  { %v6480_v59 = vpop.f32.mrf.mxu0 }
 0x1c6   :  { %7442 = vst [vmem:[#allocation17_spill] sm:$0xff] %v6480_v59 }
 0x1c7   :  { %v6482_v26 = vpop.f32.mrf.mxu0 }
 0x1c8   :  { %7443 = vst [vmem:[#allocation16_spill] sm:$0xff] %v6482_v26 }
 0x1c9   :  { %v6484_v25 = vpop.f32.mrf.mxu0 }
 0x1ca   :  { %7444 = vst [vmem:[#allocation19_spill] sm:$0xff] %v6484_v25  ;;  %v6486_v54 = vpop.f32.mrf.mxu1 }
 0x1cb   :  { %7445 = vst [vmem:[#allocation18_spill] sm:$0xff] %v6486_v54  ;;  %v6488_v39 = vpop.f32.mrf.mxu0  ;;  %v6498_v54 = vld [vmem:[%s7310_s3] ss:$0 sm:$0xff] }
 0x1cc   :  { %7446 = vst [vmem:[#allocation21_spill] sm:$0xff] %v6488_v39  ;;  %v6490_v12 = vpop.f32.mrf.mxu1 }
 0x1cd   :  { %7447 = vst [vmem:[#allocation20_spill] sm:$0xff] %v6490_v12  ;;  %v4929_v11 = vpop.f32.mrf.mxu0 }
 0x1cf   :  { %v1938_v36 = vpop.f32.mrf.mxu0 }
 0x1d0   :  { %v4829_v19 = vpop.f32.mrf.mxu1 }
 0x1d1   :  { %v1550_v45 = vadd.f32 %v4829_v19, %v6229_v14  ;;  %v4932_v30 = vpop.f32.mrf.mxu0 }
 0x1d2   :  { %v1544_v52 = vpop.f32.mrf.mxu1 }
 0x1d3   :  { %v2258_v35 = vadd.f32 %v4929_v11, %v1550_v45  ;;  %v1545_v59 = vadd.f32 %v1544_v52, %v6233_v31  ;;  %v1948_v58 = vpop.f32.mrf.mxu0 }
 0x1d4   :  { %v4832_v26 = vpop.f32.mrf.mxu1 }
 0x1d5   :  { %v1560_v25 = vadd.f32 %v4832_v26, %v6241_v48  ;;  %v4935_v39 = vpop.f32.mrf.mxu0  ;;  %v2257_v22 = vadd.f32 %v1938_v36, %v1545_v59  ;;  %v6502_v11 = vadd.f32 %v6498_v54, %v2258_v35 }
 0x1d6   :  { %v1554_v12 = vpop.f32.mrf.mxu1 }
 0x1d7   :  { %v2260_v50 = vadd.f32 %v4932_v30, %v1560_v25  ;;  %v1555_v14 = vadd.f32 %v1554_v12, %v6245_v0  ;;  %v1958_v19 = vpop.f32.mrf.mxu0  ;;  %7448 = vst [vmem:[#allocation23_spill] sm:$0xff] %v6502_v11  ;;  %v6509_v15 = vadd.f32 %v6498_v54, %v2257_v22 }
 0x1d8   :  { %v4835_v37 = vpop.f32.mrf.mxu1 }
 0x1d9   :  { %v6505_v31 = vadd.f32 %v6498_v54, %v2260_v50  ;;  %v2259_v48 = vadd.f32 %v1948_v58, %v1555_v14  ;;  %v1570_v52 = vadd.f32 %v4835_v37, %v6253_v23  ;;  %v4938_v45 = vpop.f32.mrf.mxu0 }
 0x1da   :  { %v1564_v26 = vpop.f32.mrf.mxu1 }
 0x1db   :  { %7449 = vst [vmem:[#allocation22_spill] sm:$0xff] %v6505_v31  ;;  %v6514_v0 = vadd.f32 %v6498_v54, %v2259_v48  ;;  %v1565_v12 = vadd.f32 %v1564_v26, %v6257_v42  ;;  %v1968_v30 = vpop.f32.mrf.mxu0  ;;  %v2262_v58 = vadd.f32 %v4935_v39, %v1570_v52 }
 0x1dc   :  { %v4838_v35 = vpop.f32.mrf.mxu1 }
 0x1dd   :  { %v1580_v23 = vadd.f32 %v4838_v35, %v6265_v62  ;;  %v4941_v37 = vpop.f32.mrf.mxu0  ;;  %v2261_v22 = vadd.f32 %v1958_v19, %v1565_v12  ;;  %v2333_v11 = vadd.f32 %v6498_v54, %v2262_v58 }
 0x1de   :  { %v1574_v59 = vpop.f32.mrf.mxu1 }
 0x1df   :  { %v1575_v25 = vadd.f32 %v1574_v59, %v6269_v24  ;;  %v2264_v14 = vadd.f32 %v4938_v45, %v1580_v23  ;;  %v1978_v36 = vpop.f32.mrf.mxu0  ;;  %v2332_v39 = vadd.f32 %v6498_v54, %v2261_v22 }
 0x1e0   :  { %v4841_v31 = vpop.f32.mrf.mxu1 }
 0x1e1   :  { %v2263_v48 = vadd.f32 %v1968_v30, %v1575_v25  ;;  %v2335_v42 = vadd.f32 %v6498_v54, %v2264_v14  ;;  %v1590_v26 = vadd.f32 %v4841_v31, %v6277_v47  ;;  %v4944_v61 = vpop.f32.mrf.mxu0 }
 0x1e2   :  { %v1584_v50 = vpop.f32.mrf.mxu1 }
 0x1e3   :  { %v2334_v62 = vadd.f32 %v6498_v54, %v2263_v48  ;;  %v1585_v19 = vadd.f32 %v1584_v50, %v6281_v6  ;;  %v2395_v52 = vmax.f32 %v2333_v11, %v2335_v42  ;;  %v1988_v24 = vpop.f32.mrf.mxu0  ;;  %v2266_v35 = vadd.f32 %v4941_v37, %v1590_v26 }
 0x1e4   :  { %v4844_v45 = vpop.f32.mrf.mxu1 }
 0x1e5   :  { %v2394_v12 = vmax.f32 %v2332_v39, %v2334_v62  ;;  %v1600_v30 = vadd.f32 %v4844_v45, %v6289_v34  ;;  %v4947_v58 = vpop.f32.mrf.mxu0  ;;  %v2265_v59 = vadd.f32 %v1978_v36, %v1585_v19  ;;  %v6531_v22 = vmax.f32 %v2395_v52, 0.0  ;;  %v2456_v34 = vld [vmem:[%s7309_s4] sm:$0xff]  ;;  %v6550_v39 = vld [vmem:[%s7309_s4 + $0x28] sm:$0xff] }
 0x1e6   :  { %v1594_v23 = vpop.f32.mrf.mxu1 }
 0x1e7   :  { %v2268_v25 = vadd.f32 %v4944_v61, %v1600_v30  ;;  %v1595_v47 = vadd.f32 %v1594_v23, %v6293_v1  ;;  %v6529_v31 = vmax.f32 %v2394_v12, 0.0  ;;  %v1998_v14 = vpop.f32.mrf.mxu0  ;;  %v2337_v61 = vadd.f32 %v6498_v54, %v2266_v35 }
 0x1e8   :  { %v4847_v48 = vpop.f32.mrf.mxu1  ;;  %v2336_v37 = vadd.f32 %v6498_v54, %v2265_v59 }
 0x1e9   :  { %v2339_v6 = vadd.f32 %v6498_v54, %v2268_v25  ;;  %v2267_v11 = vadd.f32 %v1988_v24, %v1595_v47  ;;  %5027 = vmatprep.mubr.msk.f32.mxu1 %vm894_vm0, %v6529_v31  ;;  %v1610_v1 = vadd.f32 %v4847_v48, %v6301_v33  ;;  %v4950_v36 = vpop.f32.mrf.mxu0 }
 0x1ea   :  { %v1604_v50 = vpop.f32.mrf.mxu1  ;;  %5028 = vmatmul.mubr.msk.f32.vlgmr.msra.gmra.mxu1 %vm894_vm0, %v6531_v22 }
 0x1eb   :  { %v2338_v42 = vadd.f32 %v6498_v54, %v2267_v11  ;;  %v1605_v26 = vadd.f32 %v1604_v50, %v6308_v49  ;;  %5070 = vmatpush3.msra.mxu1 %v6451_v2  ;;  %v2397_v62 = vmax.f32 %v2337_v61, %v2339_v6  ;;  %v2008_v33 = vpop.f32.mrf.mxu0  ;;  %v2270_v24 = vadd.f32 %v4947_v58, %v1610_v1 }
 0x1ec   :  { %v4850_v19 = vpop.f32.mrf.mxu1  ;;  %5071 = vmatprep.subr.mxu1 %v2456_v34 }
 0x1ed   :  { %v2396_v52 = vmax.f32 %v2336_v37, %v2338_v42  ;;  %5072 = vmatpush3.msra.mxu1 %v2456_v34  ;;  %v1620_v45 = vadd.f32 %v4850_v19, %v6316_v13  ;;  %v4953_v12 = vpop.f32.mrf.mxu0  ;;  %v2269_v49 = vadd.f32 %v1998_v14, %v1605_v26  ;;  %v6557_v23 = vmax.f32 %v2397_v62, 0.0 }
 0x1ee   :  { %v1614_v30 = vpop.f32.mrf.mxu1  ;;  %5115 = vmatprep.subr.mxu1 %v6550_v39  ;;  %v2341_v13 = vadd.f32 %v6498_v54, %v2270_v24 }
 0x1ef   :  { %v1615_v2 = vadd.f32 %v1614_v30, %v6320_v20  ;;  %v6555_v35 = vmax.f32 %v2396_v52, 0.0  ;;  %v2272_v59 = vadd.f32 %v4950_v36, %v1620_v45  ;;  %v2018_v25 = vpop.f32.mrf.mxu0  ;;  %v2340_v20 = vadd.f32 %v6498_v54, %v2269_v49 }
 0x1f0   :  { %v4853_v47 = vpop.f32.mrf.mxu1 }
 0x1f1   :  { %v2271_v48 = vadd.f32 %v2008_v33, %v1615_v2  ;;  %5030 = vmatprep.mubr.msk.f32.mxu1 %vm894_vm0, %v6555_v35  ;;  %v2343_v58 = vadd.f32 %v6498_v54, %v2272_v59  ;;  %v1630_v6 = vadd.f32 %v4853_v47, %v6328_v21  ;;  %v4956_v14 = vpop.f32.mrf.mxu0 }
 0x1f2   :  { %v1624_v11 = vpop.f32.mrf.mxu1  ;;  %5031 = vmatmul.mubr.msk.f32.gmra.mxu1 %vm894_vm0, %v6557_v23 }
 0x1f3   :  { %v2342_v34 = vadd.f32 %v6498_v54, %v2271_v48  ;;  %v1625_v61 = vadd.f32 %v1624_v11, %v6332_v43  ;;  %v2399_v1 = vmax.f32 %v2341_v13, %v2343_v58  ;;  %v2028_v36 = vpop.f32.mrf.mxu0  ;;  %v2274_v26 = vadd.f32 %v4953_v12, %v1630_v6 }
 0x1f4   :  { %v4856_v50 = vpop.f32.mrf.mxu1 }
 0x1f5   :  { %v2398_v37 = vmax.f32 %v2340_v20, %v2342_v34  ;;  %v1640_v42 = vadd.f32 %v4856_v50, %v6340_v32  ;;  %v4959_v62 = vpop.f32.mrf.mxu0  ;;  %v2273_v33 = vadd.f32 %v2018_v25, %v1625_v61  ;;  %v6573_v45 = vmax.f32 %v2399_v1, 0.0 }
 0x1f6   :  { %v1634_v21 = vpop.f32.mrf.mxu1  ;;  %v2345_v32 = vadd.f32 %v6498_v54, %v2274_v26 }
 0x1f7   :  { %v2276_v19 = vadd.f32 %v4956_v14, %v1640_v42  ;;  %v1635_v52 = vadd.f32 %v1634_v21, %v6344_v8  ;;  %v6571_v24 = vmax.f32 %v2398_v37, 0.0  ;;  %v2038_v30 = vpop.f32.mrf.mxu0  ;;  %v2344_v8 = vadd.f32 %v6498_v54, %v2273_v33 }
 0x1f8   :  { %v4859_v49 = vpop.f32.mrf.mxu1 }
 0x1f9   :  { %v2347_v43 = vadd.f32 %v6498_v54, %v2276_v19  ;;  %v2275_v2 = vadd.f32 %v2028_v36, %v1635_v52  ;;  %5033 = vmatprep.mubr.msk.f32.mxu1 %vm894_vm0, %v6571_v24  ;;  %v1650_v12 = vadd.f32 %v4859_v49, %v6352_v5  ;;  %v4962_v59 = vpop.f32.mrf.mxu0 }
 0x1fa   :  { %v1644_v25 = vpop.f32.mrf.mxu1  ;;  %5034 = vmatmul.mubr.msk.f32.gmra.mxu1 %vm894_vm0, %v6573_v45 }
 0x1fb   :  { %v2346_v47 = vadd.f32 %v6498_v54, %v2275_v2  ;;  %v1645_v48 = vadd.f32 %v1644_v25, %v6356_v10  ;;  %v2401_v13 = vmax.f32 %v2345_v32, %v2347_v43  ;;  %v2048_v58 = vpop.f32.mrf.mxu0  ;;  %v2278_v11 = vadd.f32 %v4959_v62, %v1650_v12 }
 0x1fc   :  { %v4862_v6 = vpop.f32.mrf.mxu1 }
 0x1fd   :  { %v2400_v14 = vmax.f32 %v2344_v8, %v2346_v47  ;;  %v1660_v20 = vadd.f32 %v4862_v6, %v6364_v9  ;;  %v4965_v34 = vpop.f32.mrf.mxu0  ;;  %v2277_v61 = vadd.f32 %v2038_v30, %v1645_v48  ;;  %v6589_v50 = vmax.f32 %v2401_v13, 0.0 }
 0x1fe   :  { %v1654_v5 = vpop.f32.mrf.mxu1  ;;  %v2349_v62 = vadd.f32 %v6498_v54, %v2278_v11 }
 0x1ff   :  { %v1655_v1 = vadd.f32 %v1654_v5, %v6368_v46  ;;  %v6587_v36 = vmax.f32 %v2400_v14, 0.0  ;;  %v2280_v37 = vadd.f32 %v4962_v59, %v1660_v20  ;;  %v2058_v42 = vpop.f32.mrf.mxu0  ;;  %v2348_v46 = vadd.f32 %v6498_v54, %v2277_v61 }
 0x200   :  { %v4865_v26 = vpop.f32.mrf.mxu1 }
 0x201   :  { %v2279_v10 = vadd.f32 %v2048_v58, %v1655_v1  ;;  %5036 = vmatprep.mubr.msk.f32.mxu1 %vm894_vm0, %v6587_v36  ;;  %v2351_v9 = vadd.f32 %v6498_v54, %v2280_v37  ;;  %v1670_v21 = vadd.f32 %v4865_v26, %v6377_v55  ;;  %v4968_v33 = vpop.f32.mrf.mxu0 }
 0x202   :  { %v1664_v19 = vpop.f32.mrf.mxu1  ;;  %5037 = vmatmul.mubr.msk.f32.gmra.mxu1 %vm894_vm0, %v6589_v50 }
 0x203   :  { %v2350_v52 = vadd.f32 %v6498_v54, %v2279_v10  ;;  %v1665_v30 = vadd.f32 %v1664_v19, %v6382_v7  ;;  %v2403_v49 = vmax.f32 %v2349_v62, %v2351_v9  ;;  %v2068_v43 = vpop.f32.mrf.mxu0  ;;  %v2282_v59 = vadd.f32 %v4965_v34, %v1670_v21 }
 0x204   :  { %v4868_v2 = vpop.f32.mrf.mxu1 }
 0x205   :  { %v2402_v32 = vmax.f32 %v2348_v46, %v2350_v52  ;;  %v1680_v12 = vadd.f32 %v4868_v2, %v6391_v44  ;;  %v4971_v25 = vpop.f32.mrf.mxu0  ;;  %v2281_v8 = vadd.f32 %v2058_v42, %v1665_v30  ;;  %v6605_v58 = vmax.f32 %v2403_v49, 0.0 }
 0x206   :  { %v1674_v55 = vpop.f32.mrf.mxu1  ;;  %v2353_v44 = vadd.f32 %v6498_v54, %v2282_v59 }
 0x207   :  { %v2284_v47 = vadd.f32 %v4968_v33, %v1680_v12  ;;  %v1675_v48 = vadd.f32 %v1674_v55, %v6397_v60  ;;  %v6603_v13 = vmax.f32 %v2402_v32, 0.0  ;;  %v2078_v6 = vpop.f32.mrf.mxu0  ;;  %v2352_v60 = vadd.f32 %v6498_v54, %v2281_v8 }
 0x208   :  { %v4871_v14 = vpop.f32.mrf.mxu1 }
 0x209   :  { %v2355_v7 = vadd.f32 %v6498_v54, %v2284_v47  ;;  %v2283_v11 = vadd.f32 %v2068_v43, %v1675_v48  ;;  %5039 = vmatprep.mubr.msk.f32.mxu1 %vm894_vm0, %v6603_v13  ;;  %v1690_v20 = vadd.f32 %v4871_v14, %v6406_v17  ;;  %v4974_v34 = vpop.f32.mrf.mxu0 }
 0x20a   :  { %v1684_v5 = vpop.f32.mrf.mxu1  ;;  %5040 = vmatmul.mubr.msk.f32.gmra.mxu1 %vm894_vm0, %v6605_v58 }
 0x20b   :  { %v2354_v61 = vadd.f32 %v6498_v54, %v2283_v11  ;;  %v1685_v1 = vadd.f32 %v1684_v5, %v6409_v29  ;;  %v2405_v37 = vmax.f32 %v2353_v44, %v2355_v7  ;;  %v2088_v42 = vpop.f32.mrf.mxu0  ;;  %v2286_v62 = vadd.f32 %v4971_v25, %v1690_v20 }
 0x20c   :  { %v4874_v26 = vpop.f32.mrf.mxu1 }
 0x20d   :  { %v2404_v10 = vmax.f32 %v2352_v60, %v2354_v61  ;;  %v1700_v9 = vadd.f32 %v4874_v26, %v6416_v57  ;;  %v4977_v21 = vpop.f32.mrf.mxu0  ;;  %v2285_v33 = vadd.f32 %v2078_v6, %v1685_v1  ;;  %v6621_v52 = vmax.f32 %v2405_v37, 0.0 }
 0x20e   :  { %v1694_v17 = vpop.f32.mrf.mxu1  ;;  %v2357_v2 = vadd.f32 %v6498_v54, %v2286_v62 }
 0x20f   :  { %v1695_v19 = vadd.f32 %v1694_v17, %v6418_v3  ;;  %v6619_v46 = vmax.f32 %v2404_v10, 0.0  ;;  %v2288_v30 = vadd.f32 %v4974_v34, %v1700_v9  ;;  %v2098_v49 = vpop.f32.mrf.mxu0  ;;  %v2356_v3 = vadd.f32 %v6498_v54, %v2285_v33 }
 0x210   :  { %v4877_v43 = vpop.f32.mrf.mxu1 }
 0x211   :  { %v2287_v29 = vadd.f32 %v2088_v42, %v1695_v19  ;;  %5042 = vmatprep.mubr.msk.f32.mxu1 %vm894_vm0, %v6619_v46  ;;  %v2359_v57 = vadd.f32 %v6498_v54, %v2288_v30  ;;  %v1710_v32 = vadd.f32 %v4877_v43, %v6422_v41  ;;  %v4980_v12 = vpop.f32.mrf.mxu0 }
 0x212   :  { %v1704_v59 = vpop.f32.mrf.mxu1  ;;  %5043 = vmatmul.mubr.msk.f32.gmra.mxu1 %vm894_vm0, %v6621_v52 }
 0x213   :  { %v2358_v25 = vadd.f32 %v6498_v54, %v2287_v29  ;;  %v1705_v55 = vadd.f32 %v1704_v59, %v6424_v38  ;;  %v2407_v8 = vmax.f32 %v2357_v2, %v2359_v57  ;;  %v2108_v47 = vpop.f32.mrf.mxu0  ;;  %v2290_v7 = vadd.f32 %v4977_v21, %v1710_v32 }
 0x214   :  { %v4880_v48 = vpop.f32.mrf.mxu1 }
 0x215   :  { %v2406_v6 = vmax.f32 %v2356_v3, %v2358_v25  ;;  %v1720_v14 = vadd.f32 %v4880_v48, %v6426_v56  ;;  %v4983_v11 = vpop.f32.mrf.mxu0  ;;  %v2289_v44 = vadd.f32 %v2098_v49, %v1705_v55  ;;  %v6637_v60 = vmax.f32 %v2407_v8, 0.0 }
 0x216   :  { %v1714_v41 = vpop.f32.mrf.mxu1  ;;  %v2361_v56 = vadd.f32 %v6498_v54, %v2290_v7 }
 0x217   :  { %v2292_v20 = vadd.f32 %v4980_v12, %v1720_v14  ;;  %v1715_v34 = vadd.f32 %v1714_v41, %v6428_v16  ;;  %v6635_v5 = vmax.f32 %v2406_v6, 0.0  ;;  %v2118_v61 = vpop.f32.mrf.mxu0  ;;  %v2360_v16 = vadd.f32 %v6498_v54, %v2289_v44 }
 0x218   :  { %v4883_v1 = vpop.f32.mrf.mxu1 }
 0x219   :  { %v2363_v38 = vadd.f32 %v6498_v54, %v2292_v20  ;;  %v2291_v37 = vadd.f32 %v2108_v47, %v1715_v34  ;;  %5045 = vmatprep.mubr.msk.f32.mxu1 %vm894_vm0, %v6635_v5  ;;  %v1730_v42 = vadd.f32 %v4883_v1, %v6430_v51  ;;  %v4986_v26 = vpop.f32.mrf.mxu0 }
 0x21a   :  { %v1724_v10 = vpop.f32.mrf.mxu1  ;;  %5046 = vmatmul.mubr.msk.f32.gmra.mxu1 %vm894_vm0, %v6637_v60 }
 0x21b   :  { %v2362_v62 = vadd.f32 %v6498_v54, %v2291_v37  ;;  %v1725_v9 = vadd.f32 %v1724_v10, %v6432_v18  ;;  %v2409_v21 = vmax.f32 %v2361_v56, %v2363_v38  ;;  %v2128_v17 = vpop.f32.mrf.mxu0  ;;  %v2294_v30 = vadd.f32 %v4983_v11, %v1730_v42 }
 0x21c   :  { %v4886_v33 = vpop.f32.mrf.mxu1 }
 0x21d   :  { %v2408_v19 = vmax.f32 %v2360_v16, %v2362_v62  ;;  %v1740_v49 = vadd.f32 %v4886_v33, %v6434_v40  ;;  %v4989_v43 = vpop.f32.mrf.mxu0  ;;  %v2293_v29 = vadd.f32 %v2118_v61, %v1725_v9  ;;  %v6653_v32 = vmax.f32 %v2409_v21, 0.0  ;;  %v7450_v16 = vld [vmem:[#allocation3_spill] sm:$0xff]  ;;  %v7451_v33 = vld [vmem:[#allocation2_spill] sm:$0xff] }
 0x21e   :  { %v1734_v51 = vpop.f32.mrf.mxu1  ;;  %v2365_v25 = vadd.f32 %v6498_v54, %v2294_v30 }
 0x21f   :  { %v1735_v2 = vadd.f32 %v1734_v51, %v6436_v63  ;;  %v6651_v57 = vmax.f32 %v2408_v19, 0.0  ;;  %v2296_v12 = vadd.f32 %v4986_v26, %v1740_v49  ;;  %v2138_v59 = vpop.f32.mrf.mxu0  ;;  %v2364_v63 = vadd.f32 %v6498_v54, %v2293_v29 }
 0x220   :  { %v4889_v3 = vpop.f32.mrf.mxu1 }
 0x221   :  { %v2295_v18 = vadd.f32 %v2128_v17, %v1735_v2  ;;  %5048 = vmatprep.mubr.msk.f32.mxu1 %vm894_vm0, %v6651_v57  ;;  %v2367_v40 = vadd.f32 %v6498_v54, %v2296_v12  ;;  %v1750_v55 = vadd.f32 %v4889_v3, %v6438_v28  ;;  %v4992_v8 = vpop.f32.mrf.mxu0  ;;  %v7452_v2 = vld [vmem:[#allocation5_spill] sm:$0xff] }
 0x222   :  { %v1744_v47 = vpop.f32.mrf.mxu1  ;;  %5049 = vmatmul.mubr.msk.f32.gmra.mxu1 %vm894_vm0, %v6653_v32 }
 0x223   :  { %v2366_v48 = vadd.f32 %v6498_v54, %v2295_v18  ;;  %v1745_v6 = vadd.f32 %v1744_v47, %v6440_v53  ;;  %v2411_v14 = vmax.f32 %v2365_v25, %v2367_v40  ;;  %v2148_v7 = vpop.f32.mrf.mxu0  ;;  %v2298_v20 = vadd.f32 %v4989_v43, %v1750_v55  ;;  %v7453_v25 = vld [vmem:[#allocation4_spill] sm:$0xff] }
 0x224   :  { %v4892_v11 = vpop.f32.mrf.mxu1 }
 0x225   :  { %v2410_v41 = vmax.f32 %v2364_v63, %v2366_v48  ;;  %v1760_v44 = vadd.f32 %v4892_v11, %v6442_v4  ;;  %v4995_v34 = vpop.f32.mrf.mxu0  ;;  %v2297_v61 = vadd.f32 %v2138_v59, %v1745_v6  ;;  %v6669_v56 = vmax.f32 %v2411_v14, 0.0  ;;  %v7454_v11 = vld [vmem:[#allocation7_spill] sm:$0xff] }
 0x226   :  { %v1754_v28 = vpop.f32.mrf.mxu1  ;;  %v2369_v4 = vadd.f32 %v6498_v54, %v2298_v20 }
 0x227   :  { %v2300_v1 = vadd.f32 %v4992_v8, %v1760_v44  ;;  %v1755_v38 = vadd.f32 %v1754_v28, %v6444_v27  ;;  %v6667_v37 = vmax.f32 %v2410_v41, 0.0  ;;  %v2158_v42 = vpop.f32.mrf.mxu0  ;;  %v2368_v27 = vadd.f32 %v6498_v54, %v2297_v61  ;;  %v7455_v61 = vld [vmem:[#allocation6_spill] sm:$0xff] }
 0x228   :  { %v4895_v26 = vpop.f32.mrf.mxu1 }
 0x229   :  { %v2371_v53 = vadd.f32 %v6498_v54, %v2300_v1  ;;  %v2299_v10 = vadd.f32 %v2148_v7, %v1755_v38  ;;  %5051 = vmatprep.mubr.msk.f32.mxu1 %vm894_vm0, %v6667_v37  ;;  %v1770_v62 = vadd.f32 %v4895_v26, %v7450_v16  ;;  %v4998_v9 = vpop.f32.mrf.mxu0 }
 0x22a   :  { %v1764_v21 = vpop.f32.mrf.mxu1  ;;  %5052 = vmatmul.mubr.msk.f32.gmra.mxu1 %vm894_vm0, %v6669_v56 }
 0x22b   :  { %v2370_v17 = vadd.f32 %v6498_v54, %v2299_v10  ;;  %v1765_v19 = vadd.f32 %v1764_v21, %v7451_v33  ;;  %v2413_v30 = vmax.f32 %v2369_v4, %v2371_v53  ;;  %v2168_v49 = vpop.f32.mrf.mxu0  ;;  %v2302_v29 = vadd.f32 %v4995_v34, %v1770_v62  ;;  %v7456_v10 = vld [vmem:[#allocation9_spill] sm:$0xff] }
 0x22c   :  { %v4898_v43 = vpop.f32.mrf.mxu1 }
 0x22d   :  { %v2412_v51 = vmax.f32 %v2368_v27, %v2370_v17  ;;  %v1780_v12 = vadd.f32 %v4898_v43, %v7452_v2  ;;  %v5001_v59 = vpop.f32.mrf.mxu0  ;;  %v2301_v18 = vadd.f32 %v2158_v42, %v1765_v19  ;;  %v6685_v8 = vmax.f32 %v2413_v30, 0.0  ;;  %v7457_v17 = vld [vmem:[#allocation8_spill] sm:$0xff] }
 0x22e   :  { %v1774_v3 = vpop.f32.mrf.mxu1  ;;  %v2373_v14 = vadd.f32 %v6498_v54, %v2302_v29 }
 0x22f   :  { %v1775_v40 = vadd.f32 %v1774_v3, %v7453_v25  ;;  %v6683_v55 = vmax.f32 %v2412_v51, 0.0  ;;  %v2304_v47 = vadd.f32 %v4998_v9, %v1780_v12  ;;  %v2178_v63 = vpop.f32.mrf.mxu0  ;;  %v2372_v34 = vadd.f32 %v6498_v54, %v2301_v18  ;;  %v7458_v12 = vld [vmem:[#allocation11_spill] sm:$0xff] }
 0x230   :  { %v4901_v48 = vpop.f32.mrf.mxu1 }
 0x231   :  { %v2303_v6 = vadd.f32 %v2168_v49, %v1775_v40  ;;  %5054 = vmatprep.mubr.msk.f32.mxu1 %vm894_vm0, %v6683_v55  ;;  %v2375_v7 = vadd.f32 %v6498_v54, %v2304_v47  ;;  %v1790_v41 = vadd.f32 %v4901_v48, %v7454_v11  ;;  %v5004_v44 = vpop.f32.mrf.mxu0  ;;  %v7459_v47 = vld [vmem:[#allocation10_spill] sm:$0xff] }
 0x232   :  { %v1784_v20 = vpop.f32.mrf.mxu1  ;;  %5055 = vmatmul.mubr.msk.f32.gmra.mxu1 %vm894_vm0, %v6685_v8 }
 0x233   :  { %v2374_v28 = vadd.f32 %v6498_v54, %v2303_v6  ;;  %v1785_v1 = vadd.f32 %v1784_v20, %v7455_v61  ;;  %v2415_v38 = vmax.f32 %v2373_v14, %v2375_v7  ;;  %v2188_v42 = vpop.f32.mrf.mxu0  ;;  %v2306_v16 = vadd.f32 %v5001_v59, %v1790_v41  ;;  %v7460_v41 = vld [vmem:[#allocation13_spill] sm:$0xff]  ;;  %v7461_v61 = vld [vmem:[#allocation12_spill] sm:$0xff] }
 0x234   :  { %v4904_v26 = vpop.f32.mrf.mxu1 }
 0x235   :  { %v2414_v53 = vmax.f32 %v2372_v34, %v2374_v28  ;;  %v1800_v4 = vadd.f32 %v4904_v26, %v7456_v10  ;;  %v5007_v62 = vpop.f32.mrf.mxu0  ;;  %v2305_v21 = vadd.f32 %v2178_v63, %v1785_v1  ;;  %v6701_v30 = vmax.f32 %v2415_v38, 0.0 }
 0x236   :  { %v1794_v9 = vpop.f32.mrf.mxu1  ;;  %v2377_v2 = vadd.f32 %v6498_v54, %v2306_v16 }
 0x237   :  { %v2308_v27 = vadd.f32 %v5004_v44, %v1800_v4  ;;  %v1795_v33 = vadd.f32 %v1794_v9, %v7457_v17  ;;  %v6699_v19 = vmax.f32 %v2414_v53, 0.0  ;;  %v2198_v49 = vpop.f32.mrf.mxu0  ;;  %v2376_v25 = vadd.f32 %v6498_v54, %v2305_v21  ;;  %v7462_v9 = vld [vmem:[#allocation15_spill] sm:$0xff] }
 0x238   :  { %v4907_v43 = vpop.f32.mrf.mxu1 }
 0x239   :  { %v2379_v51 = vadd.f32 %v6498_v54, %v2308_v27  ;;  %v2307_v29 = vadd.f32 %v2188_v42, %v1795_v33  ;;  %5057 = vmatprep.mubr.msk.f32.mxu1 %vm894_vm0, %v6699_v19  ;;  %v1810_v59 = vadd.f32 %v4907_v43, %v7458_v12  ;;  %v5010_v3 = vpop.f32.mrf.mxu0 }
 0x23a   :  { %v1804_v18 = vpop.f32.mrf.mxu1  ;;  %5058 = vmatmul.mubr.msk.f32.gmra.mxu1 %vm894_vm0, %v6701_v30 }
 0x23b   :  { %v2378_v40 = vadd.f32 %v6498_v54, %v2307_v29  ;;  %v1805_v63 = vadd.f32 %v1804_v18, %v7459_v47  ;;  %v2417_v48 = vmax.f32 %v2377_v2, %v2379_v51  ;;  %v2208_v6 = vpop.f32.mrf.mxu0  ;;  %v2310_v11 = vadd.f32 %v5007_v62, %v1810_v59  ;;  %v7464_v59 = vld [vmem:[#allocation17_spill] sm:$0xff] }
 0x23c   :  { %v4910_v14 = vpop.f32.mrf.mxu1 }
 0x23d   :  { %v2416_v7 = vmax.f32 %v2376_v25, %v2378_v40  ;;  %v1820_v44 = vadd.f32 %v4910_v14, %v7460_v41  ;;  %v5013_v20 = vpop.f32.mrf.mxu0  ;;  %v2309_v28 = vadd.f32 %v2198_v49, %v1805_v63  ;;  %v6717_v42 = vmax.f32 %v2417_v48, 0.0  ;;  %v7463_v49 = vld [vmem:[#allocation14_spill] sm:$0xff]  ;;  %v7465_v63 = vld [vmem:[#allocation16_spill] sm:$0xff] }
 0x23e   :  { %v1814_v34 = vpop.f32.mrf.mxu1  ;;  %v2381_v16 = vadd.f32 %v6498_v54, %v2310_v11 }
 0x23f   :  { %v1815_v1 = vadd.f32 %v1814_v34, %v7461_v61  ;;  %v6715_v38 = vmax.f32 %v2416_v7, 0.0  ;;  %v2312_v26 = vadd.f32 %v5010_v3, %v1820_v44  ;;  %v2218_v53 = vpop.f32.mrf.mxu0  ;;  %v2380_v17 = vadd.f32 %v6498_v54, %v2309_v28 }
 0x240   :  { %v4913_v10 = vpop.f32.mrf.mxu1 }
 0x241   :  { %v2311_v4 = vadd.f32 %v2208_v6, %v1815_v1  ;;  %5060 = vmatprep.mubr.msk.f32.mxu1 %vm894_vm0, %v6715_v38  ;;  %v2383_v62 = vadd.f32 %v6498_v54, %v2312_v26  ;;  %v1830_v21 = vadd.f32 %v4913_v10, %v7462_v9  ;;  %v5016_v29 = vpop.f32.mrf.mxu0 }
 0x242   :  { %v1824_v27 = vpop.f32.mrf.mxu1  ;;  %5061 = vmatmul.mubr.msk.f32.gmra.mxu1 %vm894_vm0, %v6717_v42 }
 0x243   :  { %v2382_v33 = vadd.f32 %v6498_v54, %v2311_v4  ;;  %v1825_v43 = vadd.f32 %v1824_v27, %v7463_v49  ;;  %v2419_v51 = vmax.f32 %v2381_v16, %v2383_v62  ;;  %v2314_v18 = vadd.f32 %v5013_v20, %v1830_v21  ;;  %v2228_v7 = vpop.f32.mrf.mxu0  ;;  %v7467_v4 = vld [vmem:[#allocation23_spill] sm:$0xff]  ;;  %v7468_v16 = vld [vmem:[#allocation22_spill] sm:$0xff]  ;;  %v4273_v27 = vld [vmem:[%s7311_s5 + $0x38] sm:$0xff] }
 0x244   :  { %v4916_v2 = vpop.f32.mrf.mxu1  ;;  %v7469_v62 = vmax.f32 %v7467_v4, %v7468_v16  ;;  %v4240_v21 = vld [vmem:[%s7309_s4 + $0x20] sm:$0xff]  ;;  %5161 = vmatprep.subr.mxu0 %v4273_v27 }
 0x245   :  { %v2418_v12 = vmax.f32 %v2380_v17, %v2382_v33  ;;  %v1840_v3 = vadd.f32 %v4916_v2, %v7464_v59  ;;  %v2313_v40 = vadd.f32 %v2218_v53, %v1825_v43  ;;  %v6733_v14 = vmax.f32 %v2419_v51, 0.0  ;;  %5162 = vmatpush3.msra.mxu0 %v4273_v27 }
 0x246   :  { %v1834_v25 = vpop.f32.mrf.mxu1  ;;  %v2385_v44 = vadd.f32 %v6498_v54, %v2314_v18  ;;  %v7466_v53 = vmax.f32 %v6509_v15, %v6514_v0  ;;  %v2425_v9 = vmax.f32 %v7469_v62, 0.0  ;;  %v4272_v15 = vld [vmem:[%s7311_s5 + $0x30] sm:$0xff]  ;;  %v4271_v0 = vld [vmem:[%s7311_s5 + $0x28] sm:$0xff] }
 0x247   :  { %v2316_v47 = vadd.f32 %v5016_v29, %v1840_v3  ;;  %v1835_v48 = vadd.f32 %v1834_v25, %v7465_v63  ;;  %v6731_v6 = vmax.f32 %v2418_v12, 0.0  ;;  %v2384_v20 = vadd.f32 %v6498_v54, %v2313_v40  ;;  %5163 = vmatprep.subr.mxu0 %v4272_v15  ;;  %v3234_v12 = vld [vmem:[%s7311_s5 + $0x18] sm:$0xff]  ;;  %v3233_v3 = vld [vmem:[%s7311_s5 + $0x10] sm:$0xff]  ;;  %v3232_v18 = vld [vmem:[%s7311_s5 + $0x8] sm:$0xff] }
 0x248   :  { %v2424_v10 = vmax.f32 %v7466_v53, 0.0  ;;  %5164 = vmatpush3.msra.mxu0 %v4272_v15  ;;  %v3231_v40 = vld [vmem:[%s7311_s5] sm:$0xff] }
 0x249   :  { %v2387_v11 = vadd.f32 %v6498_v54, %v2316_v47  ;;  %v2315_v41 = vadd.f32 %v2228_v7, %v1835_v48  ;;  %5063 = vmatprep.mubr.msk.f32.mxu1 %vm894_vm0, %v6731_v6  ;;  %5165 = vmatprep.subr.mxu0 %v4271_v0  ;;  %v6920_v48 = vld [vmem:[%s7311_s5 + $0x58] sm:$0xff] }
 0x24a   :  { %5064 = vmatmul.mubr.msk.f32.gmra.mxu1 %vm894_vm0, %v6733_v14  ;;  %5166 = vmatpush3.msra.mxu0 %v4271_v0 }
 0x24b   :  { %v2386_v34 = vadd.f32 %v6498_v54, %v2315_v41  ;;  %v2421_v28 = vmax.f32 %v2385_v44, %v2387_v11 }
 0x24d   :  { %v2420_v61 = vmax.f32 %v2384_v20, %v2386_v34  ;;  %v6745_v26 = vmax.f32 %v2421_v28, 0.0 }
 0x24f   :  { %v6743_v1 = vmax.f32 %v2420_v61, 0.0 }
 0x251   :  { %5066 = vmatprep.mubr.msk.f32.mxu1 %vm894_vm0, %v6743_v1 }
 0x252   :  { %5067 = vmatmul.mubr.msk.f32.gmra.mxu1 %vm894_vm0, %v6745_v26 }
 0x253   :  { %5073 = vmatprep.mubr.msk.f32.mxu1 %vm894_vm0, %v2424_v10 }
 0x256   :  { %5074 = vmatmul.mubr.msk.f32.vlgmr.msra.gmra.mxu1 %vm894_vm0, %v2425_v9 }
 0x257   :  { %5116 = vmatpush3.msra.mxu1 %v6550_v39  ;;  %5076 = vmatprep.mubr.msk.f32.mxu1 %vm894_vm0, %v6529_v31  ;;  %v4919_v31 = vpop.f32.mrf.mxu1  ;;  %v5019_v39 = vpop.f32.mrf.mxu0 }
 0x258   :  { %5117 = vmatprep.subr.mxu1 %v4240_v21 }
 0x259   :  { %5118 = vmatpush3.msra.mxu1 %v4240_v21 }
 0x25a   :  { %5077 = vmatmul.mubr.msk.f32.gmra.mxu1 %vm894_vm0, %v6531_v22  ;;  %v1844_v22 = vpop.f32.mrf.mxu1  ;;  %5205 = vmatprep.subr.mxu1 %v3234_v12 }
 0x25b   :  { %5079 = vmatprep.mubr.msk.f32.mxu1 %vm894_vm0, %v6555_v35 }
 0x25e   :  { %5080 = vmatmul.mubr.msk.f32.gmra.mxu1 %vm894_vm0, %v6557_v23 }
 0x25f   :  { %5082 = vmatprep.mubr.msk.f32.mxu1 %vm894_vm0, %v6571_v24 }
 0x262   :  { %5083 = vmatmul.mubr.msk.f32.gmra.mxu1 %vm894_vm0, %v6573_v45 }
 0x263   :  { %5085 = vmatprep.mubr.msk.f32.mxu1 %vm894_vm0, %v6587_v36 }
 0x266   :  { %5086 = vmatmul.mubr.msk.f32.gmra.mxu1 %vm894_vm0, %v6589_v50 }
 0x267   :  { %5088 = vmatprep.mubr.msk.f32.mxu1 %vm894_vm0, %v6603_v13 }
 0x26a   :  { %5089 = vmatmul.mubr.msk.f32.gmra.mxu1 %vm894_vm0, %v6605_v58 }
 0x26b   :  { %5091 = vmatprep.mubr.msk.f32.mxu1 %vm894_vm0, %v6619_v46 }
 0x26e   :  { %5092 = vmatmul.mubr.msk.f32.gmra.mxu1 %vm894_vm0, %v6621_v52 }
 0x26f   :  { %5094 = vmatprep.mubr.msk.f32.mxu1 %vm894_vm0, %v6635_v5 }
 0x272   :  { %5095 = vmatmul.mubr.msk.f32.gmra.mxu1 %vm894_vm0, %v6637_v60 }
 0x273   :  { %5097 = vmatprep.mubr.msk.f32.mxu1 %vm894_vm0, %v6651_v57 }
 0x276   :  { %5098 = vmatmul.mubr.msk.f32.gmra.mxu1 %vm894_vm0, %v6653_v32 }
 0x277   :  { %5100 = vmatprep.mubr.msk.f32.mxu1 %vm894_vm0, %v6667_v37 }
 0x27a   :  { %5101 = vmatmul.mubr.msk.f32.gmra.mxu1 %vm894_vm0, %v6669_v56 }
 0x27b   :  { %5103 = vmatprep.mubr.msk.f32.mxu1 %vm894_vm0, %v6683_v55 }
 0x27e   :  { %5104 = vmatmul.mubr.msk.f32.gmra.mxu1 %vm894_vm0, %v6685_v8 }
 0x27f   :  { %5106 = vmatprep.mubr.msk.f32.mxu1 %vm894_vm0, %v6699_v19 }
 0x282   :  { %5107 = vmatmul.mubr.msk.f32.gmra.mxu1 %vm894_vm0, %v6701_v30 }
 0x283   :  { %5109 = vmatprep.mubr.msk.f32.mxu1 %vm894_vm0, %v6715_v38 }
 0x286   :  { %5110 = vmatmul.mubr.msk.f32.gmra.mxu1 %vm894_vm0, %v6717_v42 }
 0x287   :  { %5112 = vmatprep.mubr.msk.f32.mxu1 %vm894_vm0, %v6731_v6 }
 0x28a   :  { %5113 = vmatmul.mubr.msk.f32.gmra.mxu1 %vm894_vm0, %v6733_v14 }
 0x28b   :  { %5119 = vmatprep.mubr.msk.f32.mxu1 %vm894_vm0, %v6555_v35  ;;  %v4922_v35 = vpop.f32.mrf.mxu1 }
 0x28e   :  { %5120 = vmatmul.mubr.msk.f32.vlgmr.msra.gmra.mxu1 %vm894_vm0, %v6557_v23  ;;  %v2238_v23 = vpop.f32.mrf.mxu0 }
 0x28f   :  { %5122 = vmatprep.mubr.msk.f32.mxu1 %vm894_vm0, %v6571_v24  ;;  %v1854_v24 = vpop.f32.mrf.mxu1  ;;  %5206 = vmatpush3.msra.mxu1 %v3234_v12 }
 0x290   :  { %5207 = vmatprep.subr.mxu1 %v3233_v3 }
 0x291   :  { %5208 = vmatpush3.msra.mxu1 %v3233_v3 }
 0x292   :  { %5123 = vmatmul.mubr.msk.f32.gmra.mxu1 %vm894_vm0, %v6573_v45  ;;  %v5022_v45 = vpop.f32.mrf.mxu0  ;;  %5209 = vmatprep.subr.mxu1 %v3232_v18 }
 0x293   :  { %5125 = vmatprep.mubr.msk.f32.mxu1 %vm894_vm0, %v6587_v36  ;;  %v7470_v36 = vld [vmem:[#allocation20_spill] sm:$0xff]  ;;  %5210 = vmatpush3.msra.mxu1 %v3232_v18 }
 0x294   :  { %5211 = vmatprep.subr.mxu1 %v3231_v40 }
 0x295   :  { %5212 = vmatpush3.msra.mxu1 %v3231_v40 }
 0x296   :  { %5126 = vmatmul.mubr.msk.f32.gmra.mxu1 %vm894_vm0, %v6589_v50  ;;  %v1855_v50 = vadd.f32 %v1854_v24, %v7470_v36 }
 0x297   :  { %5128 = vmatprep.mubr.msk.f32.mxu1 %vm894_vm0, %v6603_v13  ;;  %v7471_v13 = vld [vmem:[#allocation21_spill] sm:$0xff] }
 0x29a   :  { %5129 = vmatmul.mubr.msk.f32.gmra.mxu1 %vm894_vm0, %v6605_v58  ;;  %v1845_v58 = vadd.f32 %v1844_v22, %v7471_v13 }
 0x29b   :  { %5131 = vmatprep.mubr.msk.f32.mxu1 %vm894_vm0, %v6619_v46  ;;  %v2248_v46 = vpop.f32.mrf.mxu0 }
 0x29e   :  { %5132 = vmatmul.mubr.msk.f32.gmra.mxu1 %vm894_vm0, %v6621_v52  ;;  %v7472_v52 = vld [vmem:[#allocation18_spill] sm:$0xff] }
 0x29f   :  { %5134 = vmatprep.mubr.msk.f32.mxu1 %vm894_vm0, %v6635_v5  ;;  %v1860_v5 = vadd.f32 %v4922_v35, %v7472_v52 }
 0x2a2   :  { %5135 = vmatmul.mubr.msk.f32.gmra.mxu1 %vm894_vm0, %v6637_v60  ;;  %v2319_v60 = vadd.f32 %v2248_v46, %v1855_v50 }
 0x2a3   :  { %5137 = vmatprep.mubr.msk.f32.mxu1 %vm894_vm0, %v6651_v57  ;;  %v7473_v57 = vld [vmem:[#allocation19_spill] sm:$0xff] }
 0x2a6   :  { %5138 = vmatmul.mubr.msk.f32.gmra.mxu1 %vm894_vm0, %v6653_v32  ;;  %v1850_v32 = vadd.f32 %v4919_v31, %v7473_v57 }
 0x2a7   :  { %5140 = vmatprep.mubr.msk.f32.mxu1 %vm894_vm0, %v6667_v37  ;;  %v2317_v37 = vadd.f32 %v2238_v23, %v1845_v58 }
 0x2aa   :  { %5141 = vmatmul.mubr.msk.f32.gmra.mxu1 %vm894_vm0, %v6669_v56  ;;  %v2320_v56 = vadd.f32 %v5022_v45, %v1860_v5  ;;  %v6889_v51 = vpop.f32.mrf.mxu1 }
 0x2ab   :  { %5143 = vmatprep.mubr.msk.f32.mxu1 %vm894_vm0, %v6683_v55  ;;  %v2390_v55 = vadd.f32 %v6498_v54, %v2319_v60 }
 0x2ac   :  { %v2391_v17 = vadd.f32 %v6498_v54, %v2320_v56 }
 0x2ae   :  { %5144 = vmatmul.mubr.msk.f32.gmra.mxu1 %vm894_vm0, %v6685_v8  ;;  %v2318_v8 = vadd.f32 %v5019_v39, %v1850_v32 }
 0x2af   :  { %5146 = vmatprep.mubr.msk.f32.mxu1 %vm894_vm0, %v6699_v19  ;;  %v2388_v19 = vadd.f32 %v6498_v54, %v2317_v37 }
 0x2b1   :  { %v2422_v33 = vmax.f32 %v2388_v19, %v2390_v55 }
 0x2b2   :  { %5147 = vmatmul.mubr.msk.f32.gmra.mxu1 %vm894_vm0, %v6701_v30  ;;  %v4270_v30 = vld [vmem:[%s7311_s5 + $0x20] sm:$0xff] }
 0x2b3   :  { %5149 = vmatprep.mubr.msk.f32.mxu1 %vm894_vm0, %v6715_v38  ;;  %v2389_v38 = vadd.f32 %v6498_v54, %v2318_v8  ;;  %5167 = vmatprep.subr.mxu0 %v4270_v30  ;;  %v2454_v49 = vmax.f32 %v2422_v33, 0.0  ;;  %v6891_v54 = vpop.f32.mrf.mxu1 }
 0x2b4   :  { %5168 = vmatpush3.msra.mxu0 %v4270_v30 }
 0x2b5   :  { %v6893_v29 = vpop.f32.mrf.mxu1  ;;  %5249 = vmatprep.subr.mxu0 %v6920_v48 }
 0x2b6   :  { %5150 = vmatmul.mubr.msk.f32.gmra.mxu1 %vm894_vm0, %v6717_v42  ;;  %v2423_v42 = vmax.f32 %v2389_v38, %v2391_v17 }
 0x2b7   :  { %5152 = vmatprep.mubr.msk.f32.mxu1 %vm894_vm0, %v6731_v6  ;;  %v6895_v2 = vpop.f32.mrf.mxu1 }
 0x2b8   :  { %v2455_v43 = vmax.f32 %v2423_v42, 0.0 }
 0x2ba   :  { %5153 = vmatmul.mubr.msk.f32.gmra.mxu1 %vm894_vm0, %v6733_v14  ;;  %v6900_v59 = vpop.f32.mrf.mxu1 }
 0x2bb   :  { %5155 = vmatprep.mubr.msk.f32.mxu1 %vm894_vm0, %v6743_v1 }
 0x2bc   :  { %v6908_v25 = vpop.f32.mrf.mxu1 }
 0x2be   :  { %5156 = vmatmul.mubr.msk.f32.gmra.mxu1 %vm894_vm0, %v6745_v26 }
 0x2bf   :  { %5158 = vmatprep.mubr.msk.f32.mxu1 %vm894_vm0, %v2454_v49 }
 0x2c2   :  { %5159 = vmatmul.mubr.msk.f32.gmra.mxu1 %vm894_vm0, %v2455_v43  ;;  %v6913_v47 = vpop.f32.mrf.mxu1 }
 0x2c4   :  { %v6915_v63 = vpop.f32.mrf.mxu1 }
 0x2ca   :  { %v6922_v6 = vpop.f32.mrf.mxu1 }
 0x2cc   :  { %v6925_v14 = vpop.f32.mrf.mxu1 }
 0x2d2   :  { %v6927_v7 = vpop.f32.mrf.mxu1 }
 0x2d4   :  { %v6929_v11 = vpop.f32.mrf.mxu1 }
 0x2da   :  { %v6931_v41 = vpop.f32.mrf.mxu1 }
 0x2dc   :  { %v6933_v44 = vpop.f32.mrf.mxu1 }
 0x2e2   :  { %v6935_v20 = vpop.f32.mrf.mxu1 }
 0x2e4   :  { %v6937_v34 = vpop.f32.mrf.mxu1 }
 0x2ea   :  { %v6939_v28 = vpop.f32.mrf.mxu1 }
 0x2ec   :  { %v6941_v61 = vpop.f32.mrf.mxu1 }
 0x2f2   :  { %v6943_v1 = vpop.f32.mrf.mxu1 }
 0x2f4   :  { %v6945_v26 = vpop.f32.mrf.mxu1 }
 0x2fa   :  { %v6947_v53 = vpop.f32.mrf.mxu1 }
 0x2fc   :  { %v6949_v10 = vpop.f32.mrf.mxu1 }
 0x302   :  { %v6951_v4 = vpop.f32.mrf.mxu1 }
 0x304   :  { %v6953_v16 = vpop.f32.mrf.mxu1 }
 0x30a   :  { %v6955_v62 = vpop.f32.mrf.mxu1 }
 0x30b   :  { %7474 = vst [vmem:[#allocation25_spill] sm:$0xff] %v6955_v62 }
 0x30c   :  { %v6957_v9 = vpop.f32.mrf.mxu1 }
 0x30d   :  { %7475 = vst [vmem:[#allocation24_spill] sm:$0xff] %v6957_v9 }
 0x312   :  { %v5068_v21 = vpop.f32.mrf.mxu1 }
 0x314   :  { %v2741_v27 = vpop.f32.mrf.mxu1 }
 0x316   :  { %v5075_v15 = vpop.f32.mrf.mxu1 }
 0x317   :  { %v2828_v43 = vadd.f32 %v5075_v15, %v6889_v51 }
 0x318   :  { %v2822_v0 = vpop.f32.mrf.mxu1 }
 0x319   :  { %v2823_v3 = vadd.f32 %v2822_v0, %v6891_v54 }
 0x31a   :  { %v5078_v31 = vpop.f32.mrf.mxu1 }
 0x31b   :  { %v2838_v62 = vadd.f32 %v5078_v31, %v6893_v29 }
 0x31c   :  { %v2832_v22 = vpop.f32.mrf.mxu1 }
 0x31e   :  { %v5081_v39 = vpop.f32.mrf.mxu1 }
 0x31f   :  { %v2848_v51 = vadd.f32 %v5081_v39, %v6900_v59 }
 0x320   :  { %v2842_v35 = vpop.f32.mrf.mxu1 }
 0x321   :  { %v2843_v54 = vadd.f32 %v2842_v35, %v6908_v25 }
 0x322   :  { %v5084_v23 = vpop.f32.mrf.mxu1 }
 0x323   :  { %v2858_v59 = vadd.f32 %v5084_v23, %v6913_v47  ;;  %v4323_v47 = vld [vmem:[%s7311_s5 + $0x48] sm:$0xff] }
 0x324   :  { %v2852_v24 = vpop.f32.mrf.mxu1 }
 0x325   :  { %v2853_v25 = vadd.f32 %v2852_v24, %v6915_v63 }
 0x326   :  { %v6959_v45 = vpop.f32.mrf.mxu1 }
 0x327   :  { %v2868_v63 = vadd.f32 %v6959_v45, %v6922_v6  ;;  %v4322_v6 = vld [vmem:[%s7311_s5 + $0x40] sm:$0xff] }
 0x328   :  { %v6961_v36 = vpop.f32.mrf.mxu1 }
 0x329   :  { %v2863_v23 = vadd.f32 %v6961_v36, %v6925_v14 }
 0x32a   :  { %v6963_v50 = vpop.f32.mrf.mxu1 }
 0x32b   :  { %v2878_v14 = vadd.f32 %v6963_v50, %v6927_v7 }
 0x32c   :  { %v6965_v13 = vpop.f32.mrf.mxu1 }
 0x32d   :  { %v2873_v36 = vadd.f32 %v6965_v13, %v6929_v11 }
 0x32e   :  { %v6967_v58 = vpop.f32.mrf.mxu1 }
 0x32f   :  { %v2888_v7 = vadd.f32 %v6967_v58, %v6931_v41 }
 0x330   :  { %v6969_v46 = vpop.f32.mrf.mxu1 }
 0x331   :  { %v2883_v11 = vadd.f32 %v6969_v46, %v6933_v44 }
 0x332   :  { %v6971_v52 = vpop.f32.mrf.mxu1 }
 0x333   :  { %v2898_v41 = vadd.f32 %v6971_v52, %v6935_v20 }
 0x334   :  { %v6973_v5 = vpop.f32.mrf.mxu1 }
 0x335   :  { %v2893_v44 = vadd.f32 %v6973_v5, %v6937_v34 }
 0x336   :  { %v6975_v60 = vpop.f32.mrf.mxu1 }
 0x337   :  { %v2908_v20 = vadd.f32 %v6975_v60, %v6939_v28 }
 0x338   :  { %v6977_v57 = vpop.f32.mrf.mxu1 }
 0x339   :  { %v2903_v34 = vadd.f32 %v6977_v57, %v6941_v61 }
 0x33a   :  { %v6979_v32 = vpop.f32.mrf.mxu1 }
 0x33b   :  { %v2918_v28 = vadd.f32 %v6979_v32, %v6943_v1 }
 0x33c   :  { %v6981_v37 = vpop.f32.mrf.mxu1 }
 0x33d   :  { %v2913_v61 = vadd.f32 %v6981_v37, %v6945_v26 }
 0x33e   :  { %v6983_v56 = vpop.f32.mrf.mxu1 }
 0x33f   :  { %v2928_v1 = vadd.f32 %v6983_v56, %v6947_v53 }
 0x340   :  { %v6985_v55 = vpop.f32.mrf.mxu1 }
 0x341   :  { %v2923_v26 = vadd.f32 %v6985_v55, %v6949_v10 }
 0x342   :  { %v6987_v8 = vpop.f32.mrf.mxu1 }
 0x343   :  { %v2938_v53 = vadd.f32 %v6987_v8, %v6951_v4 }
 0x344   :  { %v6989_v19 = vpop.f32.mrf.mxu1 }
 0x345   :  { %7476 = vst [vmem:[#allocation27_spill] sm:$0xff] %v6989_v19 }
 0x346   :  { %v6991_v17 = vpop.f32.mrf.mxu1 }
 0x347   :  { %7477 = vst [vmem:[#allocation26_spill] sm:$0xff] %v6991_v17 }
 0x348   :  { %v6993_v33 = vpop.f32.mrf.mxu1 }
 0x349   :  { %7478 = vst [vmem:[#allocation28_spill] sm:$0xff] %v6993_v33  ;;  %v2833_v33 = vadd.f32 %v2832_v22, %v6895_v2  ;;  %v4324_v2 = vld [vmem:[%s7311_s5 + $0x50] sm:$0xff] }
 0x34a   :  { %v5114_v30 = vpop.f32.mrf.mxu1 }
 0x34b   :  { %v6995_v38 = vadd.f32 %v5114_v30, %v5068_v21 }
 0x34c   :  { %v2952_v42 = vpop.f32.mrf.mxu1 }
 0x34d   :  { %7479 = vst [vmem:[#allocation3_spill] sm:$0xff] %v6995_v38  ;;  %v6997_v49 = vadd.f32 %v2952_v42, %v2741_v27 }
 0x34e   :  { %v5121_v12 = vpop.f32.mrf.mxu1 }
 0x34f   :  { %v3176_v18 = vadd.f32 %v5121_v12, %v2828_v43 }
 0x350   :  { %v3036_v40 = vpop.f32.mrf.mxu1 }
 0x351   :  { %v3175_v9 = vadd.f32 %v3036_v40, %v2823_v3  ;;  %v3204_v21 = vmax.f32 %v3176_v18, 0.0 }
 0x352   :  { %v5124_v19 = vpop.f32.mrf.mxu1 }
 0x353   :  { %v3203_v17 = vmax.f32 %v3175_v9, 0.0  ;;  %v3178_v30 = vadd.f32 %v5124_v19, %v2838_v62 }
 0x354   :  { %v3046_v38 = vpop.f32.mrf.mxu1 }
 0x355   :  { %v3177_v27 = vadd.f32 %v3046_v38, %v2833_v33  ;;  %5213 = vmatprep.mubr.msk.f32.mxu1 %vm3240_vm1, %v3203_v17  ;;  %v3206_v29 = vmax.f32 %v3178_v30, 0.0 }
 0x356   :  { %v5127_v15 = vpop.f32.mrf.mxu1  ;;  %5214 = vmatmul.mubr.msk.f32.vlgmr.msra.gmra.mxu1 %vm3240_vm1, %v3204_v21 }
 0x357   :  { %v3205_v0 = vmax.f32 %v3177_v27, 0.0  ;;  %v3180_v31 = vadd.f32 %v5127_v15, %v2848_v51 }
 0x358   :  { %v3056_v42 = vpop.f32.mrf.mxu1 }
 0x359   :  { %v3179_v43 = vadd.f32 %v3056_v42, %v2843_v54  ;;  %5169 = vmatprep.mubr.msk.f32.mxu0 %vm3240_vm1, %v3205_v0  ;;  %5216 = vmatprep.mubr.msk.f32.mxu1 %vm3240_vm1, %v3205_v0  ;;  %v7019_v22 = vmax.f32 %v3180_v31, 0.0 }
 0x35a   :  { %v5130_v62 = vpop.f32.mrf.mxu1  ;;  %5170 = vmatmul.mubr.msk.f32.vlgmr.msra.gmra.mxu0 %vm3240_vm1, %v3206_v29  ;;  %5217 = vmatmul.mubr.msk.f32.gmra.mxu1 %vm3240_vm1, %v3206_v29 }
 0x35b   :  { %v7016_v9 = vmax.f32 %v3179_v43, 0.0  ;;  %5250 = vmatpush3.msra.mxu0 %v6920_v48  ;;  %v3182_v39 = vadd.f32 %v5130_v62, %v2858_v59 }
 0x35c   :  { %v3066_v35 = vpop.f32.mrf.mxu1  ;;  %5251 = vmatprep.subr.mxu0 %v4324_v2 }
 0x35d   :  { %v3181_v19 = vadd.f32 %v3066_v35, %v2853_v25  ;;  %5172 = vmatprep.mubr.msk.f32.mxu0 %vm3240_vm1, %v7016_v9  ;;  %5219 = vmatprep.mubr.msk.f32.mxu1 %vm3240_vm1, %v7016_v9  ;;  %v7038_v17 = vmax.f32 %v3182_v39, 0.0 }
 0x35e   :  { %v5133_v48 = vpop.f32.mrf.mxu1  ;;  %5173 = vmatmul.mubr.msk.f32.gmra.mxu0 %vm3240_vm1, %v7019_v22  ;;  %5220 = vmatmul.mubr.msk.f32.gmra.mxu1 %vm3240_vm1, %v7019_v22 }
 0x35f   :  { %v7036_v24 = vmax.f32 %v3181_v19, 0.0  ;;  %5252 = vmatpush3.msra.mxu0 %v4324_v2  ;;  %v3184_v33 = vadd.f32 %v5133_v48, %v2868_v63 }
 0x360   :  { %v3076_v38 = vpop.f32.mrf.mxu1  ;;  %5253 = vmatprep.subr.mxu0 %v4323_v47 }
 0x361   :  { %v3183_v12 = vadd.f32 %v3076_v38, %v2863_v23  ;;  %5175 = vmatprep.mubr.msk.f32.mxu0 %vm3240_vm1, %v7036_v24  ;;  %5222 = vmatprep.mubr.msk.f32.mxu1 %vm3240_vm1, %v7036_v24  ;;  %v7057_v18 = vmax.f32 %v3184_v33, 0.0  ;;  %v7480_v33 = vld [vmem:[#allocation27_spill] sm:$0xff] }
 0x362   :  { %v5136_v45 = vpop.f32.mrf.mxu1  ;;  %5176 = vmatmul.mubr.msk.f32.gmra.mxu0 %vm3240_vm1, %v7038_v17  ;;  %5223 = vmatmul.mubr.msk.f32.gmra.mxu1 %vm3240_vm1, %v7038_v17  ;;  %v2933_v10 = vadd.f32 %v7480_v33, %v6953_v16 }
 0x363   :  { %v7055_v3 = vmax.f32 %v3183_v12, 0.0  ;;  %5254 = vmatpush3.msra.mxu0 %v4323_v47  ;;  %v3186_v40 = vadd.f32 %v5136_v45, %v2878_v14  ;;  %v7481_v45 = vld [vmem:[#allocation25_spill] sm:$0xff] }
 0x364   :  { %v3086_v21 = vpop.f32.mrf.mxu1  ;;  %5255 = vmatprep.subr.mxu0 %v4322_v6 }
 0x365   :  { %v3185_v30 = vadd.f32 %v3086_v21, %v2873_v36  ;;  %5178 = vmatprep.mubr.msk.f32.mxu0 %vm3240_vm1, %v7055_v3  ;;  %5225 = vmatprep.mubr.msk.f32.mxu1 %vm3240_vm1, %v7055_v3  ;;  %v7073_v27 = vmax.f32 %v3186_v40, 0.0  ;;  %v7482_v36 = vld [vmem:[#allocation26_spill] sm:$0xff]  ;;  %v7483_v40 = vld [vmem:[#allocation24_spill] sm:$0xff] }
 0x366   :  { %v5139_v50 = vpop.f32.mrf.mxu1  ;;  %5179 = vmatmul.mubr.msk.f32.gmra.mxu0 %vm3240_vm1, %v7057_v18  ;;  %5226 = vmatmul.mubr.msk.f32.gmra.mxu1 %vm3240_vm1, %v7057_v18  ;;  %v2948_v4 = vadd.f32 %v7482_v36, %v7481_v45  ;;  %v7484_v21 = vld [vmem:[#allocation28_spill] sm:$0xff]  ;;  %v7226_v36 = vld [vmem:[%s7312_s6] ss:$0 sm:$0xff] }
 0x367   :  { %v7071_v13 = vmax.f32 %v3185_v30, 0.0  ;;  %5256 = vmatpush3.msra.mxu0 %v4322_v6  ;;  %v3188_v51 = vadd.f32 %v5139_v50, %v2888_v7  ;;  %v2943_v16 = vadd.f32 %v7484_v21, %v7483_v40 }
 0x368   :  { %v3096_v15 = vpop.f32.mrf.mxu1 }
 0x369   :  { %v3187_v54 = vadd.f32 %v3096_v15, %v2883_v11  ;;  %5181 = vmatprep.mubr.msk.f32.mxu0 %vm3240_vm1, %v7071_v13  ;;  %5228 = vmatprep.mubr.msk.f32.mxu1 %vm3240_vm1, %v7071_v13  ;;  %v7089_v0 = vmax.f32 %v3188_v51, 0.0 }
 0x36a   :  { %v5142_v58 = vpop.f32.mrf.mxu1  ;;  %5182 = vmatmul.mubr.msk.f32.gmra.mxu0 %vm3240_vm1, %v7073_v27  ;;  %5229 = vmatmul.mubr.msk.f32.gmra.mxu1 %vm3240_vm1, %v7073_v27 }
 0x36b   :  { %v7087_v46 = vmax.f32 %v3187_v54, 0.0  ;;  %v3190_v29 = vadd.f32 %v5142_v58, %v2898_v41 }
 0x36c   :  { %v3106_v31 = vpop.f32.mrf.mxu1 }
 0x36d   :  { %v3189_v42 = vadd.f32 %v3106_v31, %v2893_v44  ;;  %5184 = vmatprep.mubr.msk.f32.mxu0 %vm3240_vm1, %v7087_v46  ;;  %5231 = vmatprep.mubr.msk.f32.mxu1 %vm3240_vm1, %v7087_v46  ;;  %v7105_v43 = vmax.f32 %v3190_v29, 0.0 }
 0x36e   :  { %v5145_v52 = vpop.f32.mrf.mxu1  ;;  %5185 = vmatmul.mubr.msk.f32.gmra.mxu0 %vm3240_vm1, %v7089_v0  ;;  %5232 = vmatmul.mubr.msk.f32.gmra.mxu1 %vm3240_vm1, %v7089_v0 }
 0x36f   :  { %v7103_v5 = vmax.f32 %v3189_v42, 0.0  ;;  %v3192_v2 = vadd.f32 %v5145_v52, %v2908_v20 }
 0x370   :  { %v3116_v59 = vpop.f32.mrf.mxu1 }
 0x371   :  { %v3191_v62 = vadd.f32 %v3116_v59, %v2903_v34  ;;  %5187 = vmatprep.mubr.msk.f32.mxu0 %vm3240_vm1, %v7103_v5  ;;  %5234 = vmatprep.mubr.msk.f32.mxu1 %vm3240_vm1, %v7103_v5  ;;  %v3220_v25 = vmax.f32 %v3192_v2, 0.0 }
 0x372   :  { %v5148_v60 = vpop.f32.mrf.mxu1  ;;  %5188 = vmatmul.mubr.msk.f32.gmra.mxu0 %vm3240_vm1, %v7105_v43  ;;  %5235 = vmatmul.mubr.msk.f32.gmra.mxu1 %vm3240_vm1, %v7105_v43 }
 0x373   :  { %v3219_v57 = vmax.f32 %v3191_v62, 0.0  ;;  %v3194_v39 = vadd.f32 %v5148_v60, %v2918_v28 }
 0x374   :  { %v3126_v35 = vpop.f32.mrf.mxu1 }
 0x375   :  { %v3193_v19 = vadd.f32 %v3126_v35, %v2913_v61  ;;  %5190 = vmatprep.mubr.msk.f32.mxu0 %vm3240_vm1, %v3219_v57  ;;  %5237 = vmatprep.mubr.msk.f32.mxu1 %vm3240_vm1, %v3219_v57  ;;  %v3222_v47 = vmax.f32 %v3194_v39, 0.0 }
 0x376   :  { %v5151_v32 = vpop.f32.mrf.mxu1  ;;  %5191 = vmatmul.mubr.msk.f32.gmra.mxu0 %vm3240_vm1, %v3220_v25  ;;  %5238 = vmatmul.mubr.msk.f32.gmra.mxu1 %vm3240_vm1, %v3220_v25 }
 0x377   :  { %v3221_v37 = vmax.f32 %v3193_v19, 0.0  ;;  %v3196_v63 = vadd.f32 %v5151_v32, %v2928_v1 }
 0x378   :  { %v3136_v48 = vpop.f32.mrf.mxu1 }
 0x379   :  { %v3195_v23 = vadd.f32 %v3136_v48, %v2923_v26  ;;  %5193 = vmatprep.mubr.msk.f32.mxu0 %vm3240_vm1, %v3221_v37  ;;  %5240 = vmatprep.mubr.msk.f32.mxu1 %vm3240_vm1, %v3221_v37  ;;  %v3224_v38 = vmax.f32 %v3196_v63, 0.0 }
 0x37a   :  { %v5154_v56 = vpop.f32.mrf.mxu1  ;;  %5194 = vmatmul.mubr.msk.f32.gmra.mxu0 %vm3240_vm1, %v3222_v47  ;;  %5241 = vmatmul.mubr.msk.f32.gmra.mxu1 %vm3240_vm1, %v3222_v47 }
 0x37b   :  { %v3223_v55 = vmax.f32 %v3195_v23, 0.0  ;;  %v3198_v12 = vadd.f32 %v5154_v56, %v2938_v53 }
 0x37c   :  { %v3146_v6 = vpop.f32.mrf.mxu1 }
 0x37d   :  { %v3197_v14 = vadd.f32 %v3146_v6, %v2933_v10  ;;  %5196 = vmatprep.mubr.msk.f32.mxu0 %vm3240_vm1, %v3223_v55  ;;  %5243 = vmatprep.mubr.msk.f32.mxu1 %vm3240_vm1, %v3223_v55  ;;  %v3226_v7 = vmax.f32 %v3198_v12, 0.0 }
 0x37e   :  { %v5157_v8 = vpop.f32.mrf.mxu1  ;;  %5197 = vmatmul.mubr.msk.f32.gmra.mxu0 %vm3240_vm1, %v3224_v38  ;;  %5244 = vmatmul.mubr.msk.f32.gmra.mxu1 %vm3240_vm1, %v3224_v38 }
 0x37f   :  { %v3225_v30 = vmax.f32 %v3197_v14, 0.0  ;;  %v3200_v50 = vadd.f32 %v5157_v8, %v2948_v4 }
 0x380   :  { %v3156_v11 = vpop.f32.mrf.mxu1 }
 0x381   :  { %v3199_v51 = vadd.f32 %v3156_v11, %v2943_v16  ;;  %5199 = vmatprep.mubr.msk.f32.mxu0 %vm3240_vm1, %v3225_v30  ;;  %5246 = vmatprep.mubr.msk.f32.mxu1 %vm3240_vm1, %v3225_v30  ;;  %v3228_v54 = vmax.f32 %v3200_v50, 0.0 }
 0x382   :  { %5200 = vmatmul.mubr.msk.f32.gmra.mxu0 %vm3240_vm1, %v3226_v7  ;;  %5247 = vmatmul.mubr.msk.f32.gmra.mxu1 %vm3240_vm1, %v3226_v7 }
 0x383   :  { %v3227_v15 = vmax.f32 %v3199_v51, 0.0 }
 0x385   :  { %5202 = vmatprep.mubr.msk.f32.mxu0 %vm3240_vm1, %v3227_v15 }
 0x386   :  { %5203 = vmatmul.mubr.msk.f32.gmra.mxu0 %vm3240_vm1, %v3228_v54 }
 0x387   :  { %5257 = vmatprep.mubr.msk.f32.mxu0 %vm3240_vm1, %v7016_v9  ;;  %v5160_v9 = vpop.f32.mrf.mxu1 }
 0x38a   :  { %5258 = vmatmul.mubr.msk.f32.vlgmr.msra.gmra.mxu0 %vm3240_vm1, %v7019_v22  ;;  %v3166_v22 = vpop.f32.mrf.mxu1 }
 0x38b   :  { %5260 = vmatprep.mubr.msk.f32.mxu0 %vm3240_vm1, %v7036_v24  ;;  %v3201_v24 = vadd.f32 %v3166_v22, %v6997_v49 }
 0x38e   :  { %5261 = vmatmul.mubr.msk.f32.gmra.mxu0 %vm3240_vm1, %v7038_v17  ;;  %v7485_v17 = vld [vmem:[#allocation3_spill] sm:$0xff] }
 0x38f   :  { %5263 = vmatprep.mubr.msk.f32.mxu0 %vm3240_vm1, %v7055_v3  ;;  %v3202_v3 = vadd.f32 %v5160_v9, %v7485_v17 }
 0x392   :  { %5264 = vmatmul.mubr.msk.f32.gmra.mxu0 %vm3240_vm1, %v7057_v18  ;;  %v3229_v18 = vmax.f32 %v3201_v24, 0.0 }
 0x393   :  { %5266 = vmatprep.mubr.msk.f32.mxu0 %vm3240_vm1, %v7071_v13  ;;  %v3230_v13 = vmax.f32 %v3202_v3, 0.0 }
 0x396   :  { %5267 = vmatmul.mubr.msk.f32.gmra.mxu0 %vm3240_vm1, %v7073_v27 }
 0x397   :  { %5269 = vmatprep.mubr.msk.f32.mxu0 %vm3240_vm1, %v7087_v46 }
 0x39a   :  { %5270 = vmatmul.mubr.msk.f32.gmra.mxu0 %vm3240_vm1, %v7089_v0 }
 0x39b   :  { %5272 = vmatprep.mubr.msk.f32.mxu0 %vm3240_vm1, %v7103_v5 }
 0x39e   :  { %5273 = vmatmul.mubr.msk.f32.gmra.mxu0 %vm3240_vm1, %v7105_v43 }
 0x39f   :  { %5275 = vmatprep.mubr.msk.f32.mxu0 %vm3240_vm1, %v3219_v57 }
 0x3a2   :  { %5276 = vmatmul.mubr.msk.f32.gmra.mxu0 %vm3240_vm1, %v3220_v25 }
 0x3a3   :  { %5278 = vmatprep.mubr.msk.f32.mxu0 %vm3240_vm1, %v3221_v37 }
 0x3a6   :  { %5279 = vmatmul.mubr.msk.f32.gmra.mxu0 %vm3240_vm1, %v3222_v47 }
 0x3a7   :  { %5281 = vmatprep.mubr.msk.f32.mxu0 %vm3240_vm1, %v3223_v55 }
 0x3aa   :  { %5282 = vmatmul.mubr.msk.f32.gmra.mxu0 %vm3240_vm1, %v3224_v38 }
 0x3ab   :  { %5284 = vmatprep.mubr.msk.f32.mxu0 %vm3240_vm1, %v3225_v30 }
 0x3ae   :  { %5285 = vmatmul.mubr.msk.f32.gmra.mxu0 %vm3240_vm1, %v3226_v7 }
 0x3af   :  { %5287 = vmatprep.mubr.msk.f32.mxu0 %vm3240_vm1, %v3227_v15 }
 0x3b2   :  { %5288 = vmatmul.mubr.msk.f32.gmra.mxu0 %vm3240_vm1, %v3228_v54 }
 0x3b3   :  { %5290 = vmatprep.mubr.msk.f32.mxu0 %vm3240_vm1, %v3229_v18 }
 0x3b6   :  { %5291 = vmatmul.mubr.msk.f32.gmra.mxu0 %vm3240_vm1, %v3230_v13 }
 0x416   :  { %v5215_v27 = vpop.f32.mrf.mxu1 }
 0x418   :  { %v3570_v44 = vpop.f32.mrf.mxu1 }
 0x41a   :  { %v5171_v41 = vpop.f32.mrf.mxu0  ;;  %v5218_v0 = vpop.f32.mrf.mxu1 }
 0x41b   :  { %v3576_v55 = vadd.f32 %v5215_v27, %v5171_v41 }
 0x41c   :  { %v3379_v58 = vpop.f32.mrf.mxu0  ;;  %v3580_v42 = vpop.f32.mrf.mxu1 }
 0x41d   :  { %v3571_v12 = vadd.f32 %v3570_v44, %v3379_v58 }
 0x41e   :  { %v5174_v46 = vpop.f32.mrf.mxu0  ;;  %v5221_v34 = vpop.f32.mrf.mxu1 }
 0x41f   :  { %v3586_v6 = vadd.f32 %v5218_v0, %v5174_v46 }
 0x420   :  { %v3389_v49 = vpop.f32.mrf.mxu0  ;;  %v3590_v2 = vpop.f32.mrf.mxu1 }
 0x421   :  { %v3581_v8 = vadd.f32 %v3580_v42, %v3389_v49 }
 0x422   :  { %v5177_v29 = vpop.f32.mrf.mxu0  ;;  %v5224_v28 = vpop.f32.mrf.mxu1 }
 0x423   :  { %v3596_v15 = vadd.f32 %v5221_v34, %v5177_v29 }
 0x424   :  { %v3399_v31 = vpop.f32.mrf.mxu0  ;;  %v3600_v57 = vpop.f32.mrf.mxu1 }
 0x425   :  { %v3591_v24 = vadd.f32 %v3590_v2, %v3399_v31 }
 0x426   :  { %v5180_v20 = vpop.f32.mrf.mxu0  ;;  %v5227_v35 = vpop.f32.mrf.mxu1 }
 0x427   :  { %v3606_v3 = vadd.f32 %v5224_v28, %v5180_v20 }
 0x428   :  { %v3409_v52 = vpop.f32.mrf.mxu0  ;;  %v3610_v32 = vpop.f32.mrf.mxu1 }
 0x429   :  { %v3601_v44 = vadd.f32 %v3600_v57, %v3409_v52 }
 0x42a   :  { %v7187_v5 = vpop.f32.mrf.mxu0  ;;  %v5230_v47 = vpop.f32.mrf.mxu1 }
 0x42b   :  { %v3616_v52 = vadd.f32 %v5227_v35, %v7187_v5 }
 0x42c   :  { %v7189_v43 = vpop.f32.mrf.mxu0  ;;  %v3620_v23 = vpop.f32.mrf.mxu1 }
 0x42e   :  { %v7191_v59 = vpop.f32.mrf.mxu0  ;;  %v7219_v33 = vpop.f32.mrf.mxu1 }
 0x430   :  { %v7193_v62 = vpop.f32.mrf.mxu0  ;;  %v7221_v45 = vpop.f32.mrf.mxu1 }
 0x432   :  { %v7195_v60 = vpop.f32.mrf.mxu0  ;;  %v5236_v11 = vpop.f32.mrf.mxu1 }
 0x434   :  { %v7197_v61 = vpop.f32.mrf.mxu0  ;;  %v3640_v41 = vpop.f32.mrf.mxu1 }
 0x436   :  { %v7199_v25 = vpop.f32.mrf.mxu0  ;;  %v5239_v34 = vpop.f32.mrf.mxu1 }
 0x438   :  { %v7201_v39 = vpop.f32.mrf.mxu0 }
 0x43a   :  { %v7203_v19 = vpop.f32.mrf.mxu0 }
 0x43c   :  { %v7205_v1 = vpop.f32.mrf.mxu0 }
 0x43e   :  { %v7207_v26 = vpop.f32.mrf.mxu0 }
 0x440   :  { %v7209_v37 = vpop.f32.mrf.mxu0 }
 0x442   :  { %v7211_v63 = vpop.f32.mrf.mxu0 }
 0x444   :  { %v7213_v48 = vpop.f32.mrf.mxu0 }
 0x446   :  { %v7215_v53 = vpop.f32.mrf.mxu0 }
 0x448   :  { %v7217_v56 = vpop.f32.mrf.mxu0 }
 0x44a   :  { %v5259_v10 = vpop.f32.mrf.mxu0 }
 0x44b   :  { %v3886_v14 = vadd.f32 %v5259_v10, %v3576_v55  ;;  %v3611_v55 = vadd.f32 %v3610_v32, %v7189_v43 }
 0x44c   :  { %v3766_v38 = vpop.f32.mrf.mxu0 }
 0x44d   :  { %v3885_v40 = vadd.f32 %v3766_v38, %v3571_v12  ;;  %v3917_v30 = vadd.f32 %v7226_v36, %v3886_v14  ;;  %v3626_v12 = vadd.f32 %v5230_v47, %v7191_v59 }
 0x44e   :  { %v5262_v4 = vpop.f32.mrf.mxu0 }
 0x44f   :  { %v3888_v21 = vadd.f32 %v5262_v4, %v3586_v6  ;;  %v3916_v54 = vadd.f32 %v7226_v36, %v3885_v40 }
 0x450   :  { %v3776_v16 = vpop.f32.mrf.mxu0 }
 0x451   :  { %v3919_v7 = vadd.f32 %v7226_v36, %v3888_v21  ;;  %v3887_v50 = vadd.f32 %v3776_v16, %v3581_v8  ;;  %v3650_v8 = vpop.f32.mrf.mxu1  ;;  %v3621_v21 = vadd.f32 %v3620_v23, %v7193_v62  ;;  %v3636_v62 = vadd.f32 %v7219_v33, %v7195_v60 }
 0x452   :  { %v5265_v51 = vpop.f32.mrf.mxu0 }
 0x453   :  { %v3941_v9 = vmax.f32 %v3917_v30, %v3919_v7  ;;  %v3918_v22 = vadd.f32 %v7226_v36, %v3887_v50  ;;  %v3890_v27 = vadd.f32 %v5265_v51, %v3596_v15  ;;  %v5242_v47 = vpop.f32.mrf.mxu1  ;;  %v3631_v15 = vadd.f32 %v7221_v45, %v7197_v61 }
 0x454   :  { %v3786_v17 = vpop.f32.mrf.mxu0 }
 0x455   :  { %v3953_v18 = vmax.f32 %v3941_v9, 0.0  ;;  %v3940_v13 = vmax.f32 %v3916_v54, %v3918_v22  ;;  %v3889_v49 = vadd.f32 %v3786_v17, %v3591_v24  ;;  %v3921_v31 = vadd.f32 %v7226_v36, %v3890_v27 }
 0x456   :  { %v5268_v58 = vpop.f32.mrf.mxu0  ;;  %v3646_v9 = vadd.f32 %v5236_v11, %v7199_v25 }
 0x457   :  { %3965 = vst [vmem:[%s7313_s7 + $0x8] sm:$0xff] %v3953_v18  ;;  %v3952_v46 = vmax.f32 %v3940_v13, 0.0  ;;  %v3892_v0 = vadd.f32 %v5268_v58, %v3606_v3  ;;  %v3920_v28 = vadd.f32 %v7226_v36, %v3889_v49  ;;  %v3660_v3 = vpop.f32.mrf.mxu1  ;;  %v3641_v13 = vadd.f32 %v3640_v41, %v7201_v39 }
 0x458   :  { %v3796_v29 = vpop.f32.mrf.mxu0  ;;  %v3656_v39 = vadd.f32 %v5239_v34, %v7203_v19 }
 0x459   :  { %3964 = vst [vmem:[%s7313_s7] sm:$0xff] %v3952_v46  ;;  %v3923_v42 = vadd.f32 %v7226_v36, %v3892_v0  ;;  %v3891_v20 = vadd.f32 %v3796_v29, %v3601_v44  ;;  %v5245_v11 = vpop.f32.mrf.mxu1  ;;  %v3651_v0 = vadd.f32 %v3650_v8, %v7205_v1 }
 0x45a   :  { %v5271_v2 = vpop.f32.mrf.mxu0 }
 0x45b   :  { %v3943_v57 = vmax.f32 %v3921_v31, %v3923_v42  ;;  %v3922_v10 = vadd.f32 %v7226_v36, %v3891_v20  ;;  %v3894_v4 = vadd.f32 %v5271_v2, %v3616_v52  ;;  %v3666_v31 = vadd.f32 %v5242_v47, %v7207_v26  ;;  %v3670_v52 = vpop.f32.mrf.mxu1 }
 0x45c   :  { %v3806_v38 = vpop.f32.mrf.mxu0 }
 0x45d   :  { %v3955_v6 = vmax.f32 %v3943_v57, 0.0  ;;  %v3942_v14 = vmax.f32 %v3920_v28, %v3922_v10  ;;  %v3893_v35 = vadd.f32 %v3806_v38, %v3611_v55  ;;  %v3925_v43 = vadd.f32 %v7226_v36, %v3894_v4 }
 0x45e   :  { %v5274_v40 = vpop.f32.mrf.mxu0  ;;  %v3661_v57 = vadd.f32 %v3660_v3, %v7209_v37  ;;  %v3676_v37 = vadd.f32 %v5245_v11, %v7211_v63 }
 0x45f   :  { %3967 = vst [vmem:[%s7313_s7 + $0x18] sm:$0xff] %v3955_v6  ;;  %v3954_v5 = vmax.f32 %v3942_v14, 0.0  ;;  %v3896_v16 = vadd.f32 %v5274_v40, %v3626_v12  ;;  %v3924_v23 = vadd.f32 %v7226_v36, %v3893_v35  ;;  %v5248_v12 = vpop.f32.mrf.mxu1  ;;  %v3671_v40 = vadd.f32 %v3670_v52, %v7213_v48 }
 0x460   :  { %v3816_v30 = vpop.f32.mrf.mxu0 }
 0x461   :  { %3966 = vst [vmem:[%s7313_s7 + $0x10] sm:$0xff] %v3954_v5  ;;  %v3927_v59 = vadd.f32 %v7226_v36, %v3896_v16  ;;  %v3895_v32 = vadd.f32 %v3816_v30, %v3621_v21  ;;  %v3686_v5 = vadd.f32 %v5248_v12, %v7215_v53 }
 0x462   :  { %v5277_v7 = vpop.f32.mrf.mxu0 }
 0x463   :  { %v3945_v50 = vmax.f32 %v3925_v43, %v3927_v59  ;;  %v3926_v51 = vadd.f32 %v7226_v36, %v3895_v32  ;;  %v3898_v17 = vadd.f32 %v5277_v7, %v3636_v62  ;;  %v3680_v43 = vpop.f32.mrf.mxu1 }
 0x464   :  { %v3826_v54 = vpop.f32.mrf.mxu0  ;;  %v3681_v32 = vadd.f32 %v3680_v43, %v7217_v56 }
 0x465   :  { %v3957_v22 = vmax.f32 %v3945_v50, 0.0  ;;  %v3944_v24 = vmax.f32 %v3924_v23, %v3926_v51  ;;  %v3897_v33 = vadd.f32 %v3826_v54, %v3631_v15  ;;  %v3929_v61 = vadd.f32 %v7226_v36, %v3898_v17 }
 0x466   :  { %v5280_v18 = vpop.f32.mrf.mxu0 }
 0x467   :  { %3969 = vst [vmem:[%s7313_s7 + $0x28] sm:$0xff] %v3957_v22  ;;  %v3956_v60 = vmax.f32 %v3944_v24, 0.0  ;;  %v3900_v27 = vadd.f32 %v5280_v18, %v3646_v9  ;;  %v3928_v41 = vadd.f32 %v7226_v36, %v3897_v33 }
 0x468   :  { %v3836_v58 = vpop.f32.mrf.mxu0 }
 0x469   :  { %3968 = vst [vmem:[%s7313_s7 + $0x20] sm:$0xff] %v3956_v60  ;;  %v3931_v25 = vadd.f32 %v7226_v36, %v3900_v27  ;;  %v3899_v45 = vadd.f32 %v3836_v58, %v3641_v13 }
 0x46a   :  { %v5283_v44 = vpop.f32.mrf.mxu0 }
 0x46b   :  { %v3947_v46 = vmax.f32 %v3929_v61, %v3931_v25  ;;  %v3930_v49 = vadd.f32 %v7226_v36, %v3899_v45  ;;  %v3902_v2 = vadd.f32 %v5283_v44, %v3656_v39 }
 0x46c   :  { %v3846_v29 = vpop.f32.mrf.mxu0 }
 0x46d   :  { %v3959_v42 = vmax.f32 %v3947_v46, 0.0  ;;  %v3946_v20 = vmax.f32 %v3928_v41, %v3930_v49  ;;  %v3901_v34 = vadd.f32 %v3846_v29, %v3651_v0  ;;  %v3933_v1 = vadd.f32 %v7226_v36, %v3902_v2 }
 0x46e   :  { %v5286_v28 = vpop.f32.mrf.mxu0 }
 0x46f   :  { %3971 = vst [vmem:[%s7313_s7 + $0x38] sm:$0xff] %v3959_v42  ;;  %v3958_v19 = vmax.f32 %v3946_v20, 0.0  ;;  %v3904_v10 = vadd.f32 %v5286_v28, %v3666_v31  ;;  %v3932_v14 = vadd.f32 %v7226_v36, %v3901_v34 }
 0x470   :  { %v3856_v55 = vpop.f32.mrf.mxu0 }
 0x471   :  { %3970 = vst [vmem:[%s7313_s7 + $0x30] sm:$0xff] %v3958_v19  ;;  %v3935_v26 = vadd.f32 %v7226_v36, %v3904_v10  ;;  %v3903_v38 = vadd.f32 %v3856_v55, %v3661_v57 }
 0x472   :  { %v5289_v6 = vpop.f32.mrf.mxu0 }
 0x473   :  { %v3949_v4 = vmax.f32 %v3933_v1, %v3935_v26  ;;  %v3934_v8 = vadd.f32 %v7226_v36, %v3903_v38  ;;  %v3906_v30 = vadd.f32 %v5289_v6, %v3676_v37 }
 0x474   :  { %v3866_v21 = vpop.f32.mrf.mxu0 }
 0x475   :  { %v3961_v35 = vmax.f32 %v3949_v4, 0.0  ;;  %v3948_v16 = vmax.f32 %v3932_v14, %v3934_v8  ;;  %v3905_v47 = vadd.f32 %v3866_v21, %v3671_v40  ;;  %v3937_v48 = vadd.f32 %v7226_v36, %v3906_v30 }
 0x476   :  { %v5292_v59 = vpop.f32.mrf.mxu0 }
 0x477   :  { %3973 = vst [vmem:[%s7313_s7 + $0x48] sm:$0xff] %v3961_v35  ;;  %v3960_v63 = vmax.f32 %v3948_v16, 0.0  ;;  %v3908_v7 = vadd.f32 %v5292_v59, %v3686_v5  ;;  %v3936_v50 = vadd.f32 %v7226_v36, %v3905_v47 }
 0x478   :  { %v3876_v62 = vpop.f32.mrf.mxu0 }
 0x479   :  { %3972 = vst [vmem:[%s7313_s7 + $0x40] sm:$0xff] %v3960_v63  ;;  %v3939_v53 = vadd.f32 %v7226_v36, %v3908_v7  ;;  %v3907_v23 = vadd.f32 %v3876_v62, %v3681_v32 }
 0x47b   :  { %v3951_v56 = vmax.f32 %v3937_v48, %v3939_v53  ;;  %v3938_v51 = vadd.f32 %v7226_v36, %v3907_v23 }
 0x47d   :  { %v3963_v15 = vmax.f32 %v3951_v56, 0.0  ;;  %v3950_v54 = vmax.f32 %v3936_v50, %v3938_v51 }
 0x47f   :  { %3975 = vst [vmem:[%s7313_s7 + $0x58] sm:$0xff] %v3963_v15  ;;  %v3962_v9 = vmax.f32 %v3950_v54, 0.0 }
 0x481   :  { %3974 = vst [vmem:[%s7313_s7 + $0x50] sm:$0xff] %v3962_v9 }

</bundles_post_ra>
